<compile_context>
chip_gen: v7x
topology: tpu7x:2x2x1
jax: 0.10.0
libtpu: 0.0.40
codegen_flags: <defaults>
</compile_context>

<pallas_src>
import functools

import jax
import jax.numpy as jnp
from jax import lax
from jax.experimental import pallas as pl
from jax.experimental.pallas import tpu as pltpu

DIM = 64
D2 = 2 * DIM  # 128


def _round_up(x, m):
    return (x + m - 1) // m * m


def net_kernel(x_ref, mask_ref, w1_ref, b1_ref, w2_ref, b2_ref, w3_ref, b3_ref,
               o_ref, *, row):
    """One grid step = one group of images, flattened along the lane axis.

    x_ref   : (1, 1, S)  padded-flat input pixels (S = NB * SPAD, mult. of 128)
    mask_ref: (1, S)     1.0 on interior pixels, 0.0 on pad ring / tail padding
    w1/b1   : (64, 1)    conv1 weight / bias (columns)
    w2      : (128, 576) conv2 weights packed as [co, tap*64 + ci]
    b2      : (128, 1)
    w3      : (9, 128)   conv3 weights packed as [tap, ci]
    b3      : (1, 1)
    o_ref   : (1, 1, S)  sigmoid output in the same padded-flat layout
    """
    S = x_ref.shape[2]
    halo = row + 1                       # max |tap offset| in padded-flat layout
    offs = [(dy - 1) * row + (dx - 1) for dy in range(3) for dx in range(3)]

    x = x_ref[0]                         # (1, S)
    mask = mask_ref[...]                 # (1, S)

    # ---- conv1: 1x1, 1 -> 64, + ReLU (pointwise, VPU).  The mask zeroes the
    #      pad ring so the 3x3 convs below see a true zero padding.
    y1 = jnp.maximum(w1_ref[...] * x + b1_ref[...], 0.0) * mask          # (64, S)

    # ---- conv2: 3x3, 64 -> 128, padding=1, + ReLU.
    # im2col along the sublane axis: 9 lane-shifted views of y1 stacked into
    # (576, S), contracted in ONE MXU matmul (K = 576).  Shifts are static
    # lane slices of a zero-extended copy; interior outputs are exact because
    # pad-ring values are zero, non-interior lanes are discarded later.
    zpad1 = jnp.zeros((y1.shape[0], halo), jnp.float32)
    y1w = jnp.concatenate([zpad1, y1, zpad1], axis=1)                    # (64, S+2*halo)
    patches = jnp.concatenate(
        [y1w[:, halo + off:halo + off + S] for off in offs], axis=0)     # (576, S)
    y2 = jnp.dot(w2_ref[...], patches,
                 preferred_element_type=jnp.float32)                     # (128, S)
    y2 = jnp.maximum(y2 + b2_ref[...], 0.0) * mask

    # ---- conv3: 3x3, 128 -> 1, padding=1, + Sigmoid.
    # One lane-dense (9,128)@(128,S) matmul, then accumulate the 9 tap rows
    # with static lane shifts on the VPU (instead of nine (HW,128)x(128,1)
    # matmuls with a lane-width-1 result).
    z = jnp.dot(w3_ref[...], y2, preferred_element_type=jnp.float32)     # (9, S)
    zpad3 = jnp.zeros((z.shape[0], halo), jnp.float32)
    zw = jnp.concatenate([zpad3, z, zpad3], axis=1)                      # (9, S+2*halo)
    acc = zw[0:1, halo + offs[0]:halo + offs[0] + S]
    for k in range(1, 9):
        acc = acc + zw[k:k + 1, halo + offs[k]:halo + offs[k] + S]       # (1, S)
    logits = (acc + b3_ref[...]) * mask

    # Lane-dense epilogue: exp on the EUP + approximate reciprocal (EUP slot).
    o_ref[0] = pl.reciprocal(1.0 + jnp.exp(-logits), approx=True)


def net_forward(x_nchw, params, *, images_per_step=1):
    """Forward pass of `Net`. params are in PyTorch (OIHW / O) layouts."""
    w1, b1, w2, b2, w3, b3 = params
    N, C, H, W = x_nchw.shape
    assert C == 1
    NB = images_per_step
    assert N % NB == 0
    row = W + 2                                   # padded-row stride
    pad_hw = (H + 2) * (W + 2)                    # padded-flat spatial extent
    spad = _round_up(pad_hw, 128)                 # lane-dense per-image extent
    S = NB * spad

    # ---- layout plumbing (pure pads/reshapes, done once in XLA) ----
    xp = jnp.pad(x_nchw[:, 0], ((0, 0), (1, 1), (1, 1)))        # (N, H+2, W+2)
    xp = jnp.pad(xp.reshape(N, pad_hw), ((0, 0), (0, spad - pad_hw)))
    xp = xp.reshape(N // NB, 1, S)

    # Interior mask: 1.0 on real pixels, 0.0 on pad ring and lane tail.
    m = jnp.zeros((H + 2, W + 2), jnp.float32).at[1:H + 1, 1:W + 1].set(1.0)
    m = jnp.pad(m.reshape(pad_hw), (0, spad - pad_hw))
    mask = jnp.tile(m, (NB,)).reshape(1, S)

    # Weights repacked lane-dense for the transposed (channel, spatial) layout.
    w1c = w1.reshape(DIM, 1)
    b1c = b1.reshape(DIM, 1)
    # conv2: (co, ci, kh, kw) -> (co, (kh*3+kw)*64 + ci), matching patch order.
    w2p = jnp.transpose(w2, (0, 2, 3, 1)).reshape(D2, 9 * DIM)   # (128, 576)
    b2c = b2.reshape(D2, 1)
    # conv3: (1, ci, kh, kw) -> (kh*3+kw, ci)
    w3p = jnp.transpose(w3[0], (1, 2, 0)).reshape(9, D2)         # (9, 128)
    b3c = b3.reshape(1, 1)

    kernel = functools.partial(net_kernel, row=row)
    out = pl.pallas_call(
        kernel,
        out_shape=jax.ShapeDtypeStruct((N // NB, 1, S), jnp.float32),
        grid_spec=pltpu.PrefetchScalarGridSpec(
            num_scalar_prefetch=0,
            grid=(N // NB,),
            in_specs=[
                pl.BlockSpec((1, 1, S), lambda n: (n, 0, 0)),      # x (padded-flat)
                pl.BlockSpec((1, S), lambda n: (0, 0)),            # interior mask
                pl.BlockSpec((DIM, 1), lambda n: (0, 0)),          # w1
                pl.BlockSpec((DIM, 1), lambda n: (0, 0)),          # b1
                pl.BlockSpec((D2, 9 * DIM), lambda n: (0, 0)),     # w2 packed
                pl.BlockSpec((D2, 1), lambda n: (0, 0)),           # b2
                pl.BlockSpec((9, D2), lambda n: (0, 0)),           # w3 packed
                pl.BlockSpec((1, 1), lambda n: (0, 0)),            # b3
            ],
            out_specs=pl.BlockSpec((1, 1, S), lambda n: (n, 0, 0)),
        ),
        compiler_params=pltpu.CompilerParams(
            dimension_semantics=("parallel",)),
    )(xp, mask, w1c, b1c, w2p, b2c, w3p, b3c)

    # Un-pad back to NCHW: (N//NB, 1, NB*spad) -> (N, 1, H, W)
    out = out.reshape(N, spad)[:, :pad_hw].reshape(N, H + 2, W + 2)
    return out[:, 1:H + 1, 1:W + 1][:, None, :, :]


def ref_forward(x_nchw, params):
    """Pure-JAX reference using lax.conv (NHWC / HWIO)."""
    w1, b1, w2, b2, w3, b3 = params
    dn = ("NHWC", "HWIO", "NHWC")
    x = jnp.transpose(x_nchw, (0, 2, 3, 1))
    y = lax.conv_general_dilated(x, jnp.transpose(w1, (2, 3, 1, 0)), (1, 1),
                                 "SAME", dimension_numbers=dn) + b1
    y = jnp.maximum(y, 0.0)
    y = lax.conv_general_dilated(y, jnp.transpose(w2, (2, 3, 1, 0)), (1, 1),
                                 "SAME", dimension_numbers=dn) + b2
    y = jnp.maximum(y, 0.0)
    y = lax.conv_general_dilated(y, jnp.transpose(w3, (2, 3, 1, 0)), (1, 1),
                                 "SAME", dimension_numbers=dn) + b3
    y = jax.nn.sigmoid(y)
    return jnp.transpose(y, (0, 3, 1, 2))


def init_params(key):
    """Parameters in PyTorch Conv2d layouts: weight (O, I, kH, kW), bias (O,)."""
    k1, k2, k3, k4, k5, k6 = jax.random.split(key, 6)
    w1 = jax.random.normal(k1, (DIM, 1, 1, 1), jnp.float32)
    b1 = jax.random.normal(k2, (DIM,), jnp.float32) * 0.1
    w2 = jax.random.normal(k3, (D2, DIM, 3, 3), jnp.float32) * (1.0 / (9 * DIM) ** 0.5)
    b2 = jax.random.normal(k4, (D2,), jnp.float32) * 0.1
    w3 = jax.random.normal(k5, (1, D2, 3, 3), jnp.float32) * (1.0 / (9 * D2) ** 0.5)
    b3 = jax.random.normal(k6, (1,), jnp.float32) * 0.1
    return (w1, b1, w2, b2, w3, b3)


if __name__ == "__main__":
    key = jax.random.PRNGKey(0)
    pkey, xkey = jax.random.split(key)
    params = init_params(pkey)

    N, C, H, W = 2, 1, 16, 16
    x = jax.random.normal(xkey, (N, C, H, W), jnp.float32)

    out = jax.block_until_ready(jax.jit(net_forward)(x, params))
    ref = jax.block_until_ready(ref_forward(x, params))

    assert out.shape == (N, 1, H, W), out.shape
    max_err = float(jnp.max(jnp.abs(out - ref)))
    # f32 matmuls are exact vs the reference; tolerance only covers the
    # approximate EUP reciprocal in the sigmoid epilogue.
    assert max_err < 1e-2, max_err

    print("KERNEL_OK")
</pallas_src>

<mosaic_0001>
module attributes {stable_mosaic.version = 11 : i64} {
  func.func @net_kernel(%arg0: i32, %arg1: memref<1x1x384xf32, #tpu.memory_space<vmem>>, %arg2: memref<1x384xf32, #tpu.memory_space<vmem>>, %arg3: memref<64x1xf32, #tpu.memory_space<vmem>>, %arg4: memref<64x1xf32, #tpu.memory_space<vmem>>, %arg5: memref<128x576xf32, #tpu.memory_space<vmem>>, %arg6: memref<128x1xf32, #tpu.memory_space<vmem>>, %arg7: memref<9x128xf32, #tpu.memory_space<vmem>>, %arg8: memref<1x1xf32, #tpu.memory_space<vmem>>, %arg9: memref<1x1x384xf32, #tpu.memory_space<vmem>>) attributes {dimension_semantics = [#tpu.dimension_semantics<parallel>], iteration_bounds = array<i64: 2>, scalar_prefetch = 0 : i64, scratch_operands = 0 : i64, tpu.core_type = #tpu.core_type<tc>, window_params = [{transform_indices = @transform_0, window_bounds = array<i64: 1, 1, 384>}, {pipeline_mode = #tpu.pipeline_mode<synchronous>, transform_indices = @transform_1, window_bounds = array<i64: 1, 384>}, {pipeline_mode = #tpu.pipeline_mode<synchronous>, transform_indices = @transform_2, window_bounds = array<i64: 64, 1>}, {pipeline_mode = #tpu.pipeline_mode<synchronous>, transform_indices = @transform_3, window_bounds = array<i64: 64, 1>}, {pipeline_mode = #tpu.pipeline_mode<synchronous>, transform_indices = @transform_4, window_bounds = array<i64: 128, 576>}, {pipeline_mode = #tpu.pipeline_mode<synchronous>, transform_indices = @transform_5, window_bounds = array<i64: 128, 1>}, {pipeline_mode = #tpu.pipeline_mode<synchronous>, transform_indices = @transform_6, window_bounds = array<i64: 9, 128>}, {pipeline_mode = #tpu.pipeline_mode<synchronous>, transform_indices = @transform_7, window_bounds = array<i64: 1, 1>}, {transform_indices = @transform_8, window_bounds = array<i64: 1, 1, 384>}]} {
    %c0 = arith.constant 0 : index
    %c0_0 = arith.constant 0 : index
    %c0_1 = arith.constant 0 : index
    %0 = vector.load %arg1[%c0, %c0_0, %c0_1] : memref<1x1x384xf32, #tpu.memory_space<vmem>>, vector<1x1x384xf32>
    %1 = vector.shape_cast %0 : vector<1x1x384xf32> to vector<1x384xf32>
    %c0_2 = arith.constant 0 : index
    %c0_3 = arith.constant 0 : index
    %2 = vector.load %arg2[%c0_2, %c0_3] : memref<1x384xf32, #tpu.memory_space<vmem>>, vector<1x384xf32>
    %c0_4 = arith.constant 0 : index
    %c0_5 = arith.constant 0 : index
    %3 = vector.load %arg3[%c0_4, %c0_5] : memref<64x1xf32, #tpu.memory_space<vmem>>, vector<64x1xf32>
    %4 = vector.broadcast %3 : vector<64x1xf32> to vector<64x384xf32>
    %5 = vector.broadcast %1 : vector<1x384xf32> to vector<64x384xf32>
    %6 = arith.mulf %4, %5 : vector<64x384xf32>
    %c0_6 = arith.constant 0 : index
    %c0_7 = arith.constant 0 : index
    %7 = vector.load %arg4[%c0_6, %c0_7] : memref<64x1xf32, #tpu.memory_space<vmem>>, vector<64x1xf32>
    %8 = vector.broadcast %7 : vector<64x1xf32> to vector<64x384xf32>
    %9 = arith.addf %6, %8 : vector<64x384xf32>
    %cst = arith.constant 0.000000e+00 : f32
    %10 = vector.broadcast %cst : f32 to vector<64x384xf32>
    %11 = arith.maximumf %9, %10 : vector<64x384xf32>
    %12 = vector.broadcast %2 : vector<1x384xf32> to vector<64x384xf32>
    %13 = arith.mulf %11, %12 : vector<64x384xf32>
    %cst_8 = arith.constant 0.000000e+00 : f32
    %14 = vector.broadcast %cst_8 : f32 to vector<64x19xf32>
    %15 = tpu.concatenate %14, %13, %14 in 1 : vector<64x19xf32>, vector<64x384xf32>, vector<64x19xf32> -> vector<64x422xf32>
    %16 = vector.extract_strided_slice %15 {offsets = [0, 0], sizes = [64, 384], strides = [1, 1]} : vector<64x422xf32> to vector<64x384xf32>
    %17 = vector.extract_strided_slice %15 {offsets = [0, 1], sizes = [64, 384], strides = [1, 1]} : vector<64x422xf32> to vector<64x384xf32>
    %18 = vector.extract_strided_slice %15 {offsets = [0, 2], sizes = [64, 384], strides = [1, 1]} : vector<64x422xf32> to vector<64x384xf32>
    %19 = vector.extract_strided_slice %15 {offsets = [0, 18], sizes = [64, 384], strides = [1, 1]} : vector<64x422xf32> to vector<64x384xf32>
    %20 = vector.extract_strided_slice %15 {offsets = [0, 19], sizes = [64, 384], strides = [1, 1]} : vector<64x422xf32> to vector<64x384xf32>
    %21 = vector.extract_strided_slice %15 {offsets = [0, 20], sizes = [64, 384], strides = [1, 1]} : vector<64x422xf32> to vector<64x384xf32>
    %22 = vector.extract_strided_slice %15 {offsets = [0, 36], sizes = [64, 384], strides = [1, 1]} : vector<64x422xf32> to vector<64x384xf32>
    %23 = vector.extract_strided_slice %15 {offsets = [0, 37], sizes = [64, 384], strides = [1, 1]} : vector<64x422xf32> to vector<64x384xf32>
    %24 = vector.extract_strided_slice %15 {offsets = [0, 38], sizes = [64, 384], strides = [1, 1]} : vector<64x422xf32> to vector<64x384xf32>
    %25 = tpu.concatenate %16, %17, %18, %19, %20, %21, %22, %23, %24 in 0 : vector<64x384xf32>, vector<64x384xf32>, vector<64x384xf32>, vector<64x384xf32>, vector<64x384xf32>, vector<64x384xf32>, vector<64x384xf32>, vector<64x384xf32>, vector<64x384xf32> -> vector<576x384xf32>
    %c0_9 = arith.constant 0 : index
    %c0_10 = arith.constant 0 : index
    %26 = vector.load %arg5[%c0_9, %c0_10] : memref<128x576xf32, #tpu.memory_space<vmem>>, vector<128x576xf32>
    %cst_11 = arith.constant dense<0.000000e+00> : vector<128x384xf32>
    %27 = tpu.matmul %26, %25, %cst_11 {dimension_numbers = #tpu.dot_dimension_numbers<[1], [0], [0], [1], [0, 0, 1, 1], [], []>} : vector<128x576xf32>, vector<576x384xf32>, vector<128x384xf32> -> vector<128x384xf32>
    %c0_12 = arith.constant 0 : index
    %c0_13 = arith.constant 0 : index
    %28 = vector.load %arg6[%c0_12, %c0_13] : memref<128x1xf32, #tpu.memory_space<vmem>>, vector<128x1xf32>
    %29 = vector.broadcast %28 : vector<128x1xf32> to vector<128x384xf32>
    %30 = arith.addf %27, %29 : vector<128x384xf32>
    %cst_14 = arith.constant 0.000000e+00 : f32
    %31 = vector.broadcast %cst_14 : f32 to vector<128x384xf32>
    %32 = arith.maximumf %30, %31 : vector<128x384xf32>
    %33 = vector.broadcast %2 : vector<1x384xf32> to vector<128x384xf32>
    %34 = arith.mulf %32, %33 : vector<128x384xf32>
    %c0_15 = arith.constant 0 : index
    %c0_16 = arith.constant 0 : index
    %35 = vector.load %arg7[%c0_15, %c0_16] : memref<9x128xf32, #tpu.memory_space<vmem>>, vector<9x128xf32>
    %cst_17 = arith.constant dense<0.000000e+00> : vector<9x384xf32>
    %36 = tpu.matmul %35, %34, %cst_17 {dimension_numbers = #tpu.dot_dimension_numbers<[1], [0], [0], [1], [0, 0, 1, 1], [], []>} : vector<9x128xf32>, vector<128x384xf32>, vector<9x384xf32> -> vector<9x384xf32>
    %cst_18 = arith.constant 0.000000e+00 : f32
    %37 = vector.broadcast %cst_18 : f32 to vector<9x19xf32>
    %38 = tpu.concatenate %37, %36, %37 in 1 : vector<9x19xf32>, vector<9x384xf32>, vector<9x19xf32> -> vector<9x422xf32>
    %39 = vector.extract_strided_slice %38 {offsets = [0, 0], sizes = [1, 384], strides = [1, 1]} : vector<9x422xf32> to vector<1x384xf32>
    %40 = vector.extract_strided_slice %38 {offsets = [1, 1], sizes = [1, 384], strides = [1, 1]} : vector<9x422xf32> to vector<1x384xf32>
    %41 = arith.addf %39, %40 : vector<1x384xf32>
    %42 = vector.extract_strided_slice %38 {offsets = [2, 2], sizes = [1, 384], strides = [1, 1]} : vector<9x422xf32> to vector<1x384xf32>
    %43 = arith.addf %41, %42 : vector<1x384xf32>
    %44 = vector.extract_strided_slice %38 {offsets = [3, 18], sizes = [1, 384], strides = [1, 1]} : vector<9x422xf32> to vector<1x384xf32>
    %45 = arith.addf %43, %44 : vector<1x384xf32>
    %46 = vector.extract_strided_slice %38 {offsets = [4, 19], sizes = [1, 384], strides = [1, 1]} : vector<9x422xf32> to vector<1x384xf32>
    %47 = arith.addf %45, %46 : vector<1x384xf32>
    %48 = vector.extract_strided_slice %38 {offsets = [5, 20], sizes = [1, 384], strides = [1, 1]} : vector<9x422xf32> to vector<1x384xf32>
    %49 = arith.addf %47, %48 : vector<1x384xf32>
    %50 = vector.extract_strided_slice %38 {offsets = [6, 36], sizes = [1, 384], strides = [1, 1]} : vector<9x422xf32> to vector<1x384xf32>
    %51 = arith.addf %49, %50 : vector<1x384xf32>
    %52 = vector.extract_strided_slice %38 {offsets = [7, 37], sizes = [1, 384], strides = [1, 1]} : vector<9x422xf32> to vector<1x384xf32>
    %53 = arith.addf %51, %52 : vector<1x384xf32>
    %54 = vector.extract_strided_slice %38 {offsets = [8, 38], sizes = [1, 384], strides = [1, 1]} : vector<9x422xf32> to vector<1x384xf32>
    %55 = arith.addf %53, %54 : vector<1x384xf32>
    %c0_19 = arith.constant 0 : index
    %c0_20 = arith.constant 0 : index
    %56 = vector.load %arg8[%c0_19, %c0_20] : memref<1x1xf32, #tpu.memory_space<vmem>>, vector<1x1xf32>
    %57 = vector.broadcast %56 : vector<1x1xf32> to vector<1x384xf32>
    %58 = arith.addf %55, %57 : vector<1x384xf32>
    %59 = arith.mulf %58, %2 : vector<1x384xf32>
    %cst_21 = arith.constant 0.000000e+00 : f32
    %60 = vector.broadcast %cst_21 : f32 to vector<1x384xf32>
    %61 = arith.subf %60, %59 : vector<1x384xf32>
    %62 = math.exp %61 : vector<1x384xf32>
    %cst_22 = arith.constant 1.000000e+00 : f32
    %63 = vector.broadcast %cst_22 : f32 to vector<1x384xf32>
    %64 = arith.addf %63, %62 : vector<1x384xf32>
    %65 = tpu.reciprocal %64 {approx = true} : vector<1x384xf32> -> vector<1x384xf32>
    %c0_23 = arith.constant 0 : index
    %c0_24 = arith.constant 0 : index
    %c0_25 = arith.constant 0 : index
    %66 = vector.load %arg9[%c0_23, %c0_24, %c0_25] : memref<1x1x384xf32, #tpu.memory_space<vmem>>, vector<1x1x384xf32>
    %67 = vector.shape_cast %66 : vector<1x1x384xf32> to vector<1x384xf32>
    %68 = vector.shape_cast %65 : vector<1x384xf32> to vector<1x1x384xf32>
    tpu.vector_store %arg9[%c0_23, %c0_24, %c0_25], %68 {strides = array<i32>} : memref<1x1x384xf32, #tpu.memory_space<vmem>>, vector<1x1x384xf32>,
    return
  }
  func.func @transform_0(%arg0: i32) -> (i32, i32, i32) {
    %c0_i32 = arith.constant 0 : i32
    %c0_i32_0 = arith.constant 0 : i32
    %c0_i32_1 = arith.constant 0 : i32
    return %arg0, %c0_i32, %c0_i32_0 : i32, i32, i32
  }
  func.func @transform_1(%arg0: i32) -> (i32, i32) {
    %c0_i32 = arith.constant 0 : i32
    %c0_i32_0 = arith.constant 0 : i32
    %c0_i32_1 = arith.constant 0 : i32
    return %c0_i32, %c0_i32_0 : i32, i32
  }
  func.func @transform_2(%arg0: i32) -> (i32, i32) {
    %c0_i32 = arith.constant 0 : i32
    %c0_i32_0 = arith.constant 0 : i32
    %c0_i32_1 = arith.constant 0 : i32
    return %c0_i32, %c0_i32_0 : i32, i32
  }
  func.func @transform_3(%arg0: i32) -> (i32, i32) {
    %c0_i32 = arith.constant 0 : i32
    %c0_i32_0 = arith.constant 0 : i32
    %c0_i32_1 = arith.constant 0 : i32
    return %c0_i32, %c0_i32_0 : i32, i32
  }
  func.func @transform_4(%arg0: i32) -> (i32, i32) {
    %c0_i32 = arith.constant 0 : i32
    %c0_i32_0 = arith.constant 0 : i32
    %c0_i32_1 = arith.constant 0 : i32
    return %c0_i32, %c0_i32_0 : i32, i32
  }
  func.func @transform_5(%arg0: i32) -> (i32, i32) {
    %c0_i32 = arith.constant 0 : i32
    %c0_i32_0 = arith.constant 0 : i32
    %c0_i32_1 = arith.constant 0 : i32
    return %c0_i32, %c0_i32_0 : i32, i32
  }
  func.func @transform_6(%arg0: i32) -> (i32, i32) {
    %c0_i32 = arith.constant 0 : i32
    %c0_i32_0 = arith.constant 0 : i32
    %c0_i32_1 = arith.constant 0 : i32
    return %c0_i32, %c0_i32_0 : i32, i32
  }
  func.func @transform_7(%arg0: i32) -> (i32, i32) {
    %c0_i32 = arith.constant 0 : i32
    %c0_i32_0 = arith.constant 0 : i32
    %c0_i32_1 = arith.constant 0 : i32
    return %c0_i32, %c0_i32_0 : i32, i32
  }
  func.func @transform_8(%arg0: i32) -> (i32, i32, i32) {
    %c0_i32 = arith.constant 0 : i32
    %c0_i32_0 = arith.constant 0 : i32
    %c0_i32_1 = arith.constant 0 : i32
    return %arg0, %c0_i32, %c0_i32_0 : i32, i32, i32
  }
}

</mosaic_0001>

<bundles_post_ra>
// kernel: tile.1
= control target key start
LH: loop header
LB: loop body
LE: loop exit
PB: predicated region body
PF: predicated region fallthrough
CT: control target
= control target key end

     0   :  { %s46_s0 = inlined_call_operand.vmem [shape: f32[384], index: 0, kind: input, shape index: {}]   ;;  %s47_s1 = inlined_call_operand.vmem [shape: f32[1,384], index: 1, kind: output, shape index: {}]  }
   0x1   :  { %v4_v0 = vld [vmem:[%s46_s0] ss:$0 sm:$0xff]  ;;  %v14_v1 = vld [vmem:[%s46_s0 + $0x1] ss:$0 sm:$0xff]  ;;  %v16_v2 = vld [vmem:[%s46_s0 + $0x2] ss:$0 sm:$0xff] }
   0x2   :  { %5 = vst [vmem:[%s47_s1] sm:$0x1] %v4_v0  ;;  %15 = vst [vmem:[%s47_s1 + $0x1] sm:$0x1] %v14_v1 }
   0x3   :  { %17 = vst [vmem:[%s47_s1 + $0x2] sm:$0x1] %v16_v2 }

// kernel: net_forward.1
= control target key start
LH: loop header
LB: loop body
LE: loop exit
PB: predicated region body
PF: predicated region fallthrough
CT: control target
= control target key end

     0   :  { %s4827_s29 = smov 0   ;;  %s6920_s0 = inlined_call_operand.vmem [shape: f32[2,1,384], index: 0, kind: input, shape index: {}]   ;;  %s6921_s1 = inlined_call_operand.vmem [shape: f32[1,384], index: 1, kind: input, shape index: {}]   ;;  %s6922_s2 = inlined_call_operand.vmem [shape: f32[64,1], index: 2, kind: input, shape index: {}]   ;;  %s6923_s3 = inlined_call_operand.vmem [shape: f32[64,1], index: 3, kind: input, shape index: {}]   ;;  %s6924_s4 = inlined_call_operand.vmem [shape: f32[128,576], index: 4, kind: input, shape index: {}]   ;;  %s6925_s5 = inlined_call_operand.vmem [shape: f32[128,1], index: 5, kind: input, shape index: {}]   ;;  %s6926_s6 = inlined_call_operand.vmem [shape: f32[9,128], index: 6, kind: input, shape index: {}]   ;;  %s6927_s7 = inlined_call_operand.<no memory space> [shape: f32[1,1], index: 7, kind: input, shape index: {}]   ;;  %s6928_s8 = inlined_call_operand.vmem [shape: f32[2,1,384], index: 8, kind: output, shape index: {}]  }
   0x1   :  { %v13_v0 = vstv %s6927_s7 }
   0x2   :  { %14 = vst [vmem:[#allocation2] sm:$0x1] %v13_v0 }
   0x3 LB: > { %s3295_s30 = sadd.s32 4294967295, %s4765_s29   ;;  %p3299_p0 = scmp.ge.s32.totalorder %s4765_s29, 1  ;;  %s4765_s29 = sphi %s4827_s29, %s20_s29  }
   0x4   : > { %p263_p1 = scmp.lt.s32.totalorder %s4765_s29, 3 }
   0x6   : > { %p264_p2 = pnand %p3299_p0, %p263_p1 }
   0x8   : > { %267 = sbr.rel (%p264_p2) target bundleno = 1505 (0x5e1), region = 52 }
   0xf   : > { %v393_v1 = vld [vmem:[%s6923_s3] sm:$0xff]  ;;  %v4767_v3 = vmov 0   ;;  %v394_v4 = vld [vmem:[%s6923_s3 + $0x8] sm:$0xff]  ;;  %v308_v6 = vld [vmem:[%s6922_s2 + $0x18] sm:$0xff]  ;;  %p295_p3 = scmp.lt.s32.totalorder %s3295_s30, 1  ;;  %v6929_v18 = vlaneseq  ;;  %s4768_s25 = smov 19  }
  0x10   : > { %v305_v2 = vld [vmem:[%s6922_s2] sm:$0xff]  ;;  %4037 = vset.pattern.permute.xlu1 %v4767_v3  ;;  %4036 = vset.pattern.permute.xlu0 %v4767_v3  ;;  %v306_v5 = vld [vmem:[%s6922_s2 + $0x8] sm:$0xff]  ;;  %v307_v7 = vld [vmem:[%s6922_s2 + $0x10] sm:$0xff]  ;;  %vm601_vm0 = vcmask 154624   ;;  %s4769_s26 = smov 127   ;;  %s4770_s27 = smov 126  }
  0x11   : > { %403 = vperm.xlu1 %4037, %v393_v1   ;;  %315 = vperm.xlu0 %4036, %v305_v2   ;;  %v396_v8 = vld [vmem:[%s6923_s3 + $0x18] sm:$0xff]  ;;  %v395_v9 = vld [vmem:[%s6923_s3 + $0x10] sm:$0xff]  ;;  %v310_v10 = vld [vmem:[%s6922_s2 + $0x28] sm:$0xff]  ;;  %s7127_s30 = smov (!%p295_p3, %s3295_s30), 1  ;;  %v4891_v19 = vshrl.u32 %v6929_v18, 7  ;;  %s4771_s28 = smov 110  }
  0x12   : > { %v309_v11 = vld [vmem:[%s6922_s2 + $0x20] sm:$0xff]  ;;  %v398_v12 = vld [vmem:[%s6923_s3 + $0x28] sm:$0xff]  ;;  %v312_v14 = vld [vmem:[%s6922_s2 + $0x38] sm:$0xff]  ;;  %s4015_s19 = smul.u32 3, %s7127_s30  ;;  %s4772_s7 = smov 109   ;;  %vm746_vm3 = vcmask 1039360  }
  0x13   : > { %v397_v13 = vld [vmem:[%s6923_s3 + $0x20] sm:$0xff]  ;;  %v311_v15 = vld [vmem:[%s6922_s2 + $0x30] sm:$0xff]  ;;  %v400_v16 = vld [vmem:[%s6923_s3 + $0x38] sm:$0xff]  ;;  %7006 = vst [vmem:[#allocation3_spill] sm:$0xff] %v4891_v19  ;;  %v4899_v20 = vsub.s32 0, %v4891_v19  ;;  %v360_v21 = vsub.s32 1, %v4891_v19 }
  0x14   : > { %v399_v17 = vld [vmem:[%s6923_s3 + $0x30] sm:$0xff]  ;;  %s298_s22 = scalar_lea.vmem %s6920_s0, %s4015_s19  ;;  %v364_v22 = vsub.s32 2, %v4891_v19  ;;  %v304_v29 = vld [vmem:[%s6921_s1] sm:$0x7]  ;;  %vm3300_vm1 = vmneg %vm601_vm0  ;;  %s4773_s11 = smov 108   ;;  %vm859_vm4 = vcmask 1031168  }
  0x15   : > { %408 = vperm.xlu1 %4037, %v394_v4   ;;  %320 = vperm.xlu0 %4036, %v306_v5   ;;  %7007 = vst [vmem:[#allocation4_spill] sm:$0xff] %v4899_v20  ;;  %v303_v23 = vld [vmem:[%s298_s22] sm:$0x7]  ;;  %v4917_v36 = vrot.slane %v304_v29, %v4899_v20  ;;  %v4919_v37 = vrot.slane %v304_v29, %v360_v21  ;;  %vm5003_vm2 = vmpackc.low %vm3300_vm1, %vm3300_vm1  ;;  %s4774_s12 = smov 92   ;;  %s4775_s13 = smov 91   ;;  %vm972_vm5 = vcmask 900096  }
  0x16   : > { %v4904_v24 = vrot.slane %v303_v23, %v4899_v20  ;;  %v4906_v25 = vrot.slane %v303_v23, %v360_v21  ;;  %v4908_v26 = vrot.slane %v303_v23, %v364_v22  ;;  %v4924_v44 = vrot.slane %v304_v29, %v364_v22  ;;  %s4776_s23 = smov 90  }
  0x17   : > { %7008 = vst [vmem:[#allocation5_spill] sm:$0xff] %v4917_v36  ;;  %7009 = vst [vmem:[#allocation6_spill] sm:$0xff] %v4919_v37  ;;  %vm1085_vm6 = vcmask 891904   ;;  %vm1198_vm7 = vcmask 883712   ;;  %vm1311_vm8 = vcmask 752640   ;;  %vm1424_vm9 = vcmask 744448  }
  0x18   : > { %7010 = vst [vmem:[#allocation7_spill] sm:$0xff] %v4924_v44  ;;  %vm1537_vm10 = vcmask 736256   ;;  %vm1762_vm11 = vcmask 523264  }
  0x19   : > { %330 = vperm.xlu1 %4037, %v308_v6   ;;  %325 = vperm.xlu0 %4036, %v307_v7  }
  0x1d   : > { %418 = vperm.xlu1 %4037, %v396_v8   ;;  %413 = vperm.xlu0 %4036, %v395_v9  }
  0x21   : > { %340 = vperm.xlu1 %4037, %v310_v10   ;;  %335 = vperm.xlu0 %4036, %v309_v11  }
  0x25   : > { %428 = vperm.xlu1 %4037, %v398_v12   ;;  %423 = vperm.xlu0 %4036, %v397_v13  }
  0x29   : > { %350 = vperm.xlu1 %4037, %v312_v14   ;;  %345 = vperm.xlu0 %4036, %v311_v15  }
  0x2d   : > { %438 = vperm.xlu1 %4037, %v400_v16   ;;  %433 = vperm.xlu0 %4036, %v399_v17  }
  0x90   : > { %v404_v27 = vpop.permute.xlu1 %403  ;;  %v316_v28 = vpop.permute.xlu0 %315 }
  0x91   : > { %v369_v30 = vmul.f32 %v4904_v24, %v316_v28  ;;  %v370_v31 = vmul.f32 %v4906_v25, %v316_v28  ;;  %v371_v32 = vmul.f32 %v4908_v26, %v316_v28 }
  0x93   : > { %v441_v33 = vadd.f32 %v404_v27, %v369_v30  ;;  %v442_v34 = vadd.f32 %v404_v27, %v370_v31  ;;  %v443_v35 = vadd.f32 %v404_v27, %v371_v32 }
  0x94   : > { %v409_v38 = vpop.permute.xlu1 %408  ;;  %v321_v39 = vpop.permute.xlu0 %320 }
  0x95   : > { %v372_v40 = vmul.f32 %v4904_v24, %v321_v39  ;;  %v373_v41 = vmul.f32 %v4906_v25, %v321_v39  ;;  %v374_v42 = vmul.f32 %v4908_v26, %v321_v39  ;;  %v465_v43 = vmax.f32 %v441_v33, 0.0 }
  0x96   : > { %v466_v45 = vmax.f32 %v442_v34, 0.0  ;;  %v467_v46 = vmax.f32 %v443_v35, 0.0 }
  0x97   : > { %v444_v47 = vadd.f32 %v409_v38, %v372_v40  ;;  %v445_v48 = vadd.f32 %v409_v38, %v373_v41  ;;  %v505_v49 = vmul.f32 %v4917_v36, %v465_v43  ;;  %v446_v50 = vadd.f32 %v409_v38, %v374_v42 }
  0x98   : > { %v331_v51 = vpop.permute.xlu1 %330  ;;  %v326_v52 = vpop.permute.xlu0 %325  ;;  %v506_v53 = vmul.f32 %v4919_v37, %v466_v45  ;;  %v507_v57 = vmul.f32 %v4924_v44, %v467_v46 }
  0x99   : > { %v378_v54 = vmul.f32 %v4904_v24, %v331_v51  ;;  %v468_v56 = vmax.f32 %v444_v47, 0.0  ;;  %v379_v58 = vmul.f32 %v4906_v25, %v331_v51  ;;  %v380_v59 = vmul.f32 %v4908_v26, %v331_v51 }
  0x9a   : > { %v4038_v55 = vpack.i.bf16 %v506_v53, %v505_v49  ;;  %v375_v60 = vmul.f32 %v4904_v24, %v326_v52  ;;  %v469_v61 = vmax.f32 %v445_v48, 0.0  ;;  %v376_v62 = vmul.f32 %v4906_v25, %v326_v52 }
  0x9b   : > { %v377_v63 = vmul.f32 %v4908_v26, %v326_v52  ;;  %v508_v2 = vmul.f32 %v4917_v36, %v468_v56  ;;  %v470_v3 = vmax.f32 %v446_v50, 0.0 }
  0x9c   : > { %4039 = vrot.lane.b32.xlu0 %v4038_v55, %s4768_s25  ;;  %v419_v0 = vpop.permute.xlu1 %418  ;;  %v414_v1 = vpop.permute.xlu0 %413  ;;  %v509_v11 = vmul.f32 %v4919_v37, %v469_v61 }
  0x9d   : > { %v450_v4 = vadd.f32 %v419_v0, %v378_v54  ;;  %v451_v5 = vadd.f32 %v419_v0, %v379_v58  ;;  %v452_v6 = vadd.f32 %v419_v0, %v380_v59  ;;  %v447_v7 = vadd.f32 %v414_v1, %v375_v60 }
  0x9e   : > { %v448_v8 = vadd.f32 %v414_v1, %v376_v62  ;;  %v449_v9 = vadd.f32 %v414_v1, %v377_v63  ;;  %v4043_v10 = vpack.i.bf16 %v508_v2, %v507_v57  ;;  %v510_v21 = vmul.f32 %v4924_v44, %v470_v3 }
  0x9f   : > { %v474_v12 = vmax.f32 %v450_v4, 0.0  ;;  %v475_v13 = vmax.f32 %v451_v5, 0.0  ;;  %v471_v14 = vmax.f32 %v447_v7, 0.0  ;;  %v476_v15 = vmax.f32 %v452_v6, 0.0 }
  0xa0   : > { %v472_v16 = vmax.f32 %v448_v8, 0.0  ;;  %v473_v17 = vmax.f32 %v449_v9, 0.0  ;;  %4044 = vrot.lane.b32.xlu1 %v4043_v10, %s4768_s25  ;;  %v341_v22 = vpop.permute.xlu1 %340  ;;  %v336_v23 = vpop.permute.xlu0 %335  ;;  %v4048_v28 = vpack.i.bf16 %v510_v21, %v509_v11 }
  0xa1   : > { %v384_v27 = vmul.f32 %v4904_v24, %v341_v22  ;;  %v385_v29 = vmul.f32 %v4906_v25, %v341_v22  ;;  %v386_v30 = vmul.f32 %v4908_v26, %v341_v22  ;;  %v511_v31 = vmul.f32 %v4917_v36, %v471_v14 }
  0xa2   : > { %v381_v32 = vmul.f32 %v4904_v24, %v336_v23  ;;  %v512_v33 = vmul.f32 %v4919_v37, %v472_v16  ;;  %v513_v34 = vmul.f32 %v4924_v44, %v473_v17  ;;  %v514_v35 = vmul.f32 %v4917_v36, %v474_v12  ;;  %4049 = vrot.lane.b32.xlu0 %v4048_v28, %s4768_s25 }
  0xa3   : > { %v382_v38 = vmul.f32 %v4906_v25, %v336_v23  ;;  %v383_v39 = vmul.f32 %v4908_v26, %v336_v23  ;;  %v515_v42 = vmul.f32 %v4919_v37, %v475_v13  ;;  %v516_v43 = vmul.f32 %v4924_v44, %v476_v15 }
  0xa4   : > { %v429_v40 = vpop.permute.xlu1 %428  ;;  %v424_v41 = vpop.permute.xlu0 %423  ;;  %v4053_v51 = vpack.i.bf16 %v512_v33, %v511_v31  ;;  %v4058_v52 = vpack.i.bf16 %v514_v35, %v513_v34 }
  0xa5   : > { %v456_v45 = vadd.f32 %v429_v40, %v384_v27  ;;  %v457_v46 = vadd.f32 %v429_v40, %v385_v29  ;;  %v458_v47 = vadd.f32 %v429_v40, %v386_v30  ;;  %v453_v48 = vadd.f32 %v424_v41, %v381_v32 }
  0xa6   : > { %v454_v49 = vadd.f32 %v424_v41, %v382_v38  ;;  %v455_v50 = vadd.f32 %v424_v41, %v383_v39  ;;  %4054 = vrot.lane.b32.xlu1 %v4053_v51, %s4768_s25  ;;  %4059 = vrot.lane.b32.xlu0 %v4058_v52, %s4768_s25  ;;  %v4063_v61 = vpack.i.bf16 %v516_v43, %v515_v42 }
  0xa7   : > { %v480_v53 = vmax.f32 %v456_v45, 0.0  ;;  %v477_v54 = vmax.f32 %v453_v48, 0.0  ;;  %v481_v55 = vmax.f32 %v457_v46, 0.0  ;;  %v482_v60 = vmax.f32 %v458_v47, 0.0 }
  0xa8   : > { %v478_v56 = vmax.f32 %v454_v49, 0.0  ;;  %v479_v57 = vmax.f32 %v455_v50, 0.0  ;;  %v351_v58 = vpop.permute.xlu1 %350  ;;  %v346_v59 = vpop.permute.xlu0 %345 }
  0xa9   : > { %v390_v62 = vmul.f32 %v4904_v24, %v351_v58  ;;  %v391_v63 = vmul.f32 %v4906_v25, %v351_v58  ;;  %v520_v1 = vmul.f32 %v4917_v36, %v480_v53  ;;  %v392_v2 = vmul.f32 %v4908_v26, %v351_v58 }
  0xaa   : > { %v519_v0 = vmul.f32 %v4924_v44, %v479_v57  ;;  %v387_v3 = vmul.f32 %v4904_v24, %v346_v59  ;;  %v517_v4 = vmul.f32 %v4917_v36, %v477_v54  ;;  %v518_v5 = vmul.f32 %v4919_v37, %v478_v56  ;;  %4064 = vrot.lane.b32.xlu1 %v4063_v61, %s4768_s25 }
  0xab   : > { %v388_v6 = vmul.f32 %v4906_v25, %v346_v59  ;;  %v389_v7 = vmul.f32 %v4908_v26, %v346_v59  ;;  %v521_v11 = vmul.f32 %v4919_v37, %v481_v55  ;;  %v522_v21 = vmul.f32 %v4924_v44, %v482_v60 }
  0xac   : > { %v439_v8 = vpop.permute.xlu1 %438  ;;  %v434_v9 = vpop.permute.xlu0 %433  ;;  %v4073_v10 = vpack.i.bf16 %v520_v1, %v519_v0  ;;  %v4068_v17 = vpack.i.bf16 %v518_v5, %v517_v4 }
  0xad   : > { %v462_v12 = vadd.f32 %v439_v8, %v390_v62  ;;  %v463_v13 = vadd.f32 %v439_v8, %v391_v63  ;;  %v464_v14 = vadd.f32 %v439_v8, %v392_v2  ;;  %v459_v15 = vadd.f32 %v434_v9, %v387_v3 }
  0xae   : > { %v460_v24 = vadd.f32 %v434_v9, %v388_v6  ;;  %v461_v16 = vadd.f32 %v434_v9, %v389_v7  ;;  %4074 = vrot.lane.b32.xlu1 %v4073_v10, %s4768_s25  ;;  %4069 = vrot.lane.b32.xlu0 %v4068_v17, %s4768_s25  ;;  %v4078_v31 = vpack.i.bf16 %v522_v21, %v521_v11 }
  0xaf   : > { %v486_v22 = vmax.f32 %v462_v12, 0.0  ;;  %v483_v25 = vmax.f32 %v459_v15, 0.0  ;;  %v487_v23 = vmax.f32 %v463_v13, 0.0  ;;  %v488_v26 = vmax.f32 %v464_v14, 0.0 }
  0xb0   : > { %v484_v27 = vmax.f32 %v460_v24, 0.0  ;;  %v485_v28 = vmax.f32 %v461_v16, 0.0 }
  0xb1   : > { %v523_v29 = vmul.f32 %v4917_v36, %v483_v25  ;;  %v526_v30 = vmul.f32 %v4917_v36, %v486_v22  ;;  %v527_v38 = vmul.f32 %v4919_v37, %v487_v23  ;;  %v528_v39 = vmul.f32 %v4924_v44, %v488_v26 }
  0xb2   : > { %v524_v32 = vmul.f32 %v4919_v37, %v484_v27  ;;  %v525_v33 = vmul.f32 %v4924_v44, %v485_v28  ;;  %4079 = vrot.lane.b32.xlu0 %v4078_v31, %s4768_s25 }
  0xb3   : > { %v4093_v40 = vpack.i.bf16 %v528_v39, %v527_v38 }
  0xb4   : > { %v4083_v34 = vpack.i.bf16 %v524_v32, %v523_v29  ;;  %v4088_v35 = vpack.i.bf16 %v526_v30, %v525_v33 }
  0xb6   : > { %4084 = vrot.lane.b32.xlu1 %v4083_v34, %s4768_s25  ;;  %4089 = vrot.lane.b32.xlu0 %v4088_v35, %s4768_s25 }
  0xba   : > { %4094 = vrot.lane.b32.xlu1 %v4093_v40, %s4768_s25 }
 0x10e   : > { %v4040_v41 = vpop.permute.xlu0 %4039 }
 0x10f   : > { %v4042_v42 = vunpack.i.h.bf16 %v4040_v41  ;;  %v4041_v43 = vunpack.i.l.bf16 %v4040_v41 }
 0x111   : > { %v602_v48 = vsel %vm601_vm0, %v4041_v43, %v4042_v42  ;;  %v650_v53 = vsel %vm601_vm0, 0.0, %v4041_v43 }
 0x112   : > { %v4045_v45 = vpop.permute.xlu1 %4044 }
 0x113   : > { %v4047_v46 = vunpack.i.h.bf16 %v4045_v45  ;;  %v4046_v47 = vunpack.i.l.bf16 %v4045_v45 }
 0x114   : > { %v4050_v51 = vpop.permute.xlu0 %4049 }
 0x115   : > { %v651_v49 = vsel %vm601_vm0, 0.0, %v4047_v46  ;;  %v4983_v50 = vsel %vm601_vm0, %v4042_v42, %v4046_v47  ;;  %v658_v54 = vsel %vm601_vm0, %v4046_v47, 0.0  ;;  %v4052_v55 = vunpack.i.h.bf16 %v4050_v51 }
 0x116   : > { %v4986_v52 = vpack.i.bf16 %v4983_v50, %v602_v48  ;;  %v4051_v56 = vunpack.i.l.bf16 %v4050_v51  ;;  %v4993_v57 = vpack.i.bf16 %v651_v49, %v650_v53  ;;  %v3629_v1 = vpack.c.bf16 %v4047_v46, %v4041_v43 }
 0x117   : > { %v659_v58 = vsel %vm601_vm0, %v4052_v55, 0.0 }
 0x118   : > { %4099 = vrot.lane.b32.xlu0 %v4986_v52, %s4769_s26  ;;  %v604_v59 = vsel %vm601_vm0, %v4047_v46, %v4051_v56  ;;  %v4998_v60 = vsel %vm601_vm0, %v4051_v56, %v4052_v55  ;;  %v4055_v61 = vpop.permute.xlu1 %4054  ;;  %v4060_v62 = vpop.permute.xlu0 %4059  ;;  %v5009_v7 = vpack.i.bf16 %v659_v58, %v658_v54 }
 0x119   : > { %v5001_v63 = vpack.i.bf16 %v4998_v60, %v604_v59  ;;  %v3627_v0 = vpack.c.bf16 %v604_v59, %v602_v48  ;;  %v4057_v3 = vunpack.i.h.bf16 %v4055_v61  ;;  %v4056_v4 = vunpack.i.l.bf16 %v4055_v61 }
 0x11a   : > { %v4062_v5 = vunpack.i.h.bf16 %v4060_v62  ;;  %v4061_v6 = vunpack.i.l.bf16 %v4060_v62 }
 0x11b   : > { %4104 = vrot.lane.b32.xlu1 %v5001_v63, %s4769_s26  ;;  %3628 = vmatprep.subr.bf16.mxu0 %v3627_v0  ;;  %v606_v8 = vsel %vm601_vm0, %v4056_v4, %v4057_v3  ;;  %v652_v9 = vsel %vm601_vm0, 0.0, %v4056_v4 }
 0x11c   : > { %v653_v10 = vsel %vm601_vm0, 0.0, %v4062_v5  ;;  %v5015_v11 = vsel %vm601_vm0, %v4057_v3, %v4061_v6  ;;  %3631 = vmatpush1.bf16.msk.msra.mxu0 %vm5003_vm2, %v3629_v1  ;;  %4109 = vrot.lane.b32.xlu0 %v4993_v57, %s4769_s26  ;;  %v4065_v12 = vpop.permute.xlu1 %4064  ;;  %v3634_v26 = vpack.c.bf16 %v4062_v5, %v4056_v4  ;;  %v660_v56 = vsel %vm601_vm0, %v4061_v6, 0.0 }
 0x11d   : > { %v5022_v13 = vpack.i.bf16 %v5015_v11, %v606_v8  ;;  %v4067_v14 = vunpack.i.h.bf16 %v4065_v12  ;;  %v4066_v15 = vunpack.i.l.bf16 %v4065_v12  ;;  %v5026_v24 = vpack.i.bf16 %v653_v10, %v652_v9 }
 0x11f   : > { %4114 = vrot.lane.b32.xlu1 %v5022_v13, %s4769_s26  ;;  %v608_v16 = vsel %vm601_vm0, %v4062_v5, %v4066_v15  ;;  %v5030_v17 = vsel %vm601_vm0, %v4066_v15, %v4067_v14  ;;  %v661_v61 = vsel %vm601_vm0, %v4067_v14, 0.0 }
 0x120   : > { %v4075_v21 = vpop.permute.xlu1 %4074  ;;  %v4070_v22 = vpop.permute.xlu0 %4069  ;;  %v5033_v25 = vpack.i.bf16 %v5030_v17, %v608_v16  ;;  %v3632_v23 = vpack.c.bf16 %v608_v16, %v606_v8 }
 0x121   : > { %v4077_v27 = vunpack.i.h.bf16 %v4075_v21  ;;  %v4076_v28 = vunpack.i.l.bf16 %v4075_v21  ;;  %v4072_v29 = vunpack.i.h.bf16 %v4070_v22  ;;  %v4071_v30 = vunpack.i.l.bf16 %v4070_v22 }
 0x122   : > { %4119 = vrot.lane.b32.xlu0 %v5033_v25, %s4769_s26  ;;  %3633 = vmatprep.subr.bf16.mxu0 %v3632_v23  ;;  %v5099_v23 = vpack.i.bf16 %v661_v61, %v660_v56 }
 0x123   : > { %4124 = vrot.lane.b32.xlu1 %v5026_v24, %s4769_s26  ;;  %v655_v31 = vsel %vm601_vm0, 0.0, %v4077_v27  ;;  %v5041_v32 = vsel %vm601_vm0, %v4072_v29, %v4076_v28  ;;  %v610_v33 = vsel %vm601_vm0, %v4071_v30, %v4072_v29  ;;  %v654_v34 = vsel %vm601_vm0, 0.0, %v4071_v30  ;;  %3636 = vmatpush1.bf16.msk.msra.mxu0 %vm5003_vm2, %v3634_v26 }
 0x124   : > { %v4080_v35 = vpop.permute.xlu0 %4079  ;;  %v5048_v38 = vpack.i.bf16 %v5041_v32, %v610_v33  ;;  %v5052_v42 = vpack.i.bf16 %v655_v31, %v654_v34  ;;  %v3639_v55 = vpack.c.bf16 %v4077_v27, %v4071_v30  ;;  %v662_v6 = vsel %vm601_vm0, %v4076_v28, 0.0  ;;  %v1587_v31 = vld [vmem:[%s6924_s4 + $0x8] sm:$0xff] }
 0x125   : > { %v4082_v39 = vunpack.i.h.bf16 %v4080_v35  ;;  %v4081_v40 = vunpack.i.l.bf16 %v4080_v35  ;;  %1875 = vmatprep.mubr.f32.mxu0 %v1587_v31  ;;  %2358 = vmatprep.mubr.f32.mxu1 %v1587_v31 }
 0x126   : > { %4129 = vrot.lane.b32.xlu0 %v5048_v38, %s4769_s26 }
 0x127   : > { %v612_v43 = vsel %vm601_vm0, %v4077_v27, %v4081_v40  ;;  %v5056_v45 = vsel %vm601_vm0, %v4081_v40, %v4082_v39  ;;  %v663_v8 = vsel %vm601_vm0, %v4082_v39, 0.0 }
 0x128   : > { %v4085_v41 = vpop.permute.xlu1 %4084  ;;  %v4090_v48 = vpop.permute.xlu0 %4089  ;;  %v5059_v49 = vpack.i.bf16 %v5056_v45, %v612_v43  ;;  %v3637_v51 = vpack.c.bf16 %v612_v43, %v610_v33  ;;  %v5101_v26 = vpack.i.bf16 %v663_v8, %v662_v6 }
 0x129   : > { %v4087_v46 = vunpack.i.h.bf16 %v4085_v41  ;;  %v4086_v47 = vunpack.i.l.bf16 %v4085_v41  ;;  %v4092_v53 = vunpack.i.h.bf16 %v4090_v48  ;;  %v4091_v54 = vunpack.i.l.bf16 %v4090_v48 }
 0x12a   : > { %4134 = vrot.lane.b32.xlu1 %v5059_v49, %s4769_s26  ;;  %4139 = vrot.lane.b32.xlu0 %v5052_v42, %s4769_s26 }
 0x12b   : > { %v614_v58 = vsel %vm601_vm0, %v4086_v47, %v4087_v46  ;;  %v5069_v62 = vsel %vm601_vm0, %v4087_v46, %v4091_v54  ;;  %3638 = vmatprep.subr.bf16.mxu0 %v3637_v51  ;;  %v656_v1 = vsel %vm601_vm0, 0.0, %v4086_v47  ;;  %v657_v3 = vsel %vm601_vm0, 0.0, %v4092_v53 }
 0x12c   : > { %v4095_v59 = vpop.permute.xlu1 %4094  ;;  %3641 = vmatpush1.bf16.msk.msra.mxu0 %vm5003_vm2, %v3639_v55  ;;  %v5076_v5 = vpack.i.bf16 %v5069_v62, %v614_v58  ;;  %v5086_v12 = vpack.i.bf16 %v657_v3, %v656_v1  ;;  %v3644_v16 = vpack.c.bf16 %v4092_v53, %v4086_v47  ;;  %v664_v22 = vsel %vm601_vm0, %v4091_v54, 0.0 }
 0x12d   : > { %v4097_v0 = vunpack.i.h.bf16 %v4095_v59  ;;  %v4096_v4 = vunpack.i.l.bf16 %v4095_v59 }
 0x12e   : > { %4144 = vrot.lane.b32.xlu1 %v5076_v5, %s4769_s26 }
 0x12f   : > { %v616_v9 = vsel %vm601_vm0, %v4092_v53, %v4096_v4  ;;  %v5082_v10 = vsel %vm601_vm0, %v4096_v4, %v4097_v0  ;;  %v665_v21 = vsel %vm601_vm0, %v4097_v0, 0.0 }
 0x130   : > { %v5089_v14 = vpack.i.bf16 %v5082_v10, %v616_v9  ;;  %v3642_v15 = vpack.c.bf16 %v616_v9, %v614_v58  ;;  %v5103_v27 = vpack.i.bf16 %v665_v21, %v664_v22 }
 0x132   : > { %4149 = vrot.lane.b32.xlu0 %v5089_v14, %s4769_s26  ;;  %3643 = vmatprep.subr.bf16.mxu0 %v3642_v15 }
 0x133   : > { %4154 = vrot.lane.b32.xlu1 %v5086_v12, %s4769_s26  ;;  %3646 = vmatpush1.bf16.msk.msra.mxu0 %vm5003_vm2, %v3644_v16 }
 0x136   : > { %4159 = vrot.lane.b32.xlu0 %v4986_v52, %s4770_s27 }
 0x137   : > { %4164 = vrot.lane.b32.xlu1 %v5001_v63, %s4770_s27 }
 0x13a   : > { %4169 = vrot.lane.b32.xlu0 %v4993_v57, %s4770_s27 }
 0x13b   : > { %4174 = vrot.lane.b32.xlu1 %v5022_v13, %s4770_s27 }
 0x13e   : > { %4179 = vrot.lane.b32.xlu0 %v5033_v25, %s4770_s27 }
 0x13f   : > { %4184 = vrot.lane.b32.xlu1 %v5026_v24, %s4770_s27 }
 0x142   : > { %4189 = vrot.lane.b32.xlu0 %v5048_v38, %s4770_s27 }
 0x143   : > { %4194 = vrot.lane.b32.xlu1 %v5059_v49, %s4770_s27 }
 0x146   : > { %4199 = vrot.lane.b32.xlu0 %v5052_v42, %s4770_s27 }
 0x147   : > { %4204 = vrot.lane.b32.xlu1 %v5076_v5, %s4770_s27 }
 0x14a   : > { %4209 = vrot.lane.b32.xlu0 %v5089_v14, %s4770_s27 }
 0x14b   : > { %4214 = vrot.lane.b32.xlu1 %v5086_v12, %s4770_s27 }
 0x14e   : > { %4219 = vrot.lane.b32.xlu0 %v4986_v52, %s4771_s28 }
 0x14f   : > { %4224 = vrot.lane.b32.xlu1 %v5001_v63, %s4771_s28 }
 0x152   : > { %4229 = vrot.lane.b32.xlu0 %v4993_v57, %s4771_s28 }
 0x153   : > { %4234 = vrot.lane.b32.xlu1 %v5022_v13, %s4771_s28 }
 0x156   : > { %4239 = vrot.lane.b32.xlu0 %v5033_v25, %s4771_s28 }
 0x157   : > { %4244 = vrot.lane.b32.xlu1 %v5026_v24, %s4771_s28 }
 0x15a   : > { %4249 = vrot.lane.b32.xlu0 %v5048_v38, %s4771_s28 }
 0x15b   : > { %4254 = vrot.lane.b32.xlu1 %v5059_v49, %s4771_s28 }
 0x15e   : > { %4259 = vrot.lane.b32.xlu0 %v5052_v42, %s4771_s28 }
 0x15f   : > { %4264 = vrot.lane.b32.xlu1 %v5076_v5, %s4771_s28 }
 0x162   : > { %4269 = vrot.lane.b32.xlu0 %v5089_v14, %s4771_s28 }
 0x163   : > { %4274 = vrot.lane.b32.xlu1 %v5086_v12, %s4771_s28 }
 0x166   : > { %4279 = vrot.lane.b32.xlu0 %v4986_v52, %s4772_s7 }
 0x167   : > { %4284 = vrot.lane.b32.xlu1 %v5001_v63, %s4772_s7 }
 0x16a   : > { %4289 = vrot.lane.b32.xlu0 %v4993_v57, %s4772_s7 }
 0x16b   : > { %4294 = vrot.lane.b32.xlu1 %v5022_v13, %s4772_s7 }
 0x16e   : > { %4299 = vrot.lane.b32.xlu0 %v5033_v25, %s4772_s7 }
 0x16f   : > { %4304 = vrot.lane.b32.xlu1 %v5026_v24, %s4772_s7 }
 0x172   : > { %4309 = vrot.lane.b32.xlu0 %v5048_v38, %s4772_s7 }
 0x173   : > { %4314 = vrot.lane.b32.xlu1 %v5059_v49, %s4772_s7 }
 0x176   : > { %4319 = vrot.lane.b32.xlu0 %v5052_v42, %s4772_s7 }
 0x177   : > { %4324 = vrot.lane.b32.xlu1 %v5076_v5, %s4772_s7 }
 0x17a   : > { %4329 = vrot.lane.b32.xlu0 %v5089_v14, %s4772_s7 }
 0x17b   : > { %4334 = vrot.lane.b32.xlu1 %v5086_v12, %s4772_s7 }
 0x17e   : > { %4339 = vrot.lane.b32.xlu0 %v4986_v52, %s4773_s11 }
 0x17f   : > { %4344 = vrot.lane.b32.xlu1 %v5001_v63, %s4773_s11 }
 0x182   : > { %4349 = vrot.lane.b32.xlu0 %v4993_v57, %s4773_s11 }
 0x183   : > { %4354 = vrot.lane.b32.xlu1 %v5022_v13, %s4773_s11 }
 0x186   : > { %4359 = vrot.lane.b32.xlu0 %v5033_v25, %s4773_s11 }
 0x187   : > { %4364 = vrot.lane.b32.xlu1 %v5026_v24, %s4773_s11 }
 0x18a   : > { %v5200_v33 = vpop.permute.xlu0 %4099  ;;  %4369 = vrot.lane.b32.xlu0 %v5048_v38, %s4773_s11 }
 0x18b   : > { %v6937_v34 = vunpack.i.h.bf16 %v5200_v33  ;;  %v4101_v35 = vunpack.i.l.bf16 %v5200_v33  ;;  %4374 = vrot.lane.b32.xlu1 %v5059_v49, %s4773_s11 }
 0x18d   : > { %v5208_v39 = vpop.permute.xlu1 %4104  ;;  %v748_v46 = vsel %vm746_vm3, %v4101_v35, %v6937_v34 }
 0x18e   : > { %v6936_v40 = vunpack.i.h.bf16 %v5208_v39  ;;  %v4106_v41 = vunpack.i.l.bf16 %v5208_v39  ;;  %4379 = vrot.lane.b32.xlu0 %v5052_v42, %s4773_s11  ;;  %v4110_v43 = vpop.permute.xlu0 %4109 }
 0x18f   : > { %4384 = vrot.lane.b32.xlu1 %v5076_v5, %s4773_s11  ;;  %v4112_v47 = vunpack.i.h.bf16 %v4110_v43  ;;  %v4111_v48 = vunpack.i.l.bf16 %v4110_v43 }
 0x190   : > { %v751_v51 = vsel %vm746_vm3, %v4106_v41, %v6936_v40 }
 0x191   : > { %v5222_v53 = vpop.permute.xlu1 %4114  ;;  %v3647_v54 = vpack.c.bf16 %v751_v51, %v748_v46  ;;  %v747_v55 = vsel %vm746_vm3, %v4111_v48, %v4101_v35  ;;  %v750_v56 = vsel %vm746_vm3, %v4112_v47, %v4106_v41 }
 0x192   : > { %4389 = vrot.lane.b32.xlu0 %v5089_v14, %s4773_s11  ;;  %v3649_v58 = vpack.c.bf16 %v750_v56, %v747_v55  ;;  %v6935_v59 = vunpack.i.h.bf16 %v5222_v53  ;;  %v4116_v61 = vunpack.i.l.bf16 %v5222_v53 }
 0x193   : > { %3648 = vmatprep.subr.bf16.mxu0 %v3647_v54  ;;  %4394 = vrot.lane.b32.xlu1 %v5086_v12, %s4773_s11 }
 0x194   : > { %3650 = vmatpush1.bf16.msra.mxu0 %v3649_v58  ;;  %v5232_v1 = vpop.permute.xlu0 %4119  ;;  %v754_v9 = vsel %vm746_vm3, %v4116_v61, %v6935_v59 }
 0x195   : > { %v4125_v0 = vpop.permute.xlu1 %4124  ;;  %v6934_v6 = vunpack.i.h.bf16 %v5232_v1  ;;  %v4121_v8 = vunpack.i.l.bf16 %v5232_v1 }
 0x196   : > { %v4127_v3 = vunpack.i.h.bf16 %v4125_v0  ;;  %v4126_v4 = vunpack.i.l.bf16 %v4125_v0  ;;  %4399 = vrot.lane.b32.xlu0 %v5009_v7, %s4770_s27 }
 0x197   : > { %4404 = vrot.lane.b32.xlu1 %v4986_v52, %s4774_s12  ;;  %v757_v15 = vsel %vm746_vm3, %v4121_v8, %v6934_v6 }
 0x198   : > { %v753_v16 = vsel %vm746_vm3, %v4126_v4, %v4116_v61  ;;  %v756_v21 = vsel %vm746_vm3, %v4127_v3, %v4121_v8  ;;  %v5248_v22 = vpop.permute.xlu0 %4129  ;;  %v3651_v31 = vpack.c.bf16 %v757_v15, %v754_v9 }
 0x199   : > { %v3653_v35 = vpack.c.bf16 %v756_v21, %v753_v16  ;;  %v6933_v41 = vunpack.i.h.bf16 %v5248_v22  ;;  %v4131_v43 = vunpack.i.l.bf16 %v5248_v22 }
 0x19a   : > { %4409 = vrot.lane.b32.xlu0 %v5001_v63, %s4774_s12  ;;  %3652 = vmatprep.subr.bf16.mxu0 %v3651_v31 }
 0x19b   : > { %4414 = vrot.lane.b32.xlu1 %v4993_v57, %s4774_s12  ;;  %3654 = vmatpush1.bf16.msra.mxu0 %v3653_v35  ;;  %v760_v56 = vsel %vm746_vm3, %v4131_v43, %v6933_v41 }
 0x19c   : > { %v5256_v46 = vpop.permute.xlu1 %4134  ;;  %v4140_v47 = vpop.permute.xlu0 %4139 }
 0x19d   : > { %v6932_v48 = vunpack.i.h.bf16 %v5256_v46  ;;  %v4136_v51 = vunpack.i.l.bf16 %v5256_v46  ;;  %v4142_v54 = vunpack.i.h.bf16 %v4140_v47  ;;  %v4141_v55 = vunpack.i.l.bf16 %v4140_v47 }
 0x19e   : > { %4419 = vrot.lane.b32.xlu0 %v5099_v23, %s4770_s27 }
 0x19f   : > { %4424 = vrot.lane.b32.xlu1 %v5022_v13, %s4774_s12  ;;  %v763_v58 = vsel %vm746_vm3, %v4136_v51, %v6932_v48  ;;  %v759_v61 = vsel %vm746_vm3, %v4141_v55, %v4131_v43  ;;  %v762_v0 = vsel %vm746_vm3, %v4142_v54, %v4136_v51 }
 0x1a0   : > { %v5272_v3 = vpop.permute.xlu1 %4144  ;;  %v3655_v4 = vpack.c.bf16 %v763_v58, %v760_v56  ;;  %v3657_v8 = vpack.c.bf16 %v762_v0, %v759_v61 }
 0x1a1   : > { %7013 = vst [vmem:[#allocation8_spill] sm:$0xff] %v5272_v3  ;;  %v6930_v9 = vunpack.i.h.bf16 %v5272_v3  ;;  %v4146_v15 = vunpack.i.l.bf16 %v5272_v3 }
 0x1a2   : > { %4429 = vrot.lane.b32.xlu0 %v5033_v25, %s4774_s12  ;;  %3656 = vmatprep.subr.bf16.mxu0 %v3655_v4 }
 0x1a3   : > { %4434 = vrot.lane.b32.xlu1 %v5026_v24, %s4774_s12  ;;  %3658 = vmatpush1.bf16.msra.mxu0 %v3657_v8  ;;  %v766_v51 = vsel %vm746_vm3, %v4146_v15, %v6930_v9 }
 0x1a4   : > { %v5280_v16 = vpop.permute.xlu0 %4149 }
 0x1a5   : > { %7014 = vst [vmem:[#allocation9_spill] sm:$0xff] %v5280_v16  ;;  %v4155_v21 = vpop.permute.xlu1 %4154  ;;  %v6931_v31 = vunpack.i.h.bf16 %v5280_v16  ;;  %v4151_v35 = vunpack.i.l.bf16 %v5280_v16 }
 0x1a6   : > { %v4157_v43 = vunpack.i.h.bf16 %v4155_v21  ;;  %v4156_v47 = vunpack.i.l.bf16 %v4155_v21  ;;  %4439 = vrot.lane.b32.xlu0 %v5101_v26, %s4770_s27 }
 0x1a7   : > { %4444 = vrot.lane.b32.xlu1 %v5048_v38, %s4774_s12  ;;  %v769_v54 = vsel %vm746_vm3, %v4151_v35, %v6931_v31 }
 0x1a8   : > { %v5294_v55 = vpop.permute.xlu0 %4159  ;;  %v3659_v56 = vpack.c.bf16 %v769_v54, %v766_v51  ;;  %v765_v58 = vsel %vm746_vm3, %v4156_v47, %v4146_v15  ;;  %v768_v61 = vsel %vm746_vm3, %v4157_v43, %v4151_v35 }
 0x1a9   : > { %v5298_v0 = vpop.permute.xlu1 %4164  ;;  %v6947_v4 = vunpack.i.h.bf16 %v5294_v55  ;;  %v4161_v8 = vunpack.i.l.bf16 %v5294_v55  ;;  %v3661_v21 = vpack.c.bf16 %v768_v61, %v765_v58 }
 0x1aa   : > { %v6946_v18 = vunpack.i.h.bf16 %v5298_v0  ;;  %v4166_v9 = vunpack.i.l.bf16 %v5298_v0  ;;  %4449 = vrot.lane.b32.xlu0 %v5059_v49, %s4774_s12  ;;  %3660 = vmatprep.subr.bf16.mxu0 %v3659_v56 }
 0x1ab   : > { %4454 = vrot.lane.b32.xlu1 %v5052_v42, %s4774_s12  ;;  %3662 = vmatpush1.bf16.msra.mxu0 %v3661_v21  ;;  %v861_v15 = vsel %vm859_vm4, %v4161_v8, %v6947_v4 }
 0x1ac   : > { %v4170_v35 = vpop.permute.xlu0 %4169  ;;  %v864_v43 = vsel %vm859_vm4, %v4166_v9, %v6946_v18 }
 0x1ad   : > { %v5314_v47 = vpop.permute.xlu1 %4174  ;;  %v4172_v51 = vunpack.i.h.bf16 %v4170_v35  ;;  %v4171_v54 = vunpack.i.l.bf16 %v4170_v35  ;;  %v3663_v58 = vpack.c.bf16 %v864_v43, %v861_v15 }
 0x1ae   : > { %4459 = vrot.lane.b32.xlu0 %v5103_v27, %s4770_s27  ;;  %v6941_v56 = vunpack.i.h.bf16 %v5314_v47  ;;  %v4176_v61 = vunpack.i.l.bf16 %v5314_v47 }
 0x1af   : > { %4464 = vrot.lane.b32.xlu1 %v5076_v5, %s4774_s12  ;;  %3664 = vmatprep.subr.bf16.mxu0 %v3663_v58  ;;  %v860_v21 = vsel %vm859_vm4, %v4171_v54, %v4161_v8  ;;  %v863_v31 = vsel %vm859_vm4, %v4172_v51, %v4166_v9 }
 0x1b0   : > { %v5324_v48 = vpop.permute.xlu0 %4179  ;;  %v3665_v41 = vpack.c.bf16 %v863_v31, %v860_v21  ;;  %v867_v9 = vsel %vm859_vm4, %v4176_v61, %v6941_v56 }
 0x1b1   : > { %v4185_v35 = vpop.permute.xlu1 %4184  ;;  %v6940_v15 = vunpack.i.h.bf16 %v5324_v48  ;;  %v4181_v43 = vunpack.i.l.bf16 %v5324_v48 }
 0x1b2   : > { %v4187_v6 = vunpack.i.h.bf16 %v4185_v35  ;;  %v4186_v59 = vunpack.i.l.bf16 %v4185_v35  ;;  %4469 = vrot.lane.b32.xlu0 %v5089_v14, %s4774_s12  ;;  %3666 = vmatpush1.bf16.msra.mxu0 %v3665_v41 }
 0x1b3   : > { %4474 = vrot.lane.b32.xlu1 %v5086_v12, %s4774_s12  ;;  %v870_v31 = vsel %vm859_vm4, %v4181_v43, %v6940_v15 }
 0x1b4   : > { %v5338_v8 = vpop.permute.xlu0 %4189  ;;  %v3667_v51 = vpack.c.bf16 %v870_v31, %v867_v9  ;;  %v866_v54 = vsel %vm859_vm4, %v4186_v59, %v4176_v61  ;;  %v869_v58 = vsel %vm859_vm4, %v4187_v6, %v4181_v43 }
 0x1b5   : > { %v5342_v21 = vpop.permute.xlu1 %4194  ;;  %v6939_v41 = vunpack.i.h.bf16 %v5338_v8  ;;  %v4191_v35 = vunpack.i.l.bf16 %v5338_v8  ;;  %v3669_v40 = vpack.c.bf16 %v869_v58, %v866_v54 }
 0x1b6   : > { %v6938_v34 = vunpack.i.h.bf16 %v5342_v21  ;;  %v4196_v30 = vunpack.i.l.bf16 %v5342_v21  ;;  %4479 = vrot.lane.b32.xlu0 %v5009_v7, %s4771_s28  ;;  %3668 = vmatprep.subr.bf16.mxu0 %v3667_v51 }
 0x1b7   : > { %4484 = vrot.lane.b32.xlu1 %v4986_v52, %s4775_s13  ;;  %3670 = vmatpush1.bf16.msra.mxu0 %v3669_v40  ;;  %v873_v59 = vsel %vm859_vm4, %v4191_v35, %v6939_v41 }
 0x1b8   : > { %v4200_v6 = vpop.permute.xlu0 %4199  ;;  %v876_v61 = vsel %vm859_vm4, %v4196_v30, %v6938_v34 }
 0x1b9   : > { %v5358_v43 = vpop.permute.xlu1 %4204  ;;  %v4202_v9 = vunpack.i.h.bf16 %v4200_v6  ;;  %v4201_v31 = vunpack.i.l.bf16 %v4200_v6  ;;  %v3671_v54 = vpack.c.bf16 %v876_v61, %v873_v59 }
 0x1ba   : > { %4489 = vrot.lane.b32.xlu0 %v5001_v63, %s4775_s13  ;;  %v6942_v51 = vunpack.i.h.bf16 %v5358_v43  ;;  %v4206_v40 = vunpack.i.l.bf16 %v5358_v43 }
 0x1bb   : > { %4494 = vrot.lane.b32.xlu1 %v5009_v7, %s4769_s26  ;;  %3672 = vmatprep.subr.bf16.mxu0 %v3671_v54  ;;  %v872_v58 = vsel %vm859_vm4, %v4201_v31, %v4191_v35  ;;  %v875_v29 = vsel %vm859_vm4, %v4202_v9, %v4196_v30 }
 0x1bc   : > { %v5368_v34 = vpop.permute.xlu0 %4209  ;;  %v3673_v41 = vpack.c.bf16 %v875_v29, %v872_v58  ;;  %v879_v30 = vsel %vm859_vm4, %v4206_v40, %v6942_v51 }
 0x1bd   : > { %v4215_v6 = vpop.permute.xlu1 %4214  ;;  %v6945_v59 = vunpack.i.h.bf16 %v5368_v34  ;;  %v4211_v61 = vunpack.i.l.bf16 %v5368_v34 }
 0x1be   : > { %v4217_v28 = vunpack.i.h.bf16 %v4215_v6  ;;  %v4216_v15 = vunpack.i.l.bf16 %v4215_v6  ;;  %4499 = vrot.lane.b32.xlu0 %v4993_v57, %s4775_s13  ;;  %3674 = vmatpush1.bf16.msra.mxu0 %v3673_v41 }
 0x1bf   : > { %4504 = vrot.lane.b32.xlu1 %v5099_v23, %s4771_s28  ;;  %v882_v29 = vsel %vm859_vm4, %v4211_v61, %v6945_v59 }
 0x1c0   : > { %v5382_v35 = vpop.permute.xlu0 %4219  ;;  %v3675_v9 = vpack.c.bf16 %v882_v29, %v879_v30  ;;  %v878_v31 = vsel %vm859_vm4, %v4216_v15, %v4206_v40  ;;  %v881_v54 = vsel %vm859_vm4, %v4217_v28, %v4211_v61 }
 0x1c1   : > { %v5386_v41 = vpop.permute.xlu1 %4224  ;;  %v6944_v58 = vunpack.i.h.bf16 %v5382_v35  ;;  %v4221_v6 = vunpack.i.l.bf16 %v5382_v35  ;;  %v3677_v56 = vpack.c.bf16 %v881_v54, %v878_v31 }
 0x1c2   : > { %v6943_v51 = vunpack.i.h.bf16 %v5386_v41  ;;  %v4226_v2 = vunpack.i.l.bf16 %v5386_v41  ;;  %4509 = vrot.lane.b32.xlu0 %v5022_v13, %s4775_s13  ;;  %3676 = vmatprep.subr.bf16.mxu0 %v3675_v9 }
 0x1c3   : > { %4514 = vrot.lane.b32.xlu1 %v5033_v25, %s4775_s13  ;;  %3678 = vmatpush1.bf16.msra.mxu0 %v3677_v56  ;;  %v974_v28 = vsel %vm972_vm5, %v4221_v6, %v6944_v58 }
 0x1c4   : > { %v4230_v15 = vpop.permute.xlu0 %4229  ;;  %v977_v40 = vsel %vm972_vm5, %v4226_v2, %v6943_v51 }
 0x1c5   : > { %v5402_v61 = vpop.permute.xlu1 %4234  ;;  %v4232_v30 = vunpack.i.h.bf16 %v4230_v15  ;;  %v4231_v29 = vunpack.i.l.bf16 %v4230_v15  ;;  %v3679_v31 = vpack.c.bf16 %v977_v40, %v974_v28 }
 0x1c6   : > { %4519 = vrot.lane.b32.xlu0 %v5099_v23, %s4769_s26  ;;  %v6949_v9 = vunpack.i.h.bf16 %v5402_v61  ;;  %v4236_v56 = vunpack.i.l.bf16 %v5402_v61 }
 0x1c7   : > { %4524 = vrot.lane.b32.xlu1 %v5026_v24, %s4775_s13  ;;  %3680 = vmatprep.subr.bf16.mxu0 %v3679_v31  ;;  %v973_v54 = vsel %vm972_vm5, %v4231_v29, %v4221_v6  ;;  %v976_v51 = vsel %vm972_vm5, %v4232_v30, %v4226_v2 }
 0x1c8   : > { %v5412_v58 = vpop.permute.xlu0 %4239  ;;  %v3681_v59 = vpack.c.bf16 %v976_v51, %v973_v54  ;;  %v980_v2 = vsel %vm972_vm5, %v4236_v56, %v6949_v9 }
 0x1c9   : > { %v4245_v15 = vpop.permute.xlu1 %4244  ;;  %v6953_v28 = vunpack.i.h.bf16 %v5412_v58  ;;  %v4241_v40 = vunpack.i.l.bf16 %v5412_v58 }
 0x1ca   : > { %v4247_v18 = vunpack.i.h.bf16 %v4245_v15  ;;  %v4246_v4 = vunpack.i.l.bf16 %v4245_v15  ;;  %4529 = vrot.lane.b32.xlu0 %v5101_v26, %s4771_s28  ;;  %3682 = vmatpush1.bf16.msra.mxu0 %v3681_v59 }
 0x1cb   : > { %4534 = vrot.lane.b32.xlu1 %v5048_v38, %s4775_s13  ;;  %v983_v51 = vsel %vm972_vm5, %v4241_v40, %v6953_v28 }
 0x1cc   : > { %v5426_v6 = vpop.permute.xlu0 %4249  ;;  %v3683_v30 = vpack.c.bf16 %v983_v51, %v980_v2  ;;  %v979_v29 = vsel %vm972_vm5, %v4246_v4, %v4236_v56  ;;  %v982_v31 = vsel %vm972_vm5, %v4247_v18, %v4241_v40 }
 0x1cd   : > { %v5430_v54 = vpop.permute.xlu1 %4254  ;;  %v6952_v59 = vunpack.i.h.bf16 %v5426_v6  ;;  %v4251_v15 = vunpack.i.l.bf16 %v5426_v6  ;;  %v3685_v19 = vpack.c.bf16 %v982_v31, %v979_v29 }
 0x1ce   : > { %v6951_v9 = vunpack.i.h.bf16 %v5430_v54  ;;  %v4256_v20 = vunpack.i.l.bf16 %v5430_v54  ;;  %4539 = vrot.lane.b32.xlu0 %v5059_v49, %s4775_s13  ;;  %3684 = vmatprep.subr.bf16.mxu0 %v3683_v30 }
 0x1cf   : > { %4544 = vrot.lane.b32.xlu1 %v5101_v26, %s4769_s26  ;;  %3686 = vmatpush1.bf16.msra.mxu0 %v3685_v19  ;;  %v986_v18 = vsel %vm972_vm5, %v4251_v15, %v6952_v59 }
 0x1d0   : > { %v4260_v4 = vpop.permute.xlu0 %4259  ;;  %v989_v56 = vsel %vm972_vm5, %v4256_v20, %v6951_v9 }
 0x1d1   : > { %v5446_v40 = vpop.permute.xlu1 %4264  ;;  %v4262_v2 = vunpack.i.h.bf16 %v4260_v4  ;;  %v4261_v51 = vunpack.i.l.bf16 %v4260_v4  ;;  %v3687_v29 = vpack.c.bf16 %v989_v56, %v986_v18 }
 0x1d2   : > { %4549 = vrot.lane.b32.xlu0 %v5052_v42, %s4775_s13  ;;  %v4266_v19 = vunpack.i.l.bf16 %v5446_v40 }
 0x1d3   : > { %4554 = vrot.lane.b32.xlu1 %v5103_v27, %s4771_s28  ;;  %3688 = vmatprep.subr.bf16.mxu0 %v3687_v29  ;;  %v985_v31 = vsel %vm972_vm5, %v4261_v51, %v4251_v15  ;;  %v988_v9 = vsel %vm972_vm5, %v4262_v2, %v4256_v20  ;;  %v7015_v15 = vunpack.i.h.bf16 %v5446_v40 }
 0x1d4   : > { %v5456_v59 = vpop.permute.xlu0 %4269  ;;  %v3689_v28 = vpack.c.bf16 %v988_v9, %v985_v31 }
 0x1d5   : > { %v4275_v4 = vpop.permute.xlu1 %4274  ;;  %v6963_v18 = vunpack.i.h.bf16 %v5456_v59  ;;  %v4271_v56 = vunpack.i.l.bf16 %v5456_v59  ;;  %v992_v20 = vsel %vm972_vm5, %v4266_v19, %v7015_v15 }
 0x1d6   : > { %v4277_v44 = vunpack.i.h.bf16 %v4275_v4  ;;  %v4276_v30 = vunpack.i.l.bf16 %v4275_v4  ;;  %4559 = vrot.lane.b32.xlu0 %v5076_v5, %s4775_s13  ;;  %3690 = vmatpush1.bf16.msra.mxu0 %v3689_v28 }
 0x1d7   : > { %4564 = vrot.lane.b32.xlu1 %v5089_v14, %s4775_s13  ;;  %v995_v9 = vsel %vm972_vm5, %v4271_v56, %v6963_v18 }
 0x1d8   : > { %v5470_v2 = vpop.permute.xlu0 %4279  ;;  %v3691_v51 = vpack.c.bf16 %v995_v9, %v992_v20  ;;  %v991_v29 = vsel %vm972_vm5, %v4276_v30, %v4266_v19  ;;  %v994_v31 = vsel %vm972_vm5, %v4277_v44, %v4271_v56  ;;  %v5490_v30 = vld [vmem:[%s6924_s4] sm:$0xff] }
 0x1d9   : > { %7016 = vst [vmem:[#allocation10_spill] sm:$0xff] %v5470_v2  ;;  %v5474_v28 = vpop.permute.xlu1 %4284  ;;  %v6961_v4 = vunpack.i.h.bf16 %v5470_v2  ;;  %v4281_v37 = vunpack.i.l.bf16 %v5470_v2  ;;  %v3693_v36 = vpack.c.bf16 %v994_v31, %v991_v29  ;;  %7018 = vst [vmem:[#allocation12_spill] sm:$0xff] %v5490_v30 }
 0x1da   : > { %7017 = vst [vmem:[#allocation11_spill] sm:$0xff] %v5474_v28  ;;  %v6962_v15 = vunpack.i.h.bf16 %v5474_v28  ;;  %v4286_v16 = vunpack.i.l.bf16 %v5474_v28  ;;  %4569 = vrot.lane.b32.xlu0 %v5103_v27, %s4769_s26  ;;  %3692 = vmatprep.subr.bf16.mxu0 %v3691_v51 }
 0x1db   : > { %4574 = vrot.lane.b32.xlu1 %v5086_v12, %s4775_s13  ;;  %3694 = vmatpush1.bf16.msra.mxu0 %v3693_v36  ;;  %v1087_v44 = vsel %vm1085_vm6, %v4281_v37, %v6961_v4  ;;  %v5500_v36 = vld [vmem:[%s6924_s4 + $0x30] sm:$0xff] }
 0x1dc   : > { %v4290_v19 = vpop.permute.xlu0 %4289  ;;  %v1090_v56 = vsel %vm1085_vm6, %v4286_v16, %v6962_v15  ;;  %7020 = vst [vmem:[#allocation14_spill] sm:$0xff] %v5500_v36 }
 0x1dd   : > { %v5495_v20 = vpop.permute.xlu1 %4294  ;;  %v4292_v9 = vunpack.i.h.bf16 %v4290_v19  ;;  %v4291_v51 = vunpack.i.l.bf16 %v4290_v19  ;;  %v3695_v29 = vpack.c.bf16 %v1090_v56, %v1087_v44  ;;  %v5517_v56 = vld [vmem:[%s6924_s4 + $0x28] sm:$0xff] }
 0x1de   : > { %7019 = vst [vmem:[#allocation13_spill] sm:$0xff] %v5495_v20  ;;  %4579 = vrot.lane.b32.xlu0 %v5009_v7, %s4774_s12  ;;  %1876 = vmatmul.mubr.f32.vlgmr.msra.gmra.mrb[0].mxu0 %v5490_v30  ;;  %v4296_v4 = vunpack.i.l.bf16 %v5495_v20  ;;  %7021 = vst [vmem:[#allocation15_spill] sm:$0xff] %v5517_v56 }
 0x1df   : > { %v1089_v15 = vsel %vm1085_vm6, %v4292_v9, %v4286_v16  ;;  %v1086_v18 = vsel %vm1085_vm6, %v4291_v51, %v4281_v37  ;;  %4584 = vrot.lane.b32.xlu1 %v5009_v7, %s4772_s7  ;;  %3696 = vmatprep.subr.bf16.mxu0 %v3695_v29  ;;  %v1597_v37 = vld [vmem:[%s6924_s4 + $0x58] sm:$0xff] }
 0x1e0   : > { %v5511_v44 = vpop.permute.xlu0 %4299  ;;  %v3697_v19 = vpack.c.bf16 %v1089_v15, %v1086_v18  ;;  %1881 = vmatprep.mubr.f32.mxu0 %v5500_v36  ;;  %v7022_v18 = vunpack.i.h.bf16 %v5495_v20 }
 0x1e1   : > { %v4305_v31 = vpop.permute.xlu1 %4304  ;;  %v6970_v30 = vunpack.i.h.bf16 %v5511_v44  ;;  %v4301_v16 = vunpack.i.l.bf16 %v5511_v44 }
 0x1e2   : > { %v4307_v9 = vunpack.i.h.bf16 %v4305_v31  ;;  %v4306_v51 = vunpack.i.l.bf16 %v4305_v31  ;;  %4589 = vrot.lane.b32.xlu0 %v5099_v23, %s4774_s12  ;;  %3698 = vmatpush1.bf16.msra.mxu0 %v3697_v19  ;;  %v1093_v15 = vsel %vm1085_vm6, %v4296_v4, %v7022_v18 }
 0x1e3   : > { %4594 = vrot.lane.b32.xlu1 %v5099_v23, %s4772_s7  ;;  %v1096_v29 = vsel %vm1085_vm6, %v4301_v16, %v6970_v30  ;;  %1882 = vmatmul.mubr.f32.gmra.mrb[2].mxu0 %v5517_v56  ;;  %v5546_v30 = vld [vmem:[%s6924_s4 + $0x50] sm:$0xff] }
 0x1e4   : > { %v1092_v36 = vsel %vm1085_vm6, %v4306_v51, %v4296_v4  ;;  %v1095_v31 = vsel %vm1085_vm6, %v4307_v9, %v4301_v16  ;;  %v5537_v2 = vpop.permute.xlu0 %4309  ;;  %v3699_v19 = vpack.c.bf16 %v1096_v29, %v1093_v15  ;;  %1887 = vmatprep.mubr.f32.mxu0 %v1597_v37  ;;  %7025 = vst [vmem:[#allocation18_spill] sm:$0xff] %v5546_v30  ;;  %v5555_v37 = vld [vmem:[%s6924_s4 + $0x80] sm:$0xff] }
 0x1e5   : > { %7023 = vst [vmem:[#allocation16_spill] sm:$0xff] %v5537_v2  ;;  %v5539_v28 = vpop.permute.xlu1 %4314  ;;  %v6971_v20 = vunpack.i.h.bf16 %v5537_v2  ;;  %v4311_v18 = vunpack.i.l.bf16 %v5537_v2  ;;  %v3701_v3 = vpack.c.bf16 %v1095_v31, %v1092_v36  ;;  %7026 = vst [vmem:[#allocation19_spill] sm:$0xff] %v5555_v37 }
 0x1e6   : > { %7024 = vst [vmem:[#allocation17_spill] sm:$0xff] %v5539_v28  ;;  %v6972_v4 = vunpack.i.h.bf16 %v5539_v28  ;;  %v4316_v16 = vunpack.i.l.bf16 %v5539_v28  ;;  %4599 = vrot.lane.b32.xlu0 %v5101_v26, %s4774_s12  ;;  %3700 = vmatprep.subr.bf16.mxu0 %v3699_v19 }
 0x1e7   : > { %4604 = vrot.lane.b32.xlu1 %v5101_v26, %s4772_s7  ;;  %3702 = vmatpush1.bf16.msra.mxu0 %v3701_v3  ;;  %v1099_v36 = vsel %vm1085_vm6, %v4311_v18, %v6971_v20  ;;  %v5572_v3 = vld [vmem:[%s6924_s4 + $0x78] sm:$0xff]  ;;  %v1607_v20 = vld [vmem:[%s6924_s4 + $0xa8] sm:$0xff] }
 0x1e8   : > { %v4320_v9 = vpop.permute.xlu0 %4319  ;;  %v1102_v51 = vsel %vm1085_vm6, %v4316_v16, %v6972_v4  ;;  %1888 = vmatmul.mubr.f32.gmra.mrb[4].mxu0 %v5546_v30  ;;  %7028 = vst [vmem:[#allocation21_spill] sm:$0xff] %v5572_v3 }
 0x1e9   : > { %v5566_v15 = vpop.permute.xlu1 %4324  ;;  %v4322_v29 = vunpack.i.h.bf16 %v4320_v9  ;;  %v4321_v31 = vunpack.i.l.bf16 %v4320_v9  ;;  %v3703_v19 = vpack.c.bf16 %v1102_v51, %v1099_v36  ;;  %1893 = vmatprep.mubr.f32.mxu0 %v5555_v37 }
 0x1ea   : > { %7027 = vst [vmem:[#allocation20_spill] sm:$0xff] %v5566_v15  ;;  %4609 = vrot.lane.b32.xlu0 %v5103_v27, %s4774_s12  ;;  %v4326_v30 = vunpack.i.l.bf16 %v5566_v15 }
 0x1eb   : > { %v1101_v36 = vsel %vm1085_vm6, %v4322_v29, %v4316_v16  ;;  %v1098_v9 = vsel %vm1085_vm6, %v4321_v31, %v4311_v18  ;;  %4614 = vrot.lane.b32.xlu1 %v5103_v27, %s4772_s7  ;;  %3704 = vmatprep.subr.bf16.mxu0 %v3703_v19  ;;  %v5593_v16 = vld [vmem:[%s6924_s4 + $0xa0] sm:$0xff]  ;;  %v5600_v31 = vld [vmem:[%s6924_s4 + $0xd0] sm:$0xff] }
 0x1ec   : > { %v5585_v51 = vpop.permute.xlu0 %4329  ;;  %v3705_v37 = vpack.c.bf16 %v1101_v36, %v1098_v9  ;;  %1894 = vmatmul.mubr.f32.gmra.mrb[6].mxu0 %v5572_v3 }
 0x1ed   : > { %v4335_v2 = vpop.permute.xlu1 %4334  ;;  %v6980_v28 = vunpack.i.h.bf16 %v5585_v51  ;;  %v4331_v4 = vunpack.i.l.bf16 %v5585_v51  ;;  %1899 = vmatprep.mubr.f32.mxu0 %v1607_v20  ;;  %v7029_v20 = vunpack.i.h.bf16 %v5566_v15 }
 0x1ee   : > { %v4337_v18 = vunpack.i.h.bf16 %v4335_v2  ;;  %v4336_v29 = vunpack.i.l.bf16 %v4335_v2  ;;  %4619 = vrot.lane.b32.xlu0 %v5009_v7, %s4775_s13  ;;  %3706 = vmatpush1.bf16.msra.mxu0 %v3705_v37 }
 0x1ef   : > { %4624 = vrot.lane.b32.xlu1 %v4986_v52, %s4776_s23  ;;  %v1105_v19 = vsel %vm1085_vm6, %v4326_v30, %v7029_v20  ;;  %v1108_v2 = vsel %vm1085_vm6, %v4331_v4, %v6980_v28 }
 0x1f0   : > { %v1104_v36 = vsel %vm1085_vm6, %v4336_v29, %v4326_v30  ;;  %v1107_v37 = vsel %vm1085_vm6, %v4337_v18, %v4331_v4  ;;  %v5612_v9 = vpop.permute.xlu0 %4339  ;;  %v3707_v3 = vpack.c.bf16 %v1108_v2, %v1105_v19  ;;  %1900 = vmatmul.mubr.f32.gmra.mrb[8].mxu0 %v5593_v16  ;;  %v5623_v30 = vld [vmem:[%s6924_s4 + $0xc8] sm:$0xff]  ;;  %v1617_v29 = vld [vmem:[%s6924_s4 + $0xf8] sm:$0xff] }
 0x1f1   : > { %7030 = vst [vmem:[#allocation22_spill] sm:$0xff] %v5612_v9  ;;  %v5615_v56 = vpop.permute.xlu1 %4344  ;;  %v6981_v52 = vunpack.i.h.bf16 %v5612_v9  ;;  %v4341_v20 = vunpack.i.l.bf16 %v5612_v9  ;;  %v3709_v15 = vpack.c.bf16 %v1107_v37, %v1104_v36  ;;  %1905 = vmatprep.mubr.f32.mxu0 %v5600_v31  ;;  %7031 = vst [vmem:[#allocation23_spill] sm:$0xff] %v5623_v30 }
 0x1f2   : > { %v6982_v4 = vunpack.i.h.bf16 %v5615_v56  ;;  %v4346_v18 = vunpack.i.l.bf16 %v5615_v56  ;;  %4629 = vrot.lane.b32.xlu0 %v5001_v63, %s4776_s23  ;;  %3708 = vmatprep.subr.bf16.mxu0 %v3707_v3 }
 0x1f3   : > { %4634 = vrot.lane.b32.xlu1 %v5009_v7, %s4773_s11  ;;  %3710 = vmatpush1.bf16.msra.mxu0 %v3709_v15  ;;  %v1200_v19 = vsel %vm1198_vm7, %v4341_v20, %v6981_v52  ;;  %v5646_v15 = vld [vmem:[%s6924_s4 + $0xf0] sm:$0xff]  ;;  %v5653_v52 = vld [vmem:[%s6924_s4 + $0x120] sm:$0xff] }
 0x1f4   : > { %v4350_v2 = vpop.permute.xlu0 %4349  ;;  %v1203_v36 = vsel %vm1198_vm7, %v4346_v18, %v6982_v4  ;;  %1906 = vmatmul.mubr.f32.gmra.mrb[10].mxu0 %v5623_v30  ;;  %7033 = vst [vmem:[#allocation25_spill] sm:$0xff] %v5646_v15  ;;  %7034 = vst [vmem:[#allocation26_spill] sm:$0xff] %v5653_v52 }
 0x1f5   : > { %v5641_v63 = vpop.permute.xlu1 %4354  ;;  %v4352_v3 = vunpack.i.h.bf16 %v4350_v2  ;;  %v4351_v37 = vunpack.i.l.bf16 %v4350_v2  ;;  %v3711_v28 = vpack.c.bf16 %v1203_v36, %v1200_v19  ;;  %1911 = vmatprep.mubr.f32.mxu0 %v1617_v29 }
 0x1f6   : > { %7032 = vst [vmem:[#allocation24_spill] sm:$0xff] %v5641_v63  ;;  %4639 = vrot.lane.b32.xlu0 %v4993_v57, %s4776_s23  ;;  %v4356_v30 = vunpack.i.l.bf16 %v5641_v63 }
 0x1f7   : > { %v1202_v19 = vsel %vm1198_vm7, %v4352_v3, %v4346_v18  ;;  %v1199_v29 = vsel %vm1198_vm7, %v4351_v37, %v4341_v20  ;;  %4644 = vrot.lane.b32.xlu1 %v5099_v23, %s4775_s13  ;;  %3712 = vmatprep.subr.bf16.mxu0 %v3711_v28  ;;  %v5670_v20 = vld [vmem:[%s6924_s4 + $0x118] sm:$0xff]  ;;  %v5677_v28 = vld [vmem:[%s6924_s4 + $0x148] sm:$0xff]  ;;  %v7037_v37 = vunpack.i.h.bf16 %v5641_v63 }
 0x1f8   : > { %v5661_v2 = vpop.permute.xlu0 %4359  ;;  %v3713_v57 = vpack.c.bf16 %v1202_v19, %v1199_v29  ;;  %1912 = vmatmul.mubr.f32.gmra.mrb[12].mxu0 %v5646_v15  ;;  %7036 = vst [vmem:[#allocation28_spill] sm:$0xff] %v5677_v28 }
 0x1f9   : > { %7035 = vst [vmem:[#allocation27_spill] sm:$0xff] %v5661_v2  ;;  %v4365_v36 = vpop.permute.xlu1 %4364  ;;  %v6988_v9 = vunpack.i.h.bf16 %v5661_v2  ;;  %v4361_v4 = vunpack.i.l.bf16 %v5661_v2  ;;  %1917 = vmatprep.mubr.f32.mxu0 %v5653_v52  ;;  %v1206_v19 = vsel %vm1198_vm7, %v4356_v30, %v7037_v37 }
 0x1fa   : > { %v4367_v18 = vunpack.i.h.bf16 %v4365_v36  ;;  %v4366_v3 = vunpack.i.l.bf16 %v4365_v36  ;;  %4649 = vrot.lane.b32.xlu0 %v5022_v13, %s4776_s23  ;;  %3714 = vmatpush1.bf16.msra.mxu0 %v3713_v57 }
 0x1fb   : > { %4654 = vrot.lane.b32.xlu1 %v5033_v25, %s4776_s23  ;;  %v1209_v29 = vsel %vm1198_vm7, %v4361_v4, %v6988_v9 }
 0x1fc   : > { %v1205_v36 = vsel %vm1198_vm7, %v4366_v3, %v4356_v30  ;;  %v1208_v13 = vsel %vm1198_vm7, %v4367_v18, %v4361_v4  ;;  %v5689_v57 = vpop.permute.xlu0 %4369  ;;  %v3715_v52 = vpack.c.bf16 %v1209_v29, %v1206_v19  ;;  %1918 = vmatmul.mubr.f32.gmra.mrb[14].mxu0 %v5670_v20  ;;  %v5700_v30 = vld [vmem:[%s6924_s4 + $0x140] sm:$0xff]  ;;  %v1632_v3 = vld [vmem:[%s6924_s4 + $0x170] sm:$0xff] }
 0x1fd   : > { %7038 = vst [vmem:[#allocation29_spill] sm:$0xff] %v5689_v57  ;;  %v5692_v15 = vpop.permute.xlu1 %4374  ;;  %v6990_v25 = vunpack.i.h.bf16 %v5689_v57  ;;  %v4371_v63 = vunpack.i.l.bf16 %v5689_v57  ;;  %v3717_v37 = vpack.c.bf16 %v1208_v13, %v1205_v36  ;;  %1923 = vmatprep.mubr.f32.mxu0 %v5677_v28  ;;  %7040 = vst [vmem:[#allocation31_spill] sm:$0xff] %v5700_v30 }
 0x1fe   : > { %7039 = vst [vmem:[#allocation30_spill] sm:$0xff] %v5692_v15  ;;  %v6991_v4 = vunpack.i.h.bf16 %v5692_v15  ;;  %v4376_v18 = vunpack.i.l.bf16 %v5692_v15  ;;  %4659 = vrot.lane.b32.xlu0 %v5099_v23, %s4773_s11  ;;  %3716 = vmatprep.subr.bf16.mxu0 %v3715_v52 }
 0x1ff   : > { %4664 = vrot.lane.b32.xlu1 %v5026_v24, %s4776_s23  ;;  %3718 = vmatpush1.bf16.msra.mxu0 %v3717_v37  ;;  %v1212_v19 = vsel %vm1198_vm7, %v4371_v63, %v6990_v25  ;;  %v5723_v24 = vld [vmem:[%s6924_s4 + $0x168] sm:$0xff]  ;;  %v1637_v37 = vld [vmem:[%s6924_s4 + $0x198] sm:$0xff] }
 0x200   : > { %v4380_v29 = vpop.permute.xlu0 %4379  ;;  %v1215_v36 = vsel %vm1198_vm7, %v4376_v18, %v6991_v4  ;;  %1924 = vmatmul.mubr.f32.gmra.mrb[16].mxu0 %v5700_v30  ;;  %7041 = vst [vmem:[#allocation32_spill] sm:$0xff] %v5723_v24 }
 0x201   : > { %v5718_v52 = vpop.permute.xlu1 %4384  ;;  %v4382_v13 = vunpack.i.h.bf16 %v4380_v29  ;;  %v4381_v9 = vunpack.i.l.bf16 %v4380_v29  ;;  %v3719_v2 = vpack.c.bf16 %v1215_v36, %v1212_v19  ;;  %1929 = vmatprep.mubr.f32.mxu0 %v1632_v3 }
 0x202   : > { %4669 = vrot.lane.b32.xlu0 %v5101_v26, %s4775_s13  ;;  %v4386_v4 = vunpack.i.l.bf16 %v5718_v52 }
 0x203   : > { %v1214_v29 = vsel %vm1198_vm7, %v4382_v13, %v4376_v18  ;;  %v1211_v3 = vsel %vm1198_vm7, %v4381_v9, %v4371_v63  ;;  %4674 = vrot.lane.b32.xlu1 %v5048_v38, %s4776_s23  ;;  %3720 = vmatprep.subr.bf16.mxu0 %v3719_v2  ;;  %v1636_v18 = vld [vmem:[%s6924_s4 + $0x190] sm:$0xff]  ;;  %v1642_v38 = vld [vmem:[%s6924_s4 + $0x1c0] sm:$0xff]  ;;  %v7042_v2 = vunpack.i.h.bf16 %v5718_v52 }
 0x204   : > { %v5736_v19 = vpop.permute.xlu0 %4389  ;;  %v3721_v36 = vpack.c.bf16 %v1214_v29, %v1211_v3  ;;  %1930 = vmatmul.mubr.f32.gmra.mrb[18].mxu0 %v5723_v24 }
 0x205   : > { %v4395_v57 = vpop.permute.xlu1 %4394  ;;  %v6997_v15 = vunpack.i.h.bf16 %v5736_v19  ;;  %v4391_v25 = vunpack.i.l.bf16 %v5736_v19  ;;  %1935 = vmatprep.mubr.f32.mxu0 %v1637_v37  ;;  %v1218_v13 = vsel %vm1198_vm7, %v4386_v4, %v7042_v2  ;;  %v5764_v2 = vld [vmem:[%s6924_s4 + $0x1b8] sm:$0xff] }
 0x206   : > { %v4397_v9 = vunpack.i.h.bf16 %v4395_v57  ;;  %v4396_v63 = vunpack.i.l.bf16 %v4395_v57  ;;  %4679 = vrot.lane.b32.xlu0 %v5059_v49, %s4776_s23  ;;  %3722 = vmatpush1.bf16.msra.mxu0 %v3721_v36 }
 0x207   : > { %4684 = vrot.lane.b32.xlu1 %v5101_v26, %s4773_s11  ;;  %v1221_v37 = vsel %vm1198_vm7, %v4391_v25, %v6997_v15 }
 0x208   : > { %v1217_v57 = vsel %vm1198_vm7, %v4396_v63, %v4386_v4  ;;  %v1220_v49 = vsel %vm1198_vm7, %v4397_v9, %v4391_v25  ;;  %v4400_v29 = vpop.permute.xlu0 %4399  ;;  %v3723_v3 = vpack.c.bf16 %v1221_v37, %v1218_v13  ;;  %1936 = vmatmul.mubr.f32.gmra.mrb[20].mxu0 %v1636_v18  ;;  %v1647_v25 = vld [vmem:[%s6924_s4 + $0x1e8] sm:$0xff]  ;;  %v7043_v9 = vunpack.i.h.bf16 %v5294_v55  ;;  %v5789_v55 = vld [vmem:[%s6924_s4 + $0x1e0] sm:$0xff] }
 0x209   : > { %v5759_v36 = vpop.permute.xlu1 %4404  ;;  %v4402_v24 = vunpack.i.h.bf16 %v4400_v29  ;;  %v4401_v30 = vunpack.i.l.bf16 %v4400_v29  ;;  %v3725_v28 = vpack.c.bf16 %v1220_v49, %v1217_v57  ;;  %1941 = vmatprep.mubr.f32.mxu0 %v1642_v38  ;;  %v7044_v38 = vunpack.i.h.bf16 %v5298_v0 }
 0x20a   : > { %4689 = vrot.lane.b32.xlu0 %v5052_v42, %s4776_s23  ;;  %3724 = vmatprep.subr.bf16.mxu0 %v3723_v3  ;;  %v4407_v4 = vunpack.i.h.bf16 %v5759_v36  ;;  %v4406_v18 = vunpack.i.l.bf16 %v5759_v36  ;;  %v6113_v36 = vld [vmem:[%s6924_s4 + $0x40] sm:$0xff] }
 0x20b   : > { %4694 = vrot.lane.b32.xlu1 %v5103_v27, %s4775_s13  ;;  %3726 = vmatpush1.bf16.msra.mxu0 %v3725_v28  ;;  %v862_v63 = vsel %vm859_vm4, %v7043_v9, %v4401_v30  ;;  %v865_v42 = vsel %vm859_vm4, %v7044_v38, %v4402_v24  ;;  %v5796_v30 = vld [vmem:[%s6924_s4 + $0x210] sm:$0xff]  ;;  %v7045_v24 = vpack.c.bf16 %v4998_v60, %v4983_v50 }
 0x20c   : > { %v5781_v13 = vpop.permute.xlu0 %4409  ;;  %v3775_v37 = vpack.c.bf16 %v865_v42, %v862_v63  ;;  %1942 = vmatmul.mubr.f32.gmra.mrb[22].mxu0 %v5764_v2  ;;  %v1313_v3 = vsel %vm1311_vm8, %v4406_v18, %v4407_v4 }
 0x20d   : > { %v4415_v57 = vpop.permute.xlu1 %4414  ;;  %v4412_v49 = vunpack.i.h.bf16 %v5781_v13  ;;  %v4411_v29 = vunpack.i.l.bf16 %v5781_v13  ;;  %1947 = vmatprep.mubr.f32.mxu0 %v1647_v25 }
 0x20e   : > { %v4417_v0 = vunpack.i.h.bf16 %v4415_v57  ;;  %v4416_v28 = vunpack.i.l.bf16 %v4415_v57  ;;  %4699 = vrot.lane.b32.xlu0 %v5076_v5, %s4776_s23  ;;  %3776 = vmatprep.subr.bf16.mxu1 %v3775_v37  ;;  %v5818_v37 = vld [vmem:[%s6924_s4 + $0x208] sm:$0xff] }
 0x20f   : > { %4704 = vrot.lane.b32.xlu1 %v5089_v14, %s4776_s23  ;;  %3778 = vmatpush3.bf16.msra.mxu1 %v7045_v24  ;;  %v1316_v5 = vsel %vm1311_vm8, %v4411_v29, %v4412_v49  ;;  %v7047_v24 = vunpack.i.h.bf16 %v5324_v48 }
 0x210   : > { %v1312_v25 = vsel %vm1311_vm8, %v4416_v28, %v4406_v18  ;;  %v1315_v9 = vsel %vm1311_vm8, %v4417_v0, %v4411_v29  ;;  %v4420_v63 = vpop.permute.xlu0 %4419  ;;  %v3727_v38 = vpack.c.bf16 %v1316_v5, %v1313_v3  ;;  %1948 = vmatmul.mubr.f32.gmra.mrb[24].mxu0 %v5789_v55  ;;  %v1657_v18 = vld [vmem:[%s6924_s4 + $0x238] sm:$0xff]  ;;  %v7046_v0 = vunpack.i.h.bf16 %v5314_v47 }
 0x211   : > { %v5812_v14 = vpop.permute.xlu1 %4424  ;;  %v4422_v50 = vunpack.i.h.bf16 %v4420_v63  ;;  %v4421_v60 = vunpack.i.l.bf16 %v4420_v63  ;;  %v3729_v42 = vpack.c.bf16 %v1315_v9, %v1312_v25  ;;  %1953 = vmatprep.mubr.f32.mxu0 %v5796_v30 }
 0x212   : > { %4709 = vrot.lane.b32.xlu0 %v5103_v27, %s4773_s11  ;;  %3728 = vmatprep.subr.bf16.mxu0 %v3727_v38  ;;  %v4427_v57 = vunpack.i.h.bf16 %v5812_v14  ;;  %v4426_v29 = vunpack.i.l.bf16 %v5812_v14  ;;  %v6139_v14 = vld [vmem:[%s6924_s4 + $0x68] sm:$0xff] }
 0x213   : > { %4714 = vrot.lane.b32.xlu1 %v5086_v12, %s4776_s23  ;;  %3730 = vmatpush1.bf16.msra.mxu0 %v3729_v42  ;;  %v868_v28 = vsel %vm859_vm4, %v7046_v0, %v4421_v60  ;;  %v871_v3 = vsel %vm859_vm4, %v7047_v24, %v4422_v50  ;;  %v5843_v12 = vld [vmem:[%s6924_s4 + $0x230] sm:$0xff]  ;;  %v5850_v50 = vld [vmem:[%s6924_s4 + $0x260] sm:$0xff]  ;;  %v7048_v60 = vpack.c.bf16 %v5030_v17, %v5015_v11 }
 0x214   : > { %v5835_v5 = vpop.permute.xlu0 %4429  ;;  %v3779_v25 = vpack.c.bf16 %v871_v3, %v868_v28  ;;  %1954 = vmatmul.mubr.f32.gmra.mrb[26].mxu0 %v5818_v37  ;;  %v1319_v42 = vsel %vm1311_vm8, %v4426_v29, %v4427_v57 }
 0x215   : > { %v4435_v9 = vpop.permute.xlu1 %4434  ;;  %v4432_v63 = vunpack.i.h.bf16 %v5835_v5  ;;  %v4431_v38 = vunpack.i.l.bf16 %v5835_v5  ;;  %1959 = vmatprep.mubr.f32.mxu0 %v1657_v18 }
 0x216   : > { %v4437_v47 = vunpack.i.h.bf16 %v4435_v9  ;;  %v4436_v48 = vunpack.i.l.bf16 %v4435_v9  ;;  %4719 = vrot.lane.b32.xlu0 %v5009_v7, %s4776_s23  ;;  %3780 = vmatprep.subr.bf16.mxu1 %v3779_v25  ;;  %v5872_v25 = vld [vmem:[%s6924_s4 + $0x258] sm:$0xff] }
 0x217   : > { %4724 = vrot.lane.b32.xlu1 %v5099_v23, %s4776_s23  ;;  %3782 = vmatpush3.bf16.msra.mxu1 %v7048_v60  ;;  %v1322_v7 = vsel %vm1311_vm8, %v4431_v38, %v4432_v63  ;;  %v7050_v60 = vunpack.i.h.bf16 %v5342_v21 }
 0x218   : > { %v1318_v18 = vsel %vm1311_vm8, %v4436_v48, %v4426_v29  ;;  %v1321_v0 = vsel %vm1311_vm8, %v4437_v47, %v4431_v38  ;;  %v4440_v28 = vpop.permute.xlu0 %4439  ;;  %v3731_v24 = vpack.c.bf16 %v1322_v7, %v1319_v42  ;;  %1960 = vmatmul.mubr.f32.gmra.mrb[28].mxu0 %v5843_v12  ;;  %v5879_v29 = vld [vmem:[%s6924_s4 + $0x18] sm:$0xff]  ;;  %v1666_v47 = vld [vmem:[%s6925_s5] sm:$0xff] }
 0x219   : > { %v5866_v23 = vpop.permute.xlu1 %4444  ;;  %v4442_v11 = vunpack.i.h.bf16 %v4440_v28  ;;  %v4441_v17 = vunpack.i.l.bf16 %v4440_v28  ;;  %v3733_v3 = vpack.c.bf16 %v1321_v0, %v1318_v18  ;;  %1965 = vmatprep.mubr.f32.mxu0 %v5850_v50  ;;  %v1667_v18 = vld [vmem:[%s6925_s5 + $0x8] sm:$0xff] }
 0x21a   : > { %4729 = vrot.lane.b32.xlu0 %v5101_v26, %s4776_s23  ;;  %3732 = vmatprep.subr.bf16.mxu0 %v3731_v24  ;;  %v4447_v9 = vunpack.i.h.bf16 %v5866_v23  ;;  %v4446_v38 = vunpack.i.l.bf16 %v5866_v23  ;;  %v7049_v26 = vunpack.i.h.bf16 %v5338_v8 }
 0x21b   : > { %4734 = vrot.lane.b32.xlu1 %v5103_v27, %s4776_s23  ;;  %3734 = vmatpush1.bf16.msra.mxu0 %v3733_v3  ;;  %v877_v42 = vsel %vm859_vm4, %v7050_v60, %v4442_v11  ;;  %v7051_v11 = vpack.c.bf16 %v5056_v45, %v5041_v32  ;;  %v1669_v32 = vld [vmem:[%s6925_s5 + $0x18] sm:$0xff] }
 0x21c   : > { %v874_v48 = vsel %vm859_vm4, %v7049_v26, %v4441_v17  ;;  %v5894_v7 = vpop.permute.xlu0 %4449  ;;  %1966 = vmatmul.mubr.f32.gmra.mrb[30].mxu0 %v5872_v25  ;;  %v1668_v17 = vld [vmem:[%s6925_s5 + $0x10] sm:$0xff]  ;;  %v1325_v3 = vsel %vm1311_vm8, %v4446_v38, %v4447_v9 }
 0x21d   : > { %v3783_v27 = vpack.c.bf16 %v877_v42, %v874_v48  ;;  %v4455_v0 = vpop.permute.xlu1 %4454  ;;  %v7002_v28 = vunpack.i.h.bf16 %v5894_v7  ;;  %v4451_v8 = vunpack.i.l.bf16 %v5894_v7  ;;  %2036 = vmatprep.mubr.f32.mxu0 %v5879_v29 }
 0x21e   : > { %v4457_v24 = vunpack.i.h.bf16 %v4455_v0  ;;  %v4456_v21 = vunpack.i.l.bf16 %v4455_v0  ;;  %1684 = vperm.xlu0 %4036, %v1666_v47  }
 0x21f   : > { %3784 = vmatprep.subr.bf16.mxu1 %v3783_v27  ;;  %1689 = vperm.xlu1 %4037, %v1667_v18   ;;  %v1328_v26 = vsel %vm1311_vm8, %v4451_v8, %v7002_v28 }
 0x220   : > { %3786 = vmatpush3.bf16.msra.mxu1 %v7051_v11  ;;  %v1324_v47 = vsel %vm1311_vm8, %v4456_v21, %v4446_v38  ;;  %v1327_v48 = vsel %vm1311_vm8, %v4457_v24, %v4451_v8  ;;  %v4460_v60 = vpop.permute.xlu0 %4459  ;;  %v3735_v45 = vpack.c.bf16 %v1328_v26, %v1325_v3  ;;  %v1670_v38 = vld [vmem:[%s6925_s5 + $0x20] sm:$0xff]  ;;  %v7052_v8 = vunpack.i.h.bf16 %v5358_v43  ;;  %v1671_v26 = vld [vmem:[%s6925_s5 + $0x28] sm:$0xff] }
 0x221   : > { %v5920_v42 = vpop.permute.xlu1 %4464  ;;  %v4462_v18 = vunpack.i.h.bf16 %v4460_v60  ;;  %v4461_v27 = vunpack.i.l.bf16 %v4460_v60  ;;  %v3737_v0 = vpack.c.bf16 %v1327_v48, %v1324_v47  ;;  %v7053_v21 = vunpack.i.h.bf16 %v5368_v34 }
 0x222   : > { %1694 = vperm.xlu0 %4036, %v1668_v17   ;;  %3736 = vmatprep.subr.bf16.mxu0 %v3735_v45  ;;  %v7000_v11 = vunpack.i.h.bf16 %v5920_v42  ;;  %v4466_v15 = vunpack.i.l.bf16 %v5920_v42  ;;  %v7054_v34 = vpack.c.bf16 %v5082_v10, %v5069_v62  ;;  %v1673_v62 = vld [vmem:[%s6925_s5 + $0x38] sm:$0xff] }
 0x223   : > { %1699 = vperm.xlu1 %4037, %v1669_v32   ;;  %3738 = vmatpush1.bf16.msra.mxu0 %v3737_v0  ;;  %v880_v24 = vsel %vm859_vm4, %v7052_v8, %v4461_v27  ;;  %v883_v3 = vsel %vm859_vm4, %v7053_v21, %v4462_v18  ;;  %v1672_v18 = vld [vmem:[%s6925_s5 + $0x30] sm:$0xff] }
 0x224   : > { %v5933_v17 = vpop.permute.xlu0 %4469  ;;  %v3787_v47 = vpack.c.bf16 %v883_v3, %v880_v24  ;;  %v1331_v27 = vsel %vm1311_vm8, %v4466_v15, %v7000_v11 }
 0x225   : > { %v4475_v48 = vpop.permute.xlu1 %4474  ;;  %v6999_v60 = vunpack.i.h.bf16 %v5933_v17  ;;  %v4471_v32 = vunpack.i.l.bf16 %v5933_v17 }
 0x226   : > { %v4477_v45 = vunpack.i.h.bf16 %v4475_v48  ;;  %v4476_v43 = vunpack.i.l.bf16 %v4475_v48  ;;  %1704 = vperm.xlu0 %4036, %v1670_v38   ;;  %3788 = vmatprep.subr.bf16.mxu1 %v3787_v47 }
 0x227   : > { %1709 = vperm.xlu1 %4037, %v1671_v26   ;;  %3790 = vmatpush3.bf16.msra.mxu1 %v7054_v34  ;;  %v1334_v0 = vsel %vm1311_vm8, %v4471_v32, %v6999_v60 }
 0x228   : > { %v1330_v38 = vsel %vm1311_vm8, %v4476_v43, %v4466_v15  ;;  %v1333_v8 = vsel %vm1311_vm8, %v4477_v45, %v4471_v32  ;;  %v4480_v24 = vpop.permute.xlu0 %4479  ;;  %v3739_v10 = vpack.c.bf16 %v1334_v0, %v1331_v27  ;;  %v1674_v15 = vld [vmem:[%s6925_s5 + $0x40] sm:$0xff]  ;;  %v7055_v32 = vunpack.i.h.bf16 %v5382_v35  ;;  %v1675_v0 = vld [vmem:[%s6925_s5 + $0x48] sm:$0xff] }
 0x229   : > { %v5957_v21 = vpop.permute.xlu1 %4484  ;;  %v4482_v3 = vunpack.i.h.bf16 %v4480_v24  ;;  %v4481_v26 = vunpack.i.l.bf16 %v4480_v24  ;;  %v3741_v47 = vpack.c.bf16 %v1333_v8, %v1330_v38  ;;  %v7056_v43 = vunpack.i.h.bf16 %v5386_v41  ;;  %v1676_v41 = vld [vmem:[%s6925_s5 + $0x50] sm:$0xff] }
 0x22a   : > { %1714 = vperm.xlu0 %4036, %v1672_v18   ;;  %3740 = vmatprep.subr.bf16.mxu0 %v3739_v10  ;;  %v6998_v48 = vunpack.i.h.bf16 %v5957_v21  ;;  %v4486_v34 = vunpack.i.l.bf16 %v5957_v21 }
 0x22b   : > { %1719 = vperm.xlu1 %4037, %v1673_v62   ;;  %3742 = vmatpush1.bf16.msra.mxu0 %v3741_v47  ;;  %v975_v45 = vsel %vm972_vm5, %v7055_v32, %v4481_v26  ;;  %v978_v27 = vsel %vm972_vm5, %v7056_v43, %v4482_v3  ;;  %v1677_v32 = vld [vmem:[%s6925_s5 + $0x58] sm:$0xff] }
 0x22c   : > { %v5970_v18 = vpop.permute.xlu0 %4489  ;;  %v3791_v38 = vpack.c.bf16 %v978_v27, %v975_v45  ;;  %v1426_v3 = vsel %vm1424_vm9, %v4486_v34, %v6998_v48  ;;  %v7057_v45 = vunpack.i.h.bf16 %v5200_v33  ;;  %v7058_v27 = vunpack.i.h.bf16 %v5208_v39  ;;  %v1678_v33 = vld [vmem:[%s6925_s5 + $0x60] sm:$0xff] }
 0x22d   : > { %v4495_v8 = vpop.permute.xlu1 %4494  ;;  %v7001_v24 = vunpack.i.h.bf16 %v5970_v18  ;;  %v4491_v62 = vunpack.i.l.bf16 %v5970_v18 }
 0x22e   : > { %v4497_v35 = vunpack.i.h.bf16 %v4495_v8  ;;  %v4496_v10 = vunpack.i.l.bf16 %v4495_v8  ;;  %1724 = vperm.xlu0 %4036, %v1674_v15   ;;  %3792 = vmatprep.subr.bf16.mxu1 %v3791_v38 }
 0x22f   : > { %1729 = vperm.xlu1 %4037, %v1675_v0   ;;  %v1429_v26 = vsel %vm1424_vm9, %v4491_v62, %v7001_v24 }
 0x230   : > { %v4500_v47 = vpop.permute.xlu0 %4499  ;;  %v3743_v15 = vpack.c.bf16 %v1429_v26, %v1426_v3  ;;  %v749_v43 = vsel %vm746_vm3, %v7057_v45, %v4496_v10  ;;  %v752_v0 = vsel %vm746_vm3, %v7058_v27, %v4497_v35  ;;  %v1679_v35 = vld [vmem:[%s6925_s5 + $0x68] sm:$0xff] }
 0x231   : > { %v4505_v38 = vpop.permute.xlu1 %4504  ;;  %v4502_v8 = vunpack.i.h.bf16 %v4500_v47  ;;  %v4501_v48 = vunpack.i.l.bf16 %v4500_v47  ;;  %v3793_v60 = vpack.c.bf16 %v752_v0, %v749_v43 }
 0x232   : > { %v4507_v11 = vunpack.i.h.bf16 %v4505_v38  ;;  %v4506_v24 = vunpack.i.l.bf16 %v4505_v38  ;;  %1734 = vperm.xlu0 %4036, %v1676_v41   ;;  %3744 = vmatprep.subr.bf16.mxu0 %v3743_v15  ;;  %v7059_v41 = vunpack.i.h.bf16 %v5402_v61 }
 0x233   : > { %v1425_v28 = vsel %vm1424_vm9, %v4501_v48, %v4486_v34  ;;  %v1428_v3 = vsel %vm1424_vm9, %v4502_v8, %v4491_v62  ;;  %1739 = vperm.xlu1 %4037, %v1677_v32   ;;  %3794 = vmatpush3.bf16.msra.mxu1 %v3793_v60  ;;  %v7060_v48 = vunpack.i.h.bf16 %v5412_v58  ;;  %v1680_v58 = vld [vmem:[%s6925_s5 + $0x70] sm:$0xff] }
 0x234   : > { %v6000_v39 = vpop.permute.xlu0 %4509  ;;  %v3745_v10 = vpack.c.bf16 %v1428_v3, %v1425_v28  ;;  %v981_v26 = vsel %vm972_vm5, %v7059_v41, %v4506_v24 }
 0x235   : > { %v984_v34 = vsel %vm972_vm5, %v7060_v48, %v4507_v11  ;;  %v6011_v60 = vpop.permute.xlu1 %4514  ;;  %v4512_v62 = vunpack.i.h.bf16 %v6000_v39  ;;  %v4511_v47 = vunpack.i.l.bf16 %v6000_v39  ;;  %v1681_v11 = vld [vmem:[%s6925_s5 + $0x78] sm:$0xff] }
 0x236   : > { %v3795_v32 = vpack.c.bf16 %v984_v34, %v981_v26  ;;  %v4517_v15 = vunpack.i.h.bf16 %v6011_v60  ;;  %v4516_v45 = vunpack.i.l.bf16 %v6011_v60  ;;  %1744 = vperm.xlu0 %4036, %v1678_v33   ;;  %3746 = vmatpush1.bf16.msra.mxu0 %v3745_v10  ;;  %v7061_v33 = vunpack.i.h.bf16 %v5222_v53 }
 0x237   : > { %1749 = vperm.xlu1 %4037, %v1679_v35   ;;  %v1432_v61 = vsel %vm1424_vm9, %v4511_v47, %v4512_v62  ;;  %v7062_v10 = vunpack.i.h.bf16 %v5232_v1  ;;  %v7063_v1 = vunpack.i.h.bf16 %v5426_v6 }
 0x238   : > { %3796 = vmatprep.subr.bf16.mxu1 %v3795_v32  ;;  %v4520_v28 = vpop.permute.xlu0 %4519  ;;  %v1435_v24 = vsel %vm1424_vm9, %v4516_v45, %v4517_v15 }
 0x239   : > { %v4525_v43 = vpop.permute.xlu1 %4524  ;;  %v4522_v27 = vunpack.i.h.bf16 %v4520_v28  ;;  %v4521_v0 = vunpack.i.l.bf16 %v4520_v28  ;;  %v3747_v38 = vpack.c.bf16 %v1435_v24, %v1432_v61 }
 0x23a   : > { %v4527_v8 = vunpack.i.h.bf16 %v4525_v43  ;;  %v4526_v3 = vunpack.i.l.bf16 %v4525_v43  ;;  %1754 = vperm.xlu0 %4036, %v1680_v58  }
 0x23b   : > { %1759 = vperm.xlu1 %4037, %v1681_v11   ;;  %3748 = vmatprep.subr.bf16.mxu0 %v3747_v38  ;;  %v755_v35 = vsel %vm746_vm3, %v7061_v33, %v4521_v0  ;;  %v758_v41 = vsel %vm746_vm3, %v7062_v10, %v4522_v27 }
 0x23c   : > { %v1431_v26 = vsel %vm1424_vm9, %v4526_v3, %v4511_v47  ;;  %v1434_v48 = vsel %vm1424_vm9, %v4527_v8, %v4516_v45  ;;  %v4530_v34 = vpop.permute.xlu0 %4529  ;;  %v3797_v32 = vpack.c.bf16 %v758_v41, %v755_v35  ;;  %v7064_v47 = vunpack.i.h.bf16 %v5430_v54 }
 0x23d   : > { %v3749_v61 = vpack.c.bf16 %v1434_v48, %v1431_v26  ;;  %v6037_v28 = vpop.permute.xlu1 %4534  ;;  %v4532_v58 = vunpack.i.h.bf16 %v4530_v34  ;;  %v4531_v11 = vunpack.i.l.bf16 %v4530_v34  ;;  %v7065_v26 = vunpack.i.h.bf16 %v5248_v22 }
 0x23e   : > { %3798 = vmatpush3.bf16.msra.mxu1 %v3797_v32  ;;  %v4537_v53 = vunpack.i.h.bf16 %v6037_v28  ;;  %v4536_v24 = vunpack.i.l.bf16 %v6037_v28  ;;  %v7066_v34 = vunpack.i.h.bf16 %v5256_v46 }
 0x23f   : > { %3750 = vmatpush1.bf16.msra.mxu0 %v3749_v61  ;;  %v987_v43 = vsel %vm972_vm5, %v7063_v1, %v4531_v11  ;;  %v990_v45 = vsel %vm972_vm5, %v7064_v47, %v4532_v58 }
 0x240   : > { %v6047_v27 = vpop.permute.xlu0 %4539  ;;  %v3799_v0 = vpack.c.bf16 %v990_v45, %v987_v43  ;;  %v1438_v6 = vsel %vm1424_vm9, %v4536_v24, %v4537_v53 }
 0x241   : > { %v4545_v38 = vpop.permute.xlu1 %4544  ;;  %v4542_v8 = vunpack.i.h.bf16 %v6047_v27  ;;  %v4541_v3 = vunpack.i.l.bf16 %v6047_v27 }
 0x242   : > { %v4547_v33 = vunpack.i.h.bf16 %v4545_v38  ;;  %v4546_v35 = vunpack.i.l.bf16 %v4545_v38  ;;  %3800 = vmatprep.subr.bf16.mxu1 %v3799_v0 }
 0x243   : > { %v1441_v54 = vsel %vm1424_vm9, %v4541_v3, %v4542_v8 }
 0x244   : > { %v4550_v10 = vpop.permute.xlu0 %4549  ;;  %v3751_v41 = vpack.c.bf16 %v1441_v54, %v1438_v6  ;;  %v761_v48 = vsel %vm746_vm3, %v7065_v26, %v4546_v35  ;;  %v764_v32 = vsel %vm746_vm3, %v7066_v34, %v4547_v33  ;;  %v7067_v35 = vunpack.i.h.bf16 %v5446_v40 }
 0x245   : > { %v4555_v61 = vpop.permute.xlu1 %4554  ;;  %v4552_v58 = vunpack.i.h.bf16 %v4550_v10  ;;  %v4551_v11 = vunpack.i.l.bf16 %v4550_v10  ;;  %v3801_v1 = vpack.c.bf16 %v764_v32, %v761_v48  ;;  %v7068_v33 = vunpack.i.h.bf16 %v5456_v59 }
 0x246   : > { %v4557_v43 = vunpack.i.h.bf16 %v4555_v61  ;;  %v4556_v47 = vunpack.i.l.bf16 %v4555_v61  ;;  %3752 = vmatprep.subr.bf16.mxu0 %v3751_v41 }
 0x247   : > { %v1437_v45 = vsel %vm1424_vm9, %v4551_v11, %v4536_v24  ;;  %v1440_v0 = vsel %vm1424_vm9, %v4552_v58, %v4541_v3  ;;  %3802 = vmatpush3.bf16.msra.mxu1 %v3801_v1 }
 0x248   : > { %v3753_v38 = vpack.c.bf16 %v1440_v0, %v1437_v45  ;;  %v6065_v22 = vpop.permute.xlu0 %4559  ;;  %v993_v46 = vsel %vm972_vm5, %v7067_v35, %v4556_v47  ;;  %v996_v6 = vsel %vm972_vm5, %v7068_v33, %v4557_v43  ;;  %v7069_v43 = vld [vmem:[#allocation8_spill] sm:$0xff]  ;;  %v7071_v0 = vld [vmem:[#allocation9_spill] sm:$0xff] }
 0x249   : > { %v6073_v54 = vpop.permute.xlu1 %4564  ;;  %v4562_v10 = vunpack.i.h.bf16 %v6065_v22  ;;  %v4561_v24 = vunpack.i.l.bf16 %v6065_v22  ;;  %v3803_v41 = vpack.c.bf16 %v996_v6, %v993_v46  ;;  %v7070_v47 = vunpack.i.h.bf16 %v7069_v43  ;;  %v7075_v43 = vld [vmem:[#allocation10_spill] sm:$0xff] }
 0x24a   : > { %v7003_v3 = vunpack.i.h.bf16 %v6073_v54  ;;  %v4566_v26 = vunpack.i.l.bf16 %v6073_v54  ;;  %3754 = vmatpush1.bf16.msra.mxu0 %v3753_v38  ;;  %v7072_v38 = vunpack.i.h.bf16 %v7071_v0 }
 0x24b   : > { %3804 = vmatprep.subr.bf16.mxu1 %v3803_v41  ;;  %v1444_v40 = vsel %vm1424_vm9, %v4561_v24, %v4562_v10 }
 0x24c   : > { %v4570_v59 = vpop.permute.xlu0 %4569  ;;  %v1447_v48 = vsel %vm1424_vm9, %v4566_v26, %v7003_v3 }
 0x24d   : > { %v4575_v34 = vpop.permute.xlu1 %4574  ;;  %v4572_v32 = vunpack.i.h.bf16 %v4570_v59  ;;  %v4571_v61 = vunpack.i.l.bf16 %v4570_v59  ;;  %v3755_v58 = vpack.c.bf16 %v1447_v48, %v1444_v40 }
 0x24e   : > { %v4577_v11 = vunpack.i.h.bf16 %v4575_v34  ;;  %v4576_v1 = vunpack.i.l.bf16 %v4575_v34 }
 0x24f   : > { %3756 = vmatprep.subr.bf16.mxu0 %v3755_v58  ;;  %v767_v45 = vsel %vm746_vm3, %v7070_v47, %v4571_v61  ;;  %v770_v35 = vsel %vm746_vm3, %v7072_v38, %v4572_v32  ;;  %v6096_v61 = vld [vmem:[%s6924_s4 + $0x10] sm:$0xff]  ;;  %v7073_v32 = vld [vmem:[#allocation11_spill] sm:$0xff]  ;;  %v7076_v47 = vunpack.i.h.bf16 %v7075_v43 }
 0x250   : > { %v1443_v46 = vsel %vm1424_vm9, %v4576_v1, %v4561_v24  ;;  %v1446_v33 = vsel %vm1424_vm9, %v4577_v11, %v4566_v26  ;;  %v4580_v6 = vpop.permute.xlu0 %4579  ;;  %v3805_v41 = vpack.c.bf16 %v770_v35, %v767_v45  ;;  %v7074_v11 = vunpack.i.h.bf16 %v7073_v32  ;;  %v7081_v32 = vld [vmem:[#allocation14_spill] sm:$0xff]  ;;  %v7082_v43 = vld [vmem:[#allocation15_spill] sm:$0xff] }
 0x251   : > { %v3757_v3 = vpack.c.bf16 %v1446_v33, %v1443_v46  ;;  %v4585_v59 = vpop.permute.xlu1 %4584  ;;  %v4582_v40 = vunpack.i.h.bf16 %v4580_v6  ;;  %v4581_v48 = vunpack.i.l.bf16 %v4580_v6  ;;  %v6121_v6 = vld [vmem:[%s6924_s4 + $0x38] sm:$0xff] }
 0x252   : > { %v4587_v34 = vunpack.i.h.bf16 %v4585_v59  ;;  %v4586_v58 = vunpack.i.l.bf16 %v4585_v59  ;;  %3806 = vmatpush3.bf16.msra.mxu1 %v3805_v41 }
 0x253   : > { %3758 = vmatpush1.bf16.msra.mxu0 %v3757_v3  ;;  %v1314_v24 = vsel %vm1311_vm8, %v4407_v4, %v4581_v48  ;;  %v1317_v26 = vsel %vm1311_vm8, %v4412_v49, %v4582_v40  ;;  %v7077_v49 = vld [vmem:[#allocation12_spill] sm:$0xff]  ;;  %v7078_v40 = vld [vmem:[#allocation13_spill] sm:$0xff] }
 0x254   : > { %v1091_v1 = vsel %vm1085_vm6, %v7074_v11, %v4587_v34  ;;  %v1088_v3 = vsel %vm1085_vm6, %v7076_v47, %v4586_v58  ;;  %v4590_v45 = vpop.permute.xlu0 %4589  ;;  %v3807_v0 = vpack.c.bf16 %v1317_v26, %v1314_v24  ;;  %v7079_v48 = vunpack.i.h.bf16 %v7078_v40 }
 0x255   : > { %v3809_v4 = vpack.c.bf16 %v1091_v1, %v1088_v3  ;;  %v4595_v38 = vpop.permute.xlu1 %4594  ;;  %v4592_v13 = vunpack.i.h.bf16 %v4590_v45  ;;  %v4591_v35 = vunpack.i.l.bf16 %v4590_v45  ;;  %2359 = vmatmul.mubr.f32.vlgmr.msra.gmra.mrb[0].mxu1 %v7077_v49  ;;  %v7080_v58 = vunpack.i.h.bf16 %v5511_v44  ;;  %v6147_v44 = vld [vmem:[%s6924_s4 + $0x60] sm:$0xff]  ;;  %v7086_v49 = vld [vmem:[#allocation16_spill] sm:$0xff] }
 0x256   : > { %v4597_v46 = vunpack.i.h.bf16 %v4595_v38  ;;  %v4596_v33 = vunpack.i.l.bf16 %v4595_v38  ;;  %2037 = vmatmul.mubr.f32.vlgmr.msra.gmra.mrb[0].mxu0 %v6096_v61  ;;  %3808 = vmatprep.subr.bf16.mxu1 %v3807_v0  ;;  %v7083_v0 = vunpack.i.h.bf16 %v5894_v7  ;;  %v7084_v38 = vld [vmem:[#allocation17_spill] sm:$0xff] }
 0x257   : > { %3810 = vmatpush3.bf16.msra.mxu1 %v3809_v4  ;;  %2042 = vmatprep.mubr.f32.mxu0 %v6113_v36  ;;  %v1320_v41 = vsel %vm1311_vm8, %v4427_v57, %v4591_v35  ;;  %v1323_v59 = vsel %vm1311_vm8, %v4432_v63, %v4592_v13  ;;  %v7085_v13 = vunpack.i.h.bf16 %v7084_v38 }
 0x258   : > { %v1094_v34 = vsel %vm1085_vm6, %v7079_v48, %v4596_v33  ;;  %v1097_v24 = vsel %vm1085_vm6, %v7080_v58, %v4597_v46  ;;  %v4600_v26 = vpop.permute.xlu0 %4599  ;;  %2363 = vmatprep.mubr.f32.mxu1 %v7081_v32  ;;  %v3811_v11 = vpack.c.bf16 %v1323_v59, %v1320_v41  ;;  %v7087_v46 = vunpack.i.h.bf16 %v7086_v49  ;;  %v4750_v59 = vld [vmem:[%s6924_s4 + $0x58] sm:$0xff]  ;;  %v6175_v32 = vld [vmem:[%s6924_s4 + $0x88] sm:$0xff] }
 0x259   : > { %v3813_v57 = vpack.c.bf16 %v1097_v24, %v1094_v34  ;;  %v4605_v5 = vpop.permute.xlu1 %4604  ;;  %v4602_v63 = vunpack.i.h.bf16 %v4600_v26  ;;  %v4601_v1 = vunpack.i.l.bf16 %v4600_v26  ;;  %2364 = vmatmul.mubr.f32.gmra.mrb[2].mxu1 %v7082_v43  ;;  %v7088_v58 = vld [vmem:[#allocation18_spill] sm:$0xff] }
 0x25a   : > { %v4607_v47 = vunpack.i.h.bf16 %v4605_v5  ;;  %v4606_v3 = vunpack.i.l.bf16 %v4605_v5  ;;  %2043 = vmatmul.mubr.f32.gmra.mrb[2].mxu0 %v6121_v6  ;;  %3812 = vmatprep.subr.bf16.mxu1 %v3811_v11  ;;  %v7089_v11 = vunpack.i.h.bf16 %v5920_v42  ;;  %v7090_v5 = vunpack.i.h.bf16 %v5933_v17  ;;  %v6193_v42 = vld [vmem:[%s6924_s4 + $0xb8] sm:$0xff] }
 0x25b   : > { %3814 = vmatpush3.bf16.msra.mxu1 %v3813_v57  ;;  %2048 = vmatprep.mubr.f32.mxu0 %v6139_v14  ;;  %v1326_v45 = vsel %vm1311_vm8, %v4447_v9, %v4601_v1  ;;  %v1329_v4 = vsel %vm1311_vm8, %v7083_v0, %v4602_v63  ;;  %v6167_v9 = vld [vmem:[%s6924_s4 + $0x90] sm:$0xff] }
 0x25c   : > { %v1103_v35 = vsel %vm1085_vm6, %v7085_v13, %v4607_v47  ;;  %v1100_v33 = vsel %vm1085_vm6, %v7087_v46, %v4606_v3  ;;  %v4610_v41 = vpop.permute.xlu0 %4609  ;;  %2368 = vmatprep.mubr.f32.mxu1 %v4750_v59  ;;  %v3815_v23 = vpack.c.bf16 %v1329_v4, %v1326_v45  ;;  %v7091_v1 = vld [vmem:[#allocation20_spill] sm:$0xff]  ;;  %v7093_v3 = vunpack.i.h.bf16 %v5585_v51  ;;  %v7094_v4 = vld [vmem:[#allocation19_spill] sm:$0xff]  ;;  %v7095_v46 = vld [vmem:[#allocation21_spill] sm:$0xff] }
 0x25d   : > { %v3817_v7 = vpack.c.bf16 %v1103_v35, %v1100_v33  ;;  %v4615_v40 = vpop.permute.xlu1 %4614  ;;  %v4612_v48 = vunpack.i.h.bf16 %v4610_v41  ;;  %v4611_v34 = vunpack.i.l.bf16 %v4610_v41  ;;  %2369 = vmatmul.mubr.f32.gmra.mrb[4].mxu1 %v7088_v58  ;;  %v7092_v43 = vunpack.i.h.bf16 %v7091_v1  ;;  %v6205_v41 = vld [vmem:[%s6924_s4 + $0xb0] sm:$0xff] }
 0x25e   : > { %v4617_v24 = vunpack.i.h.bf16 %v4615_v40  ;;  %v4616_v26 = vunpack.i.l.bf16 %v4615_v40  ;;  %2049 = vmatmul.mubr.f32.gmra.mrb[4].mxu0 %v6147_v44  ;;  %3816 = vmatprep.subr.bf16.mxu1 %v3815_v23  ;;  %v7096_v59 = vunpack.i.h.bf16 %v5957_v21  ;;  %v7098_v1 = vunpack.i.h.bf16 %v5615_v56 }
 0x25f   : > { %3818 = vmatpush3.bf16.msra.mxu1 %v3817_v7  ;;  %2054 = vmatprep.mubr.f32.mxu0 %v6167_v9  ;;  %v1332_v57 = vsel %vm1311_vm8, %v7089_v11, %v4611_v34  ;;  %v1335_v63 = vsel %vm1311_vm8, %v7090_v5, %v4612_v48  ;;  %v7097_v7 = vunpack.i.h.bf16 %v5970_v18  ;;  %v4751_v34 = vld [vmem:[%s6924_s4 + $0xa8] sm:$0xff]  ;;  %v6232_v5 = vld [vmem:[%s6924_s4 + $0xd8] sm:$0xff] }
 0x260   : > { %v1106_v47 = vsel %vm1085_vm6, %v7092_v43, %v4616_v26  ;;  %v1109_v45 = vsel %vm1085_vm6, %v7093_v3, %v4617_v24  ;;  %v4620_v0 = vpop.permute.xlu0 %4619  ;;  %2373 = vmatprep.mubr.f32.mxu1 %v7094_v4  ;;  %v3819_v38 = vpack.c.bf16 %v1335_v63, %v1332_v57  ;;  %v6221_v24 = vld [vmem:[%s6924_s4 + $0xe0] sm:$0xff]  ;;  %v6249_v4 = vld [vmem:[%s6924_s4 + $0x108] sm:$0xff] }
 0x261   : > { %v3821_v17 = vpack.c.bf16 %v1109_v45, %v1106_v47  ;;  %v6195_v13 = vpop.permute.xlu1 %4624  ;;  %v4622_v35 = vunpack.i.h.bf16 %v4620_v0  ;;  %v4621_v49 = vunpack.i.l.bf16 %v4620_v0  ;;  %2374 = vmatmul.mubr.f32.gmra.mrb[6].mxu1 %v7095_v46  ;;  %v7099_v47 = vld [vmem:[#allocation22_spill] sm:$0xff]  ;;  %v7101_v46 = vld [vmem:[#allocation23_spill] sm:$0xff] }
 0x262   : > { %2055 = vmatmul.mubr.f32.gmra.mrb[6].mxu0 %v6175_v32  ;;  %3820 = vmatprep.subr.bf16.mxu1 %v3819_v38  ;;  %v4627_v51 = vunpack.i.h.bf16 %v6195_v13  ;;  %v4626_v33 = vunpack.i.l.bf16 %v6195_v13  ;;  %v7100_v3 = vunpack.i.h.bf16 %v7099_v47 }
 0x263   : > { %3822 = vmatpush3.bf16.msra.mxu1 %v3821_v17  ;;  %2060 = vmatprep.mubr.f32.mxu0 %v6193_v42  ;;  %v1427_v23 = vsel %vm1424_vm9, %v7096_v59, %v4621_v49  ;;  %v1430_v40 = vsel %vm1424_vm9, %v7097_v7, %v4622_v35 }
 0x264   : > { %v6213_v48 = vpop.permute.xlu0 %4629  ;;  %2378 = vmatprep.mubr.f32.mxu1 %v4751_v34  ;;  %v3823_v58 = vpack.c.bf16 %v1430_v40, %v1427_v23  ;;  %v1539_v63 = vsel %vm1537_vm10, %v4626_v33, %v4627_v51  ;;  %v6259_v40 = vld [vmem:[%s6924_s4 + $0x100] sm:$0xff] }
 0x265   : > { %v4635_v21 = vpop.permute.xlu1 %4634  ;;  %v4632_v26 = vunpack.i.h.bf16 %v6213_v48  ;;  %v4631_v18 = vunpack.i.l.bf16 %v6213_v48  ;;  %2379 = vmatmul.mubr.f32.gmra.mrb[8].mxu1 %v5593_v16  ;;  %v6490_v48 = vld [vmem:[%s6924_s4 + $0x268] sm:$0xff] }
 0x266   : > { %v4637_v11 = vunpack.i.h.bf16 %v4635_v21  ;;  %v4636_v57 = vunpack.i.l.bf16 %v4635_v21  ;;  %2061 = vmatmul.mubr.f32.gmra.mrb[8].mxu0 %v6205_v41  ;;  %3824 = vmatprep.subr.bf16.mxu1 %v3823_v58  ;;  %v4752_v21 = vld [vmem:[%s6924_s4 + $0xf8] sm:$0xff] }
 0x267   : > { %2066 = vmatprep.mubr.f32.mxu0 %v6221_v24  ;;  %2383 = vmatprep.mubr.f32.mxu1 %v5600_v31  ;;  %v1542_v16 = vsel %vm1537_vm10, %v4631_v18, %v4632_v26 }
 0x268   : > { %v1204_v43 = vsel %vm1198_vm7, %v7098_v1, %v4637_v11  ;;  %v1201_v31 = vsel %vm1198_vm7, %v7100_v3, %v4636_v57  ;;  %v4640_v45 = vpop.permute.xlu0 %4639  ;;  %v3759_v0 = vpack.c.bf16 %v1542_v16, %v1539_v63  ;;  %v7102_v16 = vld [vmem:[#allocation25_spill] sm:$0xff] }
 0x269   : > { %v3825_v38 = vpack.c.bf16 %v1204_v43, %v1201_v31  ;;  %v4645_v17 = vpop.permute.xlu1 %4644  ;;  %v4642_v35 = vunpack.i.h.bf16 %v4640_v45  ;;  %v4641_v49 = vunpack.i.l.bf16 %v4640_v45  ;;  %2384 = vmatmul.mubr.f32.gmra.mrb[10].mxu1 %v7101_v46  ;;  %v6280_v43 = vld [vmem:[%s6924_s4 + $0x130] sm:$0xff]  ;;  %v6301_v45 = vld [vmem:[%s6924_s4 + $0x158] sm:$0xff] }
 0x26a   : > { %v4647_v56 = vunpack.i.h.bf16 %v4645_v17  ;;  %v4646_v59 = vunpack.i.l.bf16 %v4645_v17  ;;  %2067 = vmatmul.mubr.f32.gmra.mrb[10].mxu0 %v6232_v5  ;;  %3760 = vmatprep.subr.bf16.mxu0 %v3759_v0 }
 0x26b   : > { %v1538_v23 = vsel %vm1537_vm10, %v4641_v49, %v4626_v33  ;;  %v1541_v7 = vsel %vm1537_vm10, %v4642_v35, %v4631_v18  ;;  %3826 = vmatpush3.bf16.msra.mxu1 %v3825_v38  ;;  %2072 = vmatprep.mubr.f32.mxu0 %v6249_v4 }
 0x26c   : > { %v3761_v34 = vpack.c.bf16 %v1541_v7, %v1538_v23  ;;  %v6261_v58 = vpop.permute.xlu0 %4649  ;;  %2388 = vmatprep.mubr.f32.mxu1 %v4752_v21  ;;  %v1433_v33 = vsel %vm1424_vm9, %v4512_v62, %v4646_v59  ;;  %v1436_v18 = vsel %vm1424_vm9, %v4517_v15, %v4647_v56  ;;  %v7103_v62 = vld [vmem:[#allocation26_spill] sm:$0xff]  ;;  %v6289_v15 = vld [vmem:[%s6924_s4 + $0x128] sm:$0xff] }
 0x26d   : > { %v6272_v11 = vpop.permute.xlu1 %4654  ;;  %v4652_v57 = vunpack.i.h.bf16 %v6261_v58  ;;  %v4651_v63 = vunpack.i.l.bf16 %v6261_v58  ;;  %2389 = vmatmul.mubr.f32.gmra.mrb[12].mxu1 %v7102_v16  ;;  %v3827_v1 = vpack.c.bf16 %v1436_v18, %v1433_v33  ;;  %v7104_v56 = vld [vmem:[#allocation28_spill] sm:$0xff] }
 0x26e   : > { %v4657_v39 = vunpack.i.h.bf16 %v6272_v11  ;;  %v4656_v60 = vunpack.i.l.bf16 %v6272_v11  ;;  %2073 = vmatmul.mubr.f32.gmra.mrb[12].mxu0 %v6259_v40  ;;  %2393 = vmatprep.mubr.f32.mxu1 %v7103_v62  ;;  %v7105_v59 = vld [vmem:[#allocation24_spill] sm:$0xff] }
 0x26f   : > { %3762 = vmatpush1.bf16.msra.mxu0 %v3761_v34  ;;  %3828 = vmatprep.subr.bf16.mxu1 %v3827_v1  ;;  %v1545_v47 = vsel %vm1537_vm10, %v4651_v63, %v4652_v57  ;;  %v7106_v23 = vunpack.i.h.bf16 %v7105_v59  ;;  %v7107_v34 = vld [vmem:[#allocation27_spill] sm:$0xff]  ;;  %v4753_v59 = vld [vmem:[%s6924_s4 + $0x170] sm:$0xff] }
 0x270   : > { %v4660_v3 = vpop.permute.xlu0 %4659  ;;  %2078 = vmatprep.mubr.f32.mxu0 %v6280_v43  ;;  %v1548_v31 = vsel %vm1537_vm10, %v4656_v60, %v4657_v39  ;;  %v7108_v21 = vunpack.i.h.bf16 %v7107_v34  ;;  %v7110_v34 = vld [vmem:[#allocation32_spill] sm:$0xff] }
 0x271   : > { %v4665_v0 = vpop.permute.xlu1 %4664  ;;  %v4662_v38 = vunpack.i.h.bf16 %v4660_v3  ;;  %v4661_v17 = vunpack.i.l.bf16 %v4660_v3  ;;  %2394 = vmatmul.mubr.f32.gmra.mrb[14].mxu1 %v5670_v20  ;;  %v3763_v35 = vpack.c.bf16 %v1548_v31, %v1545_v47  ;;  %v6316_v20 = vld [vmem:[%s6924_s4 + $0x150] sm:$0xff]  ;;  %v6323_v47 = vld [vmem:[%s6924_s4 + $0x180] sm:$0xff] }
 0x272   : > { %v4667_v49 = vunpack.i.h.bf16 %v4665_v0  ;;  %v4666_v46 = vunpack.i.l.bf16 %v4665_v0  ;;  %2079 = vmatmul.mubr.f32.gmra.mrb[14].mxu0 %v6289_v15  ;;  %2398 = vmatprep.mubr.f32.mxu1 %v7104_v56 }
 0x273   : > { %v1207_v7 = vsel %vm1198_vm7, %v7106_v23, %v4661_v17  ;;  %v1210_v33 = vsel %vm1198_vm7, %v7108_v21, %v4662_v38  ;;  %3764 = vmatprep.subr.bf16.mxu0 %v3763_v35  ;;  %2084 = vmatprep.mubr.f32.mxu0 %v6301_v45  ;;  %v7109_v17 = vld [vmem:[#allocation31_spill] sm:$0xff]  ;;  %v6335_v35 = vld [vmem:[%s6924_s4 + $0x178] sm:$0xff] }
 0x274   : > { %v1544_v18 = vsel %vm1537_vm10, %v4666_v46, %v4651_v63  ;;  %v1547_v16 = vsel %vm1537_vm10, %v4667_v49, %v4656_v60  ;;  %v3829_v1 = vpack.c.bf16 %v1210_v33, %v1207_v7  ;;  %v4670_v62 = vpop.permute.xlu0 %4669  ;;  %v6351_v7 = vld [vmem:[%s6924_s4 + $0x1a8] sm:$0xff]  ;;  %v4754_v33 = vld [vmem:[%s6924_s4 + $0x198] sm:$0xff] }
 0x275   : > { %v3765_v3 = vpack.c.bf16 %v1547_v16, %v1544_v18  ;;  %v6325_v31 = vpop.permute.xlu1 %4674  ;;  %v4672_v0 = vunpack.i.h.bf16 %v4670_v62  ;;  %v4671_v38 = vunpack.i.l.bf16 %v4670_v62  ;;  %2399 = vmatmul.mubr.f32.gmra.mrb[16].mxu1 %v7109_v17  ;;  %v6364_v18 = vld [vmem:[%s6924_s4 + $0x1a0] sm:$0xff] }
 0x276   : > { %2085 = vmatmul.mubr.f32.gmra.mrb[16].mxu0 %v6316_v20  ;;  %3830 = vmatpush3.bf16.msra.mxu1 %v3829_v1  ;;  %v7004_v63 = vunpack.i.h.bf16 %v6325_v31  ;;  %v4676_v60 = vunpack.i.l.bf16 %v6325_v31  ;;  %v7111_v62 = vld [vmem:[#allocation30_spill] sm:$0xff]  ;;  %v7118_v11 = vunpack.i.h.bf16 %v6325_v31 }
 0x277   : > { %3766 = vmatpush1.bf16.msra.mxu0 %v3765_v3  ;;  %2090 = vmatprep.mubr.f32.mxu0 %v6323_v47  ;;  %v1439_v49 = vsel %vm1424_vm9, %v4537_v53, %v4671_v38  ;;  %v1442_v46 = vsel %vm1424_vm9, %v4542_v8, %v4672_v0  ;;  %v7112_v3 = vunpack.i.h.bf16 %v7111_v62  ;;  %v7113_v38 = vld [vmem:[#allocation29_spill] sm:$0xff] }
 0x278   : > { %v6343_v56 = vpop.permute.xlu0 %4679  ;;  %2403 = vmatprep.mubr.f32.mxu1 %v4753_v59  ;;  %v3831_v23 = vpack.c.bf16 %v1442_v46, %v1439_v49  ;;  %v1551_v16 = vsel %vm1537_vm10, %v4676_v60, %v7004_v63  ;;  %v7114_v17 = vunpack.i.h.bf16 %v7113_v38  ;;  %v4755_v62 = vld [vmem:[%s6924_s4 + $0x190] sm:$0xff] }
 0x279   : > { %v4685_v28 = vpop.permute.xlu1 %4684  ;;  %v4682_v53 = vunpack.i.h.bf16 %v6343_v56  ;;  %v4681_v27 = vunpack.i.l.bf16 %v6343_v56  ;;  %2404 = vmatmul.mubr.f32.gmra.mrb[18].mxu1 %v7110_v34 }
 0x27a   : > { %v4687_v8 = vunpack.i.h.bf16 %v4685_v28  ;;  %v4686_v21 = vunpack.i.l.bf16 %v4685_v28  ;;  %2091 = vmatmul.mubr.f32.gmra.mrb[18].mxu0 %v6335_v35  ;;  %3832 = vmatprep.subr.bf16.mxu1 %v3831_v23  ;;  %v6381_v23 = vld [vmem:[%s6924_s4 + $0x1d0] sm:$0xff] }
 0x27b   : > { %2096 = vmatprep.mubr.f32.mxu0 %v6351_v7  ;;  %2408 = vmatprep.mubr.f32.mxu1 %v4754_v33  ;;  %v1554_v1 = vsel %vm1537_vm10, %v4681_v27, %v4682_v53 }
 0x27c   : > { %v1216_v0 = vsel %vm1198_vm7, %v7112_v3, %v4687_v8  ;;  %v1213_v49 = vsel %vm1198_vm7, %v7114_v17, %v4686_v21  ;;  %v4690_v46 = vpop.permute.xlu0 %4689  ;;  %v3767_v59 = vpack.c.bf16 %v1554_v1, %v1551_v16  ;;  %v6393_v1 = vld [vmem:[%s6924_s4 + $0x1c8] sm:$0xff]  ;;  %v4756_v17 = vld [vmem:[%s6924_s4 + $0x1c0] sm:$0xff] }
 0x27d   : > { %v3833_v28 = vpack.c.bf16 %v1216_v0, %v1213_v49  ;;  %v4695_v34 = vpop.permute.xlu1 %4694  ;;  %v4692_v33 = vunpack.i.h.bf16 %v4690_v46  ;;  %v4691_v63 = vunpack.i.l.bf16 %v4690_v46  ;;  %2409 = vmatmul.mubr.f32.gmra.mrb[20].mxu1 %v4755_v62 }
 0x27e   : > { %v4697_v8 = vunpack.i.h.bf16 %v4695_v34  ;;  %v4696_v3 = vunpack.i.l.bf16 %v4695_v34  ;;  %2097 = vmatmul.mubr.f32.gmra.mrb[20].mxu0 %v6364_v18  ;;  %3768 = vmatprep.subr.bf16.mxu0 %v3767_v59  ;;  %v6414_v34 = vld [vmem:[%s6924_s4 + $0x1f8] sm:$0xff] }
 0x27f   : > { %v1550_v21 = vsel %vm1537_vm10, %v4691_v63, %v4676_v60  ;;  %v1553_v16 = vsel %vm1537_vm10, %v4692_v33, %v4681_v27  ;;  %3834 = vmatpush3.bf16.msra.mxu1 %v3833_v28  ;;  %2102 = vmatprep.mubr.f32.mxu0 %v6381_v23  ;;  %v7115_v60 = vunpack.i.h.bf16 %v6073_v54 }
 0x280   : > { %v3769_v0 = vpack.c.bf16 %v1553_v16, %v1550_v21  ;;  %v6395_v38 = vpop.permute.xlu0 %4699  ;;  %2413 = vmatprep.mubr.f32.mxu1 %v4756_v17  ;;  %v1445_v63 = vsel %vm1424_vm9, %v4562_v10, %v4696_v3  ;;  %v4757_v10 = vld [vmem:[%s6924_s4 + $0x1e8] sm:$0xff]  ;;  %v6437_v3 = vld [vmem:[%s6924_s4 + $0x220] sm:$0xff] }
 0x281   : > { %v1448_v27 = vsel %vm1424_vm9, %v7115_v60, %v4697_v8  ;;  %v6406_v49 = vpop.permute.xlu1 %4704  ;;  %v4702_v46 = vunpack.i.h.bf16 %v6395_v38  ;;  %v4701_v59 = vunpack.i.l.bf16 %v6395_v38  ;;  %2414 = vmatmul.mubr.f32.gmra.mrb[22].mxu1 %v5764_v2  ;;  %v6425_v2 = vld [vmem:[%s6924_s4 + $0x1f0] sm:$0xff]  ;;  %v6546_v38 = vld [vmem:[%s6924_s4 + $0x98] sm:$0xff] }
 0x282   : > { %v3835_v28 = vpack.c.bf16 %v1448_v27, %v1445_v63  ;;  %v7005_v22 = vunpack.i.h.bf16 %v6406_v49  ;;  %v4706_v54 = vunpack.i.l.bf16 %v6406_v49  ;;  %2103 = vmatmul.mubr.f32.gmra.mrb[22].mxu0 %v6393_v1  ;;  %2418 = vmatprep.mubr.f32.mxu1 %v4757_v10  ;;  %v7116_v27 = vunpack.i.h.bf16 %v5718_v52 }
 0x283   : > { %3770 = vmatpush1.bf16.msra.mxu0 %v3769_v0  ;;  %v1557_v33 = vsel %vm1537_vm10, %v4701_v59, %v4702_v46  ;;  %2108 = vmatprep.mubr.f32.mxu0 %v6414_v34  ;;  %v7117_v10 = vunpack.i.h.bf16 %v5736_v19  ;;  %v6459_v19 = vld [vmem:[%s6924_s4 + $0x248] sm:$0xff]  ;;  %v7119_v56 = vunpack.i.h.bf16 %v6406_v49 }
 0x284   : > { %3836 = vmatprep.subr.bf16.mxu1 %v3835_v28  ;;  %v4710_v62 = vpop.permute.xlu0 %4709  ;;  %v1560_v8 = vsel %vm1537_vm10, %v4706_v54, %v7005_v22 }
 0x285   : > { %v4715_v21 = vpop.permute.xlu1 %4714  ;;  %v4712_v16 = vunpack.i.h.bf16 %v4710_v62  ;;  %v4711_v0 = vunpack.i.l.bf16 %v4710_v62  ;;  %2419 = vmatmul.mubr.f32.gmra.mrb[24].mxu1 %v5789_v55  ;;  %v3771_v17 = vpack.c.bf16 %v1560_v8, %v1557_v33  ;;  %v6452_v55 = vld [vmem:[%s6924_s4 + $0x218] sm:$0xff] }
 0x286   : > { %v4717_v63 = vunpack.i.h.bf16 %v4715_v21  ;;  %v4716_v60 = vunpack.i.l.bf16 %v4715_v21  ;;  %2109 = vmatmul.mubr.f32.gmra.mrb[24].mxu0 %v6425_v2  ;;  %2423 = vmatprep.mubr.f32.mxu1 %v5796_v30 }
 0x287   : > { %v1219_v28 = vsel %vm1198_vm7, %v7116_v27, %v4711_v0  ;;  %v1222_v22 = vsel %vm1198_vm7, %v7117_v10, %v4712_v16  ;;  %3772 = vmatprep.subr.bf16.mxu0 %v3771_v17  ;;  %2114 = vmatprep.mubr.f32.mxu0 %v6437_v3  ;;  %v4777_v10 = vmov 0.0  }
 0x288   : > { %v1556_v33 = vsel %vm1537_vm10, %v4716_v60, %v4701_v59  ;;  %v1559_v30 = vsel %vm1537_vm10, %v4717_v63, %v4706_v54  ;;  %v3837_v62 = vpack.c.bf16 %v1222_v22, %v1219_v28  ;;  %v4720_v52 = vpop.permute.xlu0 %4719  ;;  %v6467_v59 = vld [vmem:[%s6924_s4 + $0x240] sm:$0xff]  ;;  %v4758_v54 = vld [vmem:[%s6924_s4 + $0x238] sm:$0xff]  ;;  %v6481_v63 = vld [vmem:[%s6924_s4 + $0x270] sm:$0xff] }
 0x289   : > { %v3773_v8 = vpack.c.bf16 %v1559_v30, %v1556_v33  ;;  %v4722_v21 = vunpack.i.h.bf16 %v4720_v52  ;;  %v4721_v16 = vunpack.i.l.bf16 %v4720_v52  ;;  %2424 = vmatmul.mubr.f32.gmra.mrb[26].mxu1 %v5818_v37  ;;  %v4725_v0 = vpop.permute.xlu1 %4724 }
 0x28a   : > { %2115 = vmatmul.mubr.f32.gmra.mrb[26].mxu0 %v6452_v55  ;;  %3838 = vmatpush3.bf16.msra.mxu1 %v3837_v62  ;;  %v4727_v13 = vunpack.i.h.bf16 %v4725_v0  ;;  %v4726_v60 = vunpack.i.l.bf16 %v4725_v0 }
 0x28b   : > { %3774 = vmatpush1.bf16.msra.mxu0 %v3773_v8  ;;  %2120 = vmatprep.mubr.f32.mxu0 %v6459_v19  ;;  %v1540_v22 = vsel %vm1537_vm10, %v4627_v51, %v4721_v16  ;;  %v1543_v37 = vsel %vm1537_vm10, %v4632_v26, %v4722_v21 }
 0x28c   : > { %2428 = vmatprep.mubr.f32.mxu1 %v4758_v54  ;;  %v3839_v17 = vpack.c.bf16 %v1543_v37, %v1540_v22  ;;  %v4730_v51 = vpop.permute.xlu0 %4729 }
 0x28d   : > { %2429 = vmatmul.mubr.f32.gmra.mrb[28].mxu1 %v5843_v12  ;;  %v4732_v26 = vunpack.i.h.bf16 %v4730_v51  ;;  %v4731_v27 = vunpack.i.l.bf16 %v4730_v51  ;;  %v1546_v12 = vsel %vm1537_vm10, %v4652_v57, %v4726_v60  ;;  %v4735_v28 = vpop.permute.xlu1 %4734 }
 0x28e   : > { %2121 = vmatmul.mubr.f32.gmra.mrb[28].mxu0 %v6467_v59  ;;  %3840 = vmatprep.subr.bf16.mxu1 %v3839_v17  ;;  %v4737_v58 = vunpack.i.h.bf16 %v4735_v28  ;;  %v4736_v33 = vunpack.i.l.bf16 %v4735_v28 }
 0x28f   : > { %2126 = vmatprep.mubr.f32.mxu0 %v6481_v63  ;;  %2433 = vmatprep.mubr.f32.mxu1 %v5850_v50  ;;  %v1549_v50 = vsel %vm1537_vm10, %v4657_v39, %v4727_v13  ;;  %v1552_v57 = vsel %vm1537_vm10, %v7118_v11, %v4731_v27  ;;  %v1555_v39 = vsel %vm1537_vm10, %v4682_v53, %v4732_v26 }
 0x290   : > { %v3847_v30 = vpack.c.bf16 %v1555_v39, %v1552_v57  ;;  %v1558_v31 = vsel %vm1537_vm10, %v4702_v46, %v4736_v33  ;;  %v1561_v53 = vsel %vm1537_vm10, %v7119_v56, %v4737_v58 }
 0x291   : > { %2434 = vmatmul.mubr.f32.gmra.mrb[30].mxu1 %v5872_v25  ;;  %v6505_v25 = vld [vmem:[%s6924_s4 + $0x20] sm:$0xff] }
 0x292   : > { %2127 = vmatmul.mubr.f32.gmra.mrb[30].mxu0 %v6490_v48  ;;  %2503 = vmatprep.mubr.f32.mxu1 %v5879_v29  ;;  %v3843_v29 = vpack.c.bf16 %v1549_v50, %v1546_v12 }
 0x293   : > { %2197 = vmatprep.mubr.f32.mxu0 %v4777_v10 }
 0x295   : > { %2504 = vmatmul.mubr.f32.vlgmr.msra.gmra.mrb[32].mxu1 %v6096_v61  ;;  %v6520_v61 = vld [vmem:[%s6924_s4 + $0x48] sm:$0xff] }
 0x296   : > { %3316 = vmatmul.mubr.msk.f32.vlgmr.msra.gmra.mrb[0].mxu0 %vm1762_vm11, %v6505_v25  ;;  %3842 = vmatpush3.bf16.msra.mxu1 %v3839_v17 }
 0x297   : > { %3844 = vmatprep.subr.bf16.mxu1 %v3843_v29  ;;  %2203 = vmatprep.mubr.f32.mxu0 %v4777_v10 }
 0x298   : > { %2508 = vmatprep.mubr.f32.mxu1 %v6113_v36  ;;  %v6536_v36 = vld [vmem:[%s6924_s4 + $0x70] sm:$0xff] }
 0x299   : > { %2509 = vmatmul.mubr.f32.gmra.mrb[34].mxu1 %v6121_v6  ;;  %v3851_v6 = vpack.c.bf16 %v1561_v53, %v1558_v31 }
 0x29a   : > { %3317 = vmatmul.mubr.msk.f32.gmra.mrb[2].mxu0 %vm1762_vm11, %v6520_v61  ;;  %3846 = vmatpush3.bf16.msra.mxu1 %v3843_v29 }
 0x29b   : > { %3848 = vmatprep.subr.bf16.mxu1 %v3847_v30  ;;  %2209 = vmatprep.mubr.f32.mxu0 %v4777_v10 }
 0x29c   : > { %2513 = vmatprep.mubr.f32.mxu1 %v6139_v14  ;;  %v1610_v14 = vld [vmem:[%s6924_s4 + $0xc0] sm:$0xff] }
 0x29d   : > { %2514 = vmatmul.mubr.f32.gmra.mrb[36].mxu1 %v6147_v44  ;;  %v1615_v44 = vld [vmem:[%s6924_s4 + $0xe8] sm:$0xff] }
 0x29e   : > { %3318 = vmatmul.mubr.msk.f32.gmra.mrb[4].mxu0 %vm1762_vm11, %v6536_v36  ;;  %3850 = vmatpush3.bf16.msra.mxu1 %v3847_v30 }
 0x29f   : > { %3852 = vmatprep.subr.bf16.mxu1 %v3851_v6  ;;  %2215 = vmatprep.mubr.f32.mxu0 %v4777_v10 }
 0x2a0   : > { %2518 = vmatprep.mubr.f32.mxu1 %v6167_v9  ;;  %v1620_v9 = vld [vmem:[%s6924_s4 + $0x110] sm:$0xff] }
 0x2a1   : > { %2519 = vmatmul.mubr.f32.gmra.mrb[38].mxu1 %v6175_v32  ;;  %v1625_v32 = vld [vmem:[%s6924_s4 + $0x138] sm:$0xff] }
 0x2a2   : > { %3319 = vmatmul.mubr.msk.f32.gmra.mrb[6].mxu0 %vm1762_vm11, %v6546_v38  ;;  %3854 = vmatpush3.bf16.msra.mxu1 %v3851_v6 }
 0x2a3   : > { %2221 = vmatprep.mubr.f32.mxu0 %v4777_v10  ;;  %2523 = vmatprep.mubr.f32.mxu1 %v6193_v42  ;;  %v1630_v42 = vld [vmem:[%s6924_s4 + $0x160] sm:$0xff] }
 0x2a5   : > { %2524 = vmatmul.mubr.f32.gmra.mrb[40].mxu1 %v6205_v41  ;;  %v1635_v41 = vld [vmem:[%s6924_s4 + $0x188] sm:$0xff] }
 0x2a6   : > { %3320 = vmatmul.mubr.msk.f32.gmra.mrb[8].mxu0 %vm1762_vm11, %v1610_v14  ;;  %2528 = vmatprep.mubr.f32.mxu1 %v6221_v24  ;;  %v1640_v24 = vld [vmem:[%s6924_s4 + $0x1b0] sm:$0xff] }
 0x2a7   : > { %2227 = vmatprep.mubr.f32.mxu0 %v4777_v10 }
 0x2a9   : > { %2529 = vmatmul.mubr.f32.gmra.mrb[42].mxu1 %v6232_v5  ;;  %v1645_v5 = vld [vmem:[%s6924_s4 + $0x1d8] sm:$0xff] }
 0x2aa   : > { %3321 = vmatmul.mubr.msk.f32.gmra.mrb[10].mxu0 %vm1762_vm11, %v1615_v44  ;;  %2533 = vmatprep.mubr.f32.mxu1 %v6249_v4  ;;  %v1650_v4 = vld [vmem:[%s6924_s4 + $0x200] sm:$0xff] }
 0x2ab   : > { %2233 = vmatprep.mubr.f32.mxu0 %v4777_v10 }
 0x2ad   : > { %2534 = vmatmul.mubr.f32.gmra.mrb[44].mxu1 %v6259_v40  ;;  %v1655_v40 = vld [vmem:[%s6924_s4 + $0x228] sm:$0xff] }
 0x2ae   : > { %3322 = vmatmul.mubr.msk.f32.gmra.mrb[12].mxu0 %vm1762_vm11, %v1620_v9  ;;  %2538 = vmatprep.mubr.f32.mxu1 %v6280_v43  ;;  %v1660_v43 = vld [vmem:[%s6924_s4 + $0x250] sm:$0xff] }
 0x2af   : > { %2239 = vmatprep.mubr.f32.mxu0 %v4777_v10 }
 0x2b1   : > { %2539 = vmatmul.mubr.f32.gmra.mrb[46].mxu1 %v6289_v15  ;;  %v1665_v15 = vld [vmem:[%s6924_s4 + $0x278] sm:$0xff] }
 0x2b2   : > { %3323 = vmatmul.mubr.msk.f32.gmra.mrb[14].mxu0 %vm1762_vm11, %v1625_v32  ;;  %2543 = vmatprep.mubr.f32.mxu1 %v6301_v45 }
 0x2b3   : > { %2245 = vmatprep.mubr.f32.mxu0 %v4777_v10 }
 0x2b5   : > { %2544 = vmatmul.mubr.f32.gmra.mrb[48].mxu1 %v6316_v20 }
 0x2b6   : > { %3324 = vmatmul.mubr.msk.f32.gmra.mrb[16].mxu0 %vm1762_vm11, %v1630_v42  ;;  %2548 = vmatprep.mubr.f32.mxu1 %v6323_v47 }
 0x2b7   : > { %2251 = vmatprep.mubr.f32.mxu0 %v4777_v10 }
 0x2b9   : > { %2549 = vmatmul.mubr.f32.gmra.mrb[50].mxu1 %v6335_v35 }
 0x2ba   : > { %3325 = vmatmul.mubr.msk.f32.gmra.mrb[18].mxu0 %vm1762_vm11, %v1635_v41  ;;  %2553 = vmatprep.mubr.f32.mxu1 %v6351_v7 }
 0x2bb   : > { %2257 = vmatprep.mubr.f32.mxu0 %v4777_v10 }
 0x2bd   : > { %2554 = vmatmul.mubr.f32.gmra.mrb[52].mxu1 %v6364_v18 }
 0x2be   : > { %3326 = vmatmul.mubr.msk.f32.gmra.mrb[20].mxu0 %vm1762_vm11, %v1640_v24  ;;  %2558 = vmatprep.mubr.f32.mxu1 %v6381_v23 }
 0x2bf   : > { %2263 = vmatprep.mubr.f32.mxu0 %v4777_v10 }
 0x2c1   : > { %2559 = vmatmul.mubr.f32.gmra.mrb[54].mxu1 %v6393_v1 }
 0x2c2   : > { %3327 = vmatmul.mubr.msk.f32.gmra.mrb[22].mxu0 %vm1762_vm11, %v1645_v5  ;;  %2563 = vmatprep.mubr.f32.mxu1 %v6414_v34 }
 0x2c3   : > { %2269 = vmatprep.mubr.f32.mxu0 %v4777_v10 }
 0x2c5   : > { %2564 = vmatmul.mubr.f32.gmra.mrb[56].mxu1 %v6425_v2 }
 0x2c6   : > { %3328 = vmatmul.mubr.msk.f32.gmra.mrb[24].mxu0 %vm1762_vm11, %v1650_v4  ;;  %2568 = vmatprep.mubr.f32.mxu1 %v6437_v3 }
 0x2c7   : > { %2275 = vmatprep.mubr.f32.mxu0 %v4777_v10 }
 0x2c9   : > { %2569 = vmatmul.mubr.f32.gmra.mrb[58].mxu1 %v6452_v55 }
 0x2ca   : > { %3329 = vmatmul.mubr.msk.f32.gmra.mrb[26].mxu0 %vm1762_vm11, %v1655_v40  ;;  %2573 = vmatprep.mubr.f32.mxu1 %v6459_v19 }
 0x2cb   : > { %2281 = vmatprep.mubr.f32.mxu0 %v4777_v10 }
 0x2cd   : > { %2574 = vmatmul.mubr.f32.gmra.mrb[60].mxu1 %v6467_v59 }
 0x2ce   : > { %3330 = vmatmul.mubr.msk.f32.gmra.mrb[28].mxu0 %vm1762_vm11, %v1660_v43  ;;  %2578 = vmatprep.mubr.f32.mxu1 %v6481_v63 }
 0x2cf   : > { %2287 = vmatprep.mubr.f32.mxu0 %v4777_v10 }
 0x2d1   : > { %2579 = vmatmul.mubr.f32.gmra.mrb[62].mxu1 %v6490_v48 }
 0x2d2   : > { %3331 = vmatmul.mubr.msk.f32.gmra.mrb[30].mxu0 %vm1762_vm11, %v1665_v15  ;;  %3568 = vmatprep.mubr.msk.f32.mxu1 %vm1762_vm11, %v6505_v25 }
 0x2d5   : > { %3569 = vmatmul.mubr.msk.f32.vlgmr.msra.gmra.mrb[64].mxu1 %vm1762_vm11, %v6520_v61 }
 0x2d6   : > { %3571 = vmatprep.mubr.msk.f32.mxu1 %vm1762_vm11, %v6536_v36  ;;  %v1685_v36 = vpop.permute.xlu0 %1684 }
 0x2d9   : > { %3572 = vmatmul.mubr.msk.f32.gmra.mrb[66].mxu1 %vm1762_vm11, %v6546_v38 }
 0x2da   : > { %3574 = vmatprep.mubr.msk.f32.mxu1 %vm1762_vm11, %v1610_v14 }
 0x2dd   : > { %3575 = vmatmul.mubr.msk.f32.gmra.mrb[68].mxu1 %vm1762_vm11, %v1615_v44 }
 0x2de   : > { %3577 = vmatprep.mubr.msk.f32.mxu1 %vm1762_vm11, %v1620_v9 }
 0x2e1   : > { %3578 = vmatmul.mubr.msk.f32.gmra.mrb[70].mxu1 %vm1762_vm11, %v1625_v32 }
 0x2e2   : > { %3580 = vmatprep.mubr.msk.f32.mxu1 %vm1762_vm11, %v1630_v42 }
 0x2e5   : > { %3581 = vmatmul.mubr.msk.f32.gmra.mrb[72].mxu1 %vm1762_vm11, %v1635_v41 }
 0x2e6   : > { %3583 = vmatprep.mubr.msk.f32.mxu1 %vm1762_vm11, %v1640_v24  ;;  %v1690_v24 = vpop.permute.xlu1 %1689 }
 0x2e9   : > { %3584 = vmatmul.mubr.msk.f32.gmra.mrb[74].mxu1 %vm1762_vm11, %v1645_v5 }
 0x2ea   : > { %3586 = vmatprep.mubr.msk.f32.mxu1 %vm1762_vm11, %v1650_v4 }
 0x2ed   : > { %3587 = vmatmul.mubr.msk.f32.gmra.mrb[76].mxu1 %vm1762_vm11, %v1655_v40 }
 0x2ee   : > { %3589 = vmatprep.mubr.msk.f32.mxu1 %vm1762_vm11, %v1660_v43 }
 0x2f1   : > { %3590 = vmatmul.mubr.msk.f32.gmra.mrb[78].mxu1 %vm1762_vm11, %v1665_v15 }
 0x2f2   : > { %2891 = vmatprep.mubr.f32.mxu1 %v4777_v10 }
 0x328   : > { %v3382_v45 = vpop.f32.mrb[0].mxu1 }
 0x329   : > { %v3383_v20 = vpop.f32.mrb[1].mxu1 }
 0x32a   : > { %v3384_v47 = vadd.f32 %v3383_v20, %v3382_v45 }
 0x32c   : > { %v3385_v35 = vpop.f32.mrb[2].mxu1  ;;  %v2361_v44 = vadd.f32 %v3384_v47, %v1685_v36 }
 0x32d   : > { %v3386_v7 = vpop.f32.mrb[3].mxu1 }
 0x32e   : > { %v3387_v18 = vadd.f32 %v3386_v7, %v3385_v35 }
 0x330   : > { %v3388_v23 = vpop.f32.mrb[4].mxu1  ;;  %v2366_v15 = vadd.f32 %v3387_v18, %v1690_v24 }
 0x331   : > { %v3389_v1 = vpop.f32.mrb[5].mxu1 }
 0x332   : > { %v6657_v49 = vadd.f32 %v3389_v1, %v3388_v23 }
 0x334   : > { %v3391_v46 = vpop.f32.mrb[6].mxu1 }
 0x335   : > { %v3392_v34 = vpop.f32.mrb[7].mxu1 }
 0x336   : > { %v6659_v2 = vadd.f32 %v3392_v34, %v3391_v46  ;;  %v1695_v46 = vpop.permute.xlu0 %1694 }
 0x338   : > { %v3394_v3 = vpop.f32.mrb[8].mxu1 }
 0x339   : > { %v3395_v55 = vpop.f32.mrb[9].mxu1 }
 0x33a   : > { %v6661_v62 = vadd.f32 %v3395_v55, %v3394_v3  ;;  %v2371_v55 = vadd.f32 %v6657_v49, %v1695_v46 }
 0x33c   : > { %v3397_v52 = vpop.f32.mrb[10].mxu1 }
 0x33d   : > { %v3398_v19 = vpop.f32.mrb[11].mxu1 }
 0x33e   : > { %v6663_v8 = vadd.f32 %v3398_v19, %v3397_v52 }
 0x340   : > { %v3400_v21 = vpop.f32.mrb[12].mxu1 }
 0x341   : > { %v3401_v16 = vpop.f32.mrb[13].mxu1 }
 0x342   : > { %v6665_v0 = vadd.f32 %v3401_v16, %v3400_v21  ;;  %v7120_v16 = vld [vmem:[#allocation5_spill] sm:$0xff] }
 0x344   : > { %v3403_v59 = vpop.f32.mrb[14].mxu1 }
 0x345   : > { %v3404_v22 = vpop.f32.mrb[15].mxu1 }
 0x346   : > { %v6667_v37 = vadd.f32 %v3404_v22, %v3403_v59 }
 0x348   : > { %v3406_v54 = vpop.f32.mrb[16].mxu1 }
 0x349   : > { %v3407_v17 = vpop.f32.mrb[17].mxu1 }
 0x34a   : > { %v6669_v63 = vadd.f32 %v3407_v17, %v3406_v54 }
 0x34c   : > { %v3409_v13 = vpop.f32.mrb[18].mxu1 }
 0x34d   : > { %v3410_v60 = vpop.f32.mrb[19].mxu1 }
 0x34e   : > { %v6671_v51 = vadd.f32 %v3410_v60, %v3409_v13  ;;  %v7121_v13 = vld [vmem:[#allocation6_spill] sm:$0xff] }
 0x350   : > { %v3412_v48 = vpop.f32.mrb[20].mxu1 }
 0x351   : > { %v3413_v26 = vpop.f32.mrb[21].mxu1 }
 0x352   : > { %v6673_v27 = vadd.f32 %v3413_v26, %v3412_v48 }
 0x354   : > { %v3415_v12 = vpop.f32.mrb[22].mxu1 }
 0x355   : > { %v3416_v50 = vpop.f32.mrb[23].mxu1 }
 0x356   : > { %v6675_v28 = vadd.f32 %v3416_v50, %v3415_v12  ;;  %v1700_v12 = vpop.permute.xlu1 %1699 }
 0x358   : > { %v3418_v25 = vpop.f32.mrb[24].mxu1 }
 0x359   : > { %v3419_v29 = vpop.f32.mrb[25].mxu1 }
 0x35a   : > { %v6677_v58 = vadd.f32 %v3419_v29, %v3418_v25 }
 0x35c   : > { %v3421_v33 = vpop.f32.mrb[26].mxu1 }
 0x35d   : > { %v3422_v11 = vpop.f32.mrb[27].mxu1 }
 0x35e   : > { %v6679_v57 = vadd.f32 %v3422_v11, %v3421_v33 }
 0x360   : > { %v3424_v39 = vpop.f32.mrb[28].mxu1 }
 0x361   : > { %v3425_v61 = vpop.f32.mrb[29].mxu1 }
 0x362   : > { %v6681_v30 = vadd.f32 %v3425_v61, %v3424_v39  ;;  %v2376_v39 = vadd.f32 %v6659_v2, %v1700_v12 }
 0x364   : > { %v3427_v31 = vpop.f32.mrb[30].mxu1 }
 0x365   : > { %v3428_v56 = vpop.f32.mrb[31].mxu1 }
 0x366   : > { %v6683_v53 = vadd.f32 %v3428_v56, %v3427_v31 }
 0x368   : > { %v3462_v6 = vpop.f32.mrb[32].mxu1 }
 0x369   : > { %v2199_v38 = vpop.f32.mrb[0].mxu0  ;;  %v3463_v14 = vpop.f32.mrb[33].mxu1 }
 0x36a   : > { %v3919_v9 = vadd.f32 %v2199_v38, %v1685_v36  ;;  %v2201_v32 = vpop.f32.mrb[1].mxu0  ;;  %v3464_v42 = vadd.f32 %v3463_v14, %v3462_v6  ;;  %v1705_v14 = vpop.permute.xlu0 %1704 }
 0x36b   : > { %v3920_v41 = vadd.f32 %v2201_v32, %v1685_v36 }
 0x36c   : > { %v3465_v5 = vpop.f32.mrb[34].mxu1  ;;  %v6685_v4 = vadd.f32 %v3464_v42, %v2361_v44  ;;  %v2729_v45 = vmax.f32 %v3919_v9, 0.0  ;;  %v2381_v42 = vadd.f32 %v6661_v62, %v1705_v14 }
 0x36d   : > { %v2205_v40 = vpop.f32.mrb[2].mxu0  ;;  %v3466_v43 = vpop.f32.mrb[35].mxu1  ;;  %v2730_v23 = vmax.f32 %v3920_v41, 0.0 }
 0x36e   : > { %v3921_v20 = vadd.f32 %v2205_v40, %v1690_v24  ;;  %v2207_v35 = vpop.f32.mrb[3].mxu0  ;;  %v3467_v7 = vadd.f32 %v3466_v43, %v3465_v5  ;;  %v2777_v59 = vmul.f32 %v2729_v45, %v7120_v16 }
 0x36f   : > { %v3922_v1 = vadd.f32 %v2207_v35, %v1690_v24  ;;  %v2778_v60 = vmul.f32 %v2730_v23, %v7121_v13  ;;  %v1710_v23 = vpop.permute.xlu1 %1709 }
 0x370   : > { %v2732_v34 = vmax.f32 %v3921_v20, 0.0  ;;  %v3468_v47 = vpop.f32.mrb[36].mxu1  ;;  %v6687_v3 = vadd.f32 %v3467_v7, %v2366_v15 }
 0x371   : > { %v2733_v52 = vmax.f32 %v3922_v1, 0.0  ;;  %v2211_v19 = vpop.f32.mrb[4].mxu0  ;;  %v3469_v21 = vpop.f32.mrb[37].mxu1 }
 0x372   : > { %v2780_v18 = vmul.f32 %v2732_v34, %v7120_v16  ;;  %v3923_v22 = vadd.f32 %v2211_v19, %v1695_v46  ;;  %v2213_v54 = vpop.f32.mrb[5].mxu0  ;;  %v3470_v17 = vadd.f32 %v3469_v21, %v3468_v47 }
 0x373   : > { %v2781_v48 = vmul.f32 %v2733_v52, %v7121_v13  ;;  %v3924_v26 = vadd.f32 %v2213_v54, %v1695_v46  ;;  %v2386_v52 = vadd.f32 %v6663_v8, %v1710_v23 }
 0x374   : > { %v3857_v50 = vpack.c.bf16 %v2780_v18, %v2777_v59  ;;  %v3471_v25 = vpop.f32.mrb[38].mxu1  ;;  %v6694_v29 = vadd.f32 %v3470_v17, %v2371_v55  ;;  %v2735_v61 = vmax.f32 %v3923_v22, 0.0  ;;  %v1715_v17 = vpop.permute.xlu0 %1714 }
 0x375   : > { %v2217_v49 = vpop.f32.mrb[6].mxu0  ;;  %v3472_v33 = vpop.f32.mrb[39].mxu1  ;;  %v3855_v11 = vpack.c.bf16 %v2781_v48, %v2778_v60  ;;  %v2736_v6 = vmax.f32 %v3924_v26, 0.0 }
 0x376   : > { %v3925_v31 = vadd.f32 %v2217_v49, %v1700_v12  ;;  %v2219_v56 = vpop.f32.mrb[7].mxu0  ;;  %v3473_v36 = vadd.f32 %v3472_v33, %v3471_v25  ;;  %v2783_v2 = vmul.f32 %v2735_v61, %v7120_v16 }
 0x377   : > { %v3926_v38 = vadd.f32 %v2219_v56, %v1700_v12  ;;  %3856 = vmatprep.subr.bf16.mxu1 %v3855_v11  ;;  %v2784_v20 = vmul.f32 %v2736_v6, %v7121_v13  ;;  %v2391_v12 = vadd.f32 %v6665_v0, %v1715_v17  ;;  %v1720_v6 = vpop.permute.xlu1 %1719 }
 0x378   : > { %v2738_v44 = vmax.f32 %v3925_v31, 0.0  ;;  %3858 = vmatpush1.bf16.msra.mxu1 %v3857_v50  ;;  %v3474_v9 = vpop.f32.mrb[40].mxu1  ;;  %v6697_v32 = vadd.f32 %v3473_v36, %v2376_v39 }
 0x379   : > { %v2739_v41 = vmax.f32 %v3926_v38, 0.0  ;;  %v2223_v24 = vpop.f32.mrb[8].mxu0  ;;  %v3475_v5 = vpop.f32.mrb[41].mxu1 }
 0x37a   : > { %v2786_v40 = vmul.f32 %v2738_v44, %v7120_v16  ;;  %v3927_v43 = vadd.f32 %v2223_v24, %v1705_v14  ;;  %v2225_v15 = vpop.f32.mrb[9].mxu0  ;;  %v3476_v45 = vadd.f32 %v3475_v5, %v3474_v9 }
 0x37b   : > { %v2787_v35 = vmul.f32 %v2739_v41, %v7121_v13  ;;  %v3928_v7 = vadd.f32 %v2225_v15, %v1705_v14  ;;  %v2396_v41 = vadd.f32 %v6667_v37, %v1720_v6 }
 0x37c   : > { %v3861_v1 = vpack.c.bf16 %v2786_v40, %v2783_v2  ;;  %v3477_v46 = vpop.f32.mrb[42].mxu1  ;;  %v6704_v34 = vadd.f32 %v3476_v45, %v2381_v42  ;;  %v2741_v19 = vmax.f32 %v3927_v43, 0.0  ;;  %v1725_v45 = vpop.permute.xlu0 %1724 }
 0x37d   : > { %v2229_v62 = vpop.f32.mrb[10].mxu0  ;;  %v3478_v47 = vpop.f32.mrb[43].mxu1  ;;  %v3859_v55 = vpack.c.bf16 %v2787_v35, %v2784_v20  ;;  %v2742_v22 = vmax.f32 %v3928_v7, 0.0 }
 0x37e   : > { %v3929_v21 = vadd.f32 %v2229_v62, %v1710_v23  ;;  %v2231_v59 = vpop.f32.mrb[11].mxu0  ;;  %v3479_v18 = vadd.f32 %v3478_v47, %v3477_v46  ;;  %v2789_v8 = vmul.f32 %v2741_v19, %v7120_v16 }
 0x37f   : > { %v3930_v54 = vadd.f32 %v2231_v59, %v1710_v23  ;;  %3860 = vmatprep.subr.bf16.mxu1 %v3859_v55  ;;  %v2790_v31 = vmul.f32 %v2742_v22, %v7121_v13  ;;  %v2401_v23 = vadd.f32 %v6669_v63, %v1725_v45  ;;  %v1730_v22 = vpop.permute.xlu1 %1729 }
 0x380   : > { %v2744_v60 = vmax.f32 %v3929_v21, 0.0  ;;  %3862 = vmatpush1.bf16.msra.mxu1 %v3861_v1  ;;  %v3480_v48 = vpop.f32.mrb[44].mxu1  ;;  %v6707_v26 = vadd.f32 %v3479_v18, %v2386_v52 }
 0x381   : > { %v2745_v50 = vmax.f32 %v3930_v54, 0.0  ;;  %v2235_v25 = vpop.f32.mrb[12].mxu0  ;;  %v3481_v49 = vpop.f32.mrb[45].mxu1 }
 0x382   : > { %v2792_v33 = vmul.f32 %v2744_v60, %v7120_v16  ;;  %v3931_v11 = vadd.f32 %v2235_v25, %v1715_v17  ;;  %v2237_v39 = vpop.f32.mrb[13].mxu0  ;;  %v3482_v61 = vadd.f32 %v3481_v49, %v3480_v48 }
 0x383   : > { %v2793_v56 = vmul.f32 %v2745_v50, %v7121_v13  ;;  %v3932_v36 = vadd.f32 %v2237_v39, %v1715_v17  ;;  %v2406_v50 = vadd.f32 %v6671_v51, %v1730_v22 }
 0x384   : > { %v3865_v38 = vpack.c.bf16 %v2792_v33, %v2789_v8  ;;  %v3483_v14 = vpop.f32.mrb[46].mxu1  ;;  %v6714_v44 = vadd.f32 %v3482_v61, %v2391_v12  ;;  %v2747_v24 = vmax.f32 %v3931_v11, 0.0  ;;  %v1735_v61 = vpop.permute.xlu0 %1734 }
 0x385   : > { %v2241_v0 = vpop.f32.mrb[14].mxu0  ;;  %v3484_v9 = vpop.f32.mrb[47].mxu1  ;;  %v3863_v42 = vpack.c.bf16 %v2793_v56, %v2790_v31  ;;  %v2748_v43 = vmax.f32 %v3932_v36, 0.0 }
 0x386   : > { %v3933_v5 = vadd.f32 %v2241_v0, %v1720_v6  ;;  %v2243_v2 = vpop.f32.mrb[15].mxu0  ;;  %v3485_v40 = vadd.f32 %v3484_v9, %v3483_v14  ;;  %v2795_v37 = vmul.f32 %v2747_v24, %v7120_v16 }
 0x387   : > { %v3934_v15 = vadd.f32 %v2243_v2, %v1720_v6  ;;  %3864 = vmatprep.subr.bf16.mxu1 %v3863_v42  ;;  %v2796_v21 = vmul.f32 %v2748_v43, %v7121_v13  ;;  %v2411_v6 = vadd.f32 %v6673_v27, %v1735_v61  ;;  %v1740_v43 = vpop.permute.xlu1 %1739 }
 0x388   : > { %v2750_v20 = vmax.f32 %v3933_v5, 0.0  ;;  %3866 = vmatpush1.bf16.msra.mxu1 %v3865_v38  ;;  %v3486_v35 = vpop.f32.mrb[48].mxu1  ;;  %v6717_v7 = vadd.f32 %v3485_v40, %v2396_v41 }
 0x389   : > { %v2751_v1 = vmax.f32 %v3934_v15, 0.0  ;;  %v2247_v46 = vpop.f32.mrb[16].mxu0  ;;  %v3487_v62 = vpop.f32.mrb[49].mxu1 }
 0x38a   : > { %v2798_v47 = vmul.f32 %v2750_v20, %v7120_v16  ;;  %v3935_v55 = vadd.f32 %v2247_v46, %v1725_v45  ;;  %v2249_v52 = vpop.f32.mrb[17].mxu0  ;;  %v3488_v19 = vadd.f32 %v3487_v62, %v3486_v35 }
 0x38b   : > { %v2799_v59 = vmul.f32 %v2751_v1, %v7121_v13  ;;  %v3936_v18 = vadd.f32 %v2249_v52, %v1725_v45  ;;  %v2416_v1 = vadd.f32 %v6675_v28, %v1740_v43 }
 0x38c   : > { %v3869_v54 = vpack.c.bf16 %v2798_v47, %v2795_v37  ;;  %v3489_v17 = vpop.f32.mrb[50].mxu1  ;;  %v6724_v60 = vadd.f32 %v3488_v19, %v2401_v23  ;;  %v2753_v25 = vmax.f32 %v3935_v55, 0.0  ;;  %v1745_v19 = vpop.permute.xlu0 %1744 }
 0x38d   : > { %v2253_v63 = vpop.f32.mrb[18].mxu0  ;;  %v3490_v48 = vpop.f32.mrb[51].mxu1  ;;  %v3867_v12 = vpack.c.bf16 %v2799_v59, %v2796_v21  ;;  %v2754_v11 = vmax.f32 %v3936_v18, 0.0 }
 0x38e   : > { %v3937_v49 = vadd.f32 %v2253_v63, %v1730_v22  ;;  %v2255_v8 = vpop.f32.mrb[19].mxu0  ;;  %v3491_v33 = vadd.f32 %v3490_v48, %v3489_v17  ;;  %v2801_v51 = vmul.f32 %v2753_v25, %v7120_v16 }
 0x38f   : > { %v3938_v39 = vadd.f32 %v2255_v8, %v1730_v22  ;;  %3868 = vmatprep.subr.bf16.mxu1 %v3867_v12  ;;  %v2802_v5 = vmul.f32 %v2754_v11, %v7121_v13  ;;  %v2421_v22 = vadd.f32 %v6677_v58, %v1745_v19  ;;  %v1750_v11 = vpop.permute.xlu1 %1749 }
 0x390   : > { %v2756_v31 = vmax.f32 %v3937_v49, 0.0  ;;  %3870 = vmatpush1.bf16.msra.mxu1 %v3869_v54  ;;  %v3492_v56 = vpop.f32.mrb[52].mxu1  ;;  %v6727_v36 = vadd.f32 %v3491_v33, %v2406_v50 }
 0x391   : > { %v2757_v38 = vmax.f32 %v3938_v39, 0.0  ;;  %v2259_v14 = vpop.f32.mrb[20].mxu0  ;;  %v3493_v0 = vpop.f32.mrb[53].mxu1 }
 0x392   : > { %v2804_v9 = vmul.f32 %v2756_v31, %v7120_v16  ;;  %v3939_v42 = vadd.f32 %v2259_v14, %v1735_v61  ;;  %v2261_v41 = vpop.f32.mrb[21].mxu0  ;;  %v3494_v24 = vadd.f32 %v3493_v0, %v3492_v56 }
 0x393   : > { %v2805_v2 = vmul.f32 %v2757_v38, %v7121_v13  ;;  %v3940_v40 = vadd.f32 %v2261_v41, %v1735_v61  ;;  %v2426_v38 = vadd.f32 %v6679_v57, %v1750_v11 }
 0x394   : > { %v3873_v15 = vpack.c.bf16 %v2804_v9, %v2801_v51  ;;  %v3495_v45 = vpop.f32.mrb[54].mxu1  ;;  %v6734_v20 = vadd.f32 %v3494_v24, %v2411_v6  ;;  %v2759_v46 = vmax.f32 %v3939_v42, 0.0  ;;  %v1755_v24 = vpop.permute.xlu0 %1754 }
 0x395   : > { %v2265_v27 = vpop.f32.mrb[22].mxu0  ;;  %v3496_v35 = vpop.f32.mrb[55].mxu1  ;;  %v3871_v23 = vpack.c.bf16 %v2805_v2, %v2802_v5  ;;  %v2760_v55 = vmax.f32 %v3940_v40, 0.0 }
 0x396   : > { %v3941_v62 = vadd.f32 %v2265_v27, %v1740_v43  ;;  %v2267_v37 = vpop.f32.mrb[23].mxu0  ;;  %v3497_v47 = vadd.f32 %v3496_v35, %v3495_v45  ;;  %v2807_v28 = vmul.f32 %v2759_v46, %v7120_v16 }
 0x397   : > { %v3942_v52 = vadd.f32 %v2267_v37, %v1740_v43  ;;  %3872 = vmatprep.subr.bf16.mxu1 %v3871_v23  ;;  %v2808_v49 = vmul.f32 %v2760_v55, %v7121_v13  ;;  %v2431_v43 = vadd.f32 %v6681_v30, %v1755_v24  ;;  %v1760_v55 = vpop.permute.xlu1 %1759 }
 0x398   : > { %v2762_v21 = vmax.f32 %v3941_v62, 0.0  ;;  %3874 = vmatpush1.bf16.msra.mxu1 %v3873_v15  ;;  %v3498_v59 = vpop.f32.mrb[56].mxu1  ;;  %v6737_v18 = vadd.f32 %v3497_v47, %v2416_v1 }
 0x399   : > { %v2763_v54 = vmax.f32 %v3942_v52, 0.0  ;;  %v2271_v17 = vpop.f32.mrb[24].mxu0  ;;  %v3499_v63 = vpop.f32.mrb[57].mxu1 }
 0x39a   : > { %v2810_v48 = vmul.f32 %v2762_v21, %v7120_v16  ;;  %v3943_v12 = vadd.f32 %v2271_v17, %v1745_v19  ;;  %v2273_v50 = vpop.f32.mrb[25].mxu0  ;;  %v3500_v25 = vadd.f32 %v3499_v63, %v3498_v59 }
 0x39b   : > { %v2811_v8 = vmul.f32 %v2763_v54, %v7121_v13  ;;  %v3944_v33 = vadd.f32 %v2273_v50, %v1745_v19  ;;  %v2436_v54 = vadd.f32 %v6683_v53, %v1760_v55 }
 0x39c   : > { %v3877_v39 = vpack.c.bf16 %v2810_v48, %v2807_v28  ;;  %v3501_v61 = vpop.f32.mrb[58].mxu1  ;;  %v6744_v31 = vadd.f32 %v3500_v25, %v2421_v22  ;;  %v2765_v14 = vmax.f32 %v3943_v12, 0.0 }
 0x39d   : > { %v2277_v58 = vpop.f32.mrb[26].mxu0  ;;  %v3502_v56 = vpop.f32.mrb[59].mxu1  ;;  %v3875_v6 = vpack.c.bf16 %v2811_v8, %v2808_v49  ;;  %v2766_v42 = vmax.f32 %v3944_v33, 0.0 }
 0x39e   : > { %v3945_v0 = vadd.f32 %v2277_v58, %v1750_v11  ;;  %v2279_v51 = vpop.f32.mrb[27].mxu0  ;;  %v3503_v9 = vadd.f32 %v3502_v56, %v3501_v61  ;;  %v2813_v57 = vmul.f32 %v2765_v14, %v7120_v16 }
 0x39f   : > { %v3946_v41 = vadd.f32 %v2279_v51, %v1750_v11  ;;  %3876 = vmatprep.subr.bf16.mxu1 %v3875_v6  ;;  %v2814_v62 = vmul.f32 %v2766_v42, %v7121_v13 }
 0x3a0   : > { %v2768_v5 = vmax.f32 %v3945_v0, 0.0  ;;  %3878 = vmatpush1.bf16.msra.mxu1 %v3877_v39  ;;  %v3504_v2 = vpop.f32.mrb[60].mxu1  ;;  %v6747_v40 = vadd.f32 %v3503_v9, %v2426_v38  ;;  %v7122_v9 = vld [vmem:[#allocation7_spill] sm:$0xff] }
 0x3a1   : > { %v2769_v15 = vmax.f32 %v3946_v41, 0.0  ;;  %v2283_v45 = vpop.f32.mrb[28].mxu0  ;;  %v3505_v27 = vpop.f32.mrb[61].mxu1 }
 0x3a2   : > { %v2816_v35 = vmul.f32 %v2768_v5, %v7120_v16  ;;  %v3947_v23 = vadd.f32 %v2283_v45, %v1755_v24  ;;  %v2285_v1 = vpop.f32.mrb[29].mxu0  ;;  %v3506_v46 = vadd.f32 %v3505_v27, %v3504_v2  ;;  %v2825_v45 = vld [vmem:[%s6926_s6] sm:$0xff] }
 0x3a3   : > { %v2817_v37 = vmul.f32 %v2769_v15, %v7121_v13  ;;  %v3948_v47 = vadd.f32 %v2285_v1, %v1755_v24 }
 0x3a4   : > { %v3881_v52 = vpack.c.bf16 %v2816_v35, %v2813_v57  ;;  %v3507_v19 = vpop.f32.mrb[62].mxu1  ;;  %v6754_v21 = vadd.f32 %v3506_v46, %v2431_v43  ;;  %v2771_v17 = vmax.f32 %v3947_v23, 0.0 }
 0x3a5   : > { %v2289_v30 = vpop.f32.mrb[30].mxu0  ;;  %v3508_v59 = vpop.f32.mrb[63].mxu1  ;;  %v3879_v22 = vpack.c.bf16 %v2817_v37, %v2814_v62  ;;  %v2772_v12 = vmax.f32 %v3948_v47, 0.0  ;;  %v6780_v47 = vld [vmem:[%s6926_s6 + $0x8] sm:$0x1] }
 0x3a6   : > { %v3949_v63 = vadd.f32 %v2289_v30, %v1760_v55  ;;  %v2291_v28 = vpop.f32.mrb[31].mxu0  ;;  %v3509_v48 = vadd.f32 %v3508_v59, %v3507_v19  ;;  %v2819_v61 = vmul.f32 %v2771_v17, %v7120_v16 }
 0x3a7   : > { %v3950_v50 = vadd.f32 %v2291_v28, %v1760_v55  ;;  %3880 = vmatprep.subr.bf16.mxu1 %v3879_v22  ;;  %v2820_v56 = vmul.f32 %v2772_v12, %v7121_v13 }
 0x3a8   : > { %v2774_v25 = vmax.f32 %v3949_v63, 0.0  ;;  %3882 = vmatpush1.bf16.msra.mxu1 %v3881_v52  ;;  %v3570_v49 = vpop.f32.mrb[64].mxu1  ;;  %v6757_v8 = vadd.f32 %v3509_v48, %v2436_v54 }
 0x3a9   : > { %v2775_v33 = vmax.f32 %v3950_v50, 0.0  ;;  %v2656_v11 = vadd.f32 %v3570_v49, %v6687_v3  ;;  %v2650_v39 = vpop.f32.mrb[65].mxu1 }
 0x3aa   : > { %v2822_v53 = vmul.f32 %v2774_v25, %v7120_v16  ;;  %v2651_v58 = vadd.f32 %v2650_v39, %v6685_v4 }
 0x3ab   : > { %v2823_v6 = vmul.f32 %v2775_v33, %v7121_v13  ;;  %v2734_v38 = vmax.f32 %v2656_v11, 0.0 }
 0x3ac   : > { %v3885_v14 = vpack.c.bf16 %v2822_v53, %v2819_v61  ;;  %v2731_v0 = vmax.f32 %v2651_v58, 0.0  ;;  %v3573_v51 = vpop.f32.mrb[66].mxu1 }
 0x3ad   : > { %v2782_v42 = vmul.f32 %v2734_v38, %v7122_v9  ;;  %v2666_v41 = vadd.f32 %v3573_v51, %v6697_v32  ;;  %v2660_v3 = vpop.f32.mrb[67].mxu1  ;;  %v3883_v24 = vpack.c.bf16 %v2823_v6, %v2820_v56 }
 0x3ae   : > { %v2779_v5 = vmul.f32 %v2731_v0, %v7122_v9  ;;  %v2661_v2 = vadd.f32 %v2660_v3, %v6694_v29 }
 0x3af   : > { %v2740_v43 = vmax.f32 %v2666_v41, 0.0  ;;  %3884 = vmatprep.subr.bf16.mxu1 %v3883_v24 }
 0x3b0   : > { %v2737_v4 = vmax.f32 %v2661_v2, 0.0  ;;  %3886 = vmatpush1.bf16.msra.mxu1 %v3885_v14  ;;  %v3576_v15 = vpop.f32.mrb[68].mxu1  ;;  %v3887_v27 = vpack.c.bf16 %v2782_v42, %v2779_v5 }
 0x3b1   : > { %v2788_v57 = vmul.f32 %v2740_v43, %v7122_v9  ;;  %v2676_v32 = vadd.f32 %v3576_v15, %v6707_v26  ;;  %v2670_v35 = vpop.f32.mrb[69].mxu1 }
 0x3b2   : > { %v2785_v23 = vmul.f32 %v2737_v4, %v7122_v9  ;;  %v2671_v1 = vadd.f32 %v2670_v35, %v6704_v34  ;;  %3888 = vmatprep.subr.bf16.mxu1 %v3887_v27  ;;  %v3179_v35 = vld [vmem:[#allocation2] sm:$0x1] }
 0x3b3   : > { %v2746_v29 = vmax.f32 %v2676_v32, 0.0  ;;  %2892 = vmatmul.mubr.f32.vlgmr.msra.gmra.mrb[80].mxu1 %v2825_v45 }
 0x3b4   : > { %v2743_v46 = vmax.f32 %v2671_v1, 0.0  ;;  %3890 = vmatpush3.bf16.msra.mxu1 %v3887_v27  ;;  %v3579_v62 = vpop.f32.mrb[70].mxu1  ;;  %v3891_v37 = vpack.c.bf16 %v2788_v57, %v2785_v23  ;;  %2897 = vmatprep.mubr.f32.mxu1 %v4777_v10 }
 0x3b5   : > { %v2794_v26 = vmul.f32 %v2746_v29, %v7122_v9  ;;  %v2686_v55 = vadd.f32 %v3579_v62, %v6717_v7  ;;  %v2680_v52 = vpop.f32.mrb[71].mxu1 }
 0x3b6   : > { %v2791_v34 = vmul.f32 %v2743_v46, %v7122_v9  ;;  %v2681_v19 = vadd.f32 %v2680_v52, %v6714_v44  ;;  %3892 = vmatprep.subr.bf16.mxu1 %v3891_v37 }
 0x3b7   : > { %v2752_v30 = vmax.f32 %v2686_v55, 0.0  ;;  %2898 = vmatmul.mubr.f32.gmra.mrb[82].mxu1 %v6780_v47 }
 0x3b8   : > { %v2749_v59 = vmax.f32 %v2681_v19, 0.0  ;;  %3894 = vmatpush3.bf16.msra.mxu1 %v3891_v37  ;;  %v3582_v10 = vpop.f32.mrb[72].mxu1  ;;  %v3895_v22 = vpack.c.bf16 %v2794_v26, %v2791_v34  ;;  %3624 = vmatprep.mubr.f32.mxu1 %v2825_v45 }
 0x3b9   : > { %v2800_v54 = vmul.f32 %v2752_v30, %v7122_v9  ;;  %v2696_v17 = vadd.f32 %v3582_v10, %v6727_v36  ;;  %v2690_v63 = vpop.f32.mrb[73].mxu1 }
 0x3ba   : > { %v2797_v7 = vmul.f32 %v2749_v59, %v7122_v9  ;;  %v2691_v28 = vadd.f32 %v2690_v63, %v6724_v60  ;;  %3896 = vmatprep.subr.bf16.mxu1 %v3895_v22 }
 0x3bb   : > { %v2758_v44 = vmax.f32 %v2696_v17, 0.0 }
 0x3bc   : > { %v2755_v48 = vmax.f32 %v2691_v28, 0.0  ;;  %3898 = vmatpush3.bf16.msra.mxu1 %v3895_v22  ;;  %v3585_v12 = vpop.f32.mrb[74].mxu1  ;;  %v3899_v50 = vpack.c.bf16 %v2800_v54, %v2797_v7 }
 0x3bd   : > { %v2806_v25 = vmul.f32 %v2758_v44, %v7122_v9  ;;  %v2706_v49 = vadd.f32 %v3585_v12, %v6737_v18  ;;  %v2700_v33 = vpop.f32.mrb[75].mxu1 }
 0x3be   : > { %v2803_v11 = vmul.f32 %v2755_v48, %v7122_v9  ;;  %v2701_v36 = vadd.f32 %v2700_v33, %v6734_v20  ;;  %3900 = vmatprep.subr.bf16.mxu1 %v3899_v50 }
 0x3bf   : > { %v2764_v39 = vmax.f32 %v2706_v49, 0.0 }
 0x3c0   : > { %v2761_v61 = vmax.f32 %v2701_v36, 0.0  ;;  %3902 = vmatpush3.bf16.msra.mxu1 %v3899_v50  ;;  %v3588_v60 = vpop.f32.mrb[76].mxu1  ;;  %v3903_v53 = vpack.c.bf16 %v2806_v25, %v2803_v11 }
 0x3c1   : > { %v2812_v58 = vmul.f32 %v2764_v39, %v7122_v9  ;;  %v2716_v56 = vadd.f32 %v3588_v60, %v6747_v40  ;;  %v2710_v6 = vpop.f32.mrb[77].mxu1 }
 0x3c2   : > { %v2809_v38 = vmul.f32 %v2761_v61, %v7122_v9  ;;  %v2711_v18 = vadd.f32 %v2710_v6, %v6744_v31  ;;  %3904 = vmatprep.subr.bf16.mxu1 %v3903_v53 }
 0x3c3   : > { %v2770_v14 = vmax.f32 %v2716_v56, 0.0 }
 0x3c4   : > { %v2767_v0 = vmax.f32 %v2711_v18, 0.0  ;;  %3906 = vmatpush3.bf16.msra.mxu1 %v3903_v53  ;;  %v3591_v20 = vpop.f32.mrb[78].mxu1  ;;  %v3907_v51 = vpack.c.bf16 %v2812_v58, %v2809_v38 }
 0x3c5   : > { %v2818_v42 = vmul.f32 %v2770_v14, %v7122_v9  ;;  %v2726_v41 = vadd.f32 %v3591_v20, %v6757_v8  ;;  %v2720_v3 = vpop.f32.mrb[79].mxu1 }
 0x3c6   : > { %v2815_v24 = vmul.f32 %v2767_v0, %v7122_v9  ;;  %v2721_v40 = vadd.f32 %v2720_v3, %v6754_v21  ;;  %3908 = vmatprep.subr.bf16.mxu1 %v3907_v51 }
 0x3c7   : > { %v2776_v5 = vmax.f32 %v2726_v41, 0.0 }
 0x3c8   : > { %v2773_v2 = vmax.f32 %v2721_v40, 0.0  ;;  %3910 = vmatpush3.bf16.msra.mxu1 %v3907_v51  ;;  %v3911_v31 = vpack.c.bf16 %v2818_v42, %v2815_v24 }
 0x3c9   : > { %v2824_v43 = vmul.f32 %v2776_v5, %v7122_v9 }
 0x3ca   : > { %v2821_v4 = vmul.f32 %v2773_v2, %v7122_v9  ;;  %3912 = vmatprep.subr.bf16.mxu1 %v3911_v31 }
 0x3cc   : > { %3914 = vmatpush3.bf16.msra.mxu1 %v3911_v31  ;;  %v3915_v15 = vpack.c.bf16 %v2824_v43, %v2821_v4 }
 0x3ce   : > { %3916 = vmatprep.subr.bf16.mxu1 %v3915_v15 }
 0x3d0   : > { %3918 = vmatpush3.bf16.msra.mxu1 %v3915_v15 }
 0x3d3   : > { %3625 = vmatmul.mubr.f32.vlgmr.msra.gmra.mrb[84].mxu1 %v6780_v47 }
 0x486   : > { %v2893_v8 = vpop.f32.mrb[80].mxu1 }
 0x487   : > { %2985 = vrot.lane.b32.xlu0 %v2893_v8, %s4768_s25  ;;  %v2895_v21 = vpop.f32.mrb[81].mxu1 }
 0x488   : > { %2987 = vrot.lane.b32.xlu1 %v2895_v21, %s4768_s25 }
 0x48a   : > { %v2899_v45 = vpop.f32.mrb[82].mxu1 }
 0x48b   : > { %v2901_v27 = vpop.f32.mrb[83].mxu1 }
 0x48c   : > { %2991 = vrot.lane.b32.xlu1 %v2899_v45, %s4768_s25 }
 0x4a6   : > { %v3626_v57 = vpop.f32.mrb[84].mxu1 }
 0x4a7   : > { %2995 = vrot.lane.b32.xlu1 %v3626_v57, %s4768_s25  ;;  %v2970_v32 = vpop.f32.mrb[85].mxu1 }
 0x4a8   : > { %2989 = vrot.lane.b32.xlu0 %v2970_v32, %s4768_s25 }
 0x4ab   : > { %3182 = vperm.xlu1 %4037, %v3179_v35  }
 0x4ac   : > { %2993 = vrot.lane.b32.xlu0 %v2901_v27, %s4768_s25 }
 0x4f9   : > { %v2986_v23 = vpop.permute.xlu0 %2985 }
 0x4fa   : > { %v6813_v1 = vsel %vm601_vm0, 0.0, %v2986_v23  ;;  %v2988_v62 = vpop.permute.xlu1 %2987 }
 0x4fb   : > { %v3118_v29 = vrot.slane %v6813_v1, 6  ;;  %v3013_v46 = vrot.slane %v6813_v1, 1  ;;  %v3139_v37 = vrot.slane %v6813_v1, 7  ;;  %v3034_v47 = vrot.slane %v6813_v1, 2 }
 0x4fc   : > { %v6822_v26 = vsel %vm601_vm0, %v2986_v23, %v2988_v62  ;;  %v3055_v52 = vrot.slane %v6813_v1, 3  ;;  %v3076_v19 = vrot.slane %v6813_v1, 4  ;;  %v3097_v59 = vrot.slane %v6813_v1, 5 }
 0x4fd   : > { %3122 = vrot.lane.b32.xlu1 %v3118_v29, %s4774_s12  ;;  %3017 = vrot.lane.b32.xlu0 %v3013_v46, %s4769_s26  ;;  %v3014_v55 = vrot.slane %v6822_v26, 1  ;;  %v3035_v34 = vrot.slane %v6822_v26, 2  ;;  %v3056_v30 = vrot.slane %v6822_v26, 3  ;;  %v3077_v10 = vrot.slane %v6822_v26, 4 }
 0x4fe   : > { %v3119_v22 = vrot.slane %v6822_v26, 6  ;;  %v3098_v54 = vrot.slane %v6822_v26, 5  ;;  %v3140_v17 = vrot.slane %v6822_v26, 7  ;;  %v2992_v63 = vpop.permute.xlu1 %2991 }
 0x4ff   : > { %v3008_v7 = vsel %vm601_vm0, 0.0, %v2992_v63 }
 0x501   : > { %3143 = vrot.lane.b32.xlu1 %v3139_v37, %s4775_s13  ;;  %3038 = vrot.lane.b32.xlu0 %v3034_v47, %s4770_s27 }
 0x505   : > { %3019 = vrot.lane.b32.xlu1 %v3014_v55, %s4769_s26  ;;  %3059 = vrot.lane.b32.xlu0 %v3055_v52, %s4771_s28 }
 0x509   : > { %3040 = vrot.lane.b32.xlu1 %v3035_v34, %s4770_s27  ;;  %3080 = vrot.lane.b32.xlu0 %v3076_v19, %s4772_s7 }
 0x50d   : > { %3061 = vrot.lane.b32.xlu1 %v3056_v30, %s4771_s28  ;;  %3101 = vrot.lane.b32.xlu0 %v3097_v59, %s4773_s11 }
 0x511   : > { %3082 = vrot.lane.b32.xlu1 %v3077_v10, %s4772_s7  ;;  %3124 = vrot.lane.b32.xlu0 %v3119_v22, %s4774_s12 }
 0x515   : > { %3103 = vrot.lane.b32.xlu1 %v3098_v54, %s4773_s11  ;;  %3145 = vrot.lane.b32.xlu0 %v3140_v17, %s4775_s13 }
 0x519   : > { %3162 = vrot.lane.b32.xlu1 %v3008_v7, %s4776_s23  ;;  %v2996_v6 = vpop.permute.xlu1 %2995 }
 0x51a   : > { %v2990_v28 = vpop.permute.xlu0 %2989  ;;  %v3010_v20 = vsel %vm601_vm0, %v2996_v6, 0.0 }
 0x51b   : > { %v3009_v44 = vsel %vm601_vm0, %v2990_v28, 0.0  ;;  %v6851_v50 = vsel %vm601_vm0, %v2988_v62, %v2990_v28 }
 0x51c   : > { %v3016_v48 = vrot.slane %v3009_v44, 1  ;;  %v3037_v49 = vrot.slane %v3009_v44, 2  ;;  %v3015_v33 = vrot.slane %v6851_v50, 1  ;;  %v3058_v11 = vrot.slane %v3009_v44, 3 }
 0x51d   : > { %v3036_v36 = vrot.slane %v6851_v50, 2  ;;  %v3079_v39 = vrot.slane %v3009_v44, 4  ;;  %v3057_v61 = vrot.slane %v6851_v50, 3  ;;  %v3120_v60 = vrot.slane %v6851_v50, 6 }
 0x51e   : > { %3023 = vrot.lane.b32.xlu1 %v3016_v48, %s4769_s26  ;;  %v2994_v12 = vpop.permute.xlu0 %2993  ;;  %v3078_v53 = vrot.slane %v6851_v50, 4  ;;  %v3141_v58 = vrot.slane %v6851_v50, 7  ;;  %v3099_v56 = vrot.slane %v6851_v50, 5  ;;  %v3100_v18 = vrot.slane %v3009_v44, 5 }
 0x51f   : > { %v2999_v25 = vsel %vm601_vm0, %v2992_v63, %v2994_v12  ;;  %v3000_v38 = vsel %vm601_vm0, %v2994_v12, %v2996_v6  ;;  %v3121_v14 = vrot.slane %v3009_v44, 6  ;;  %v3142_v0 = vrot.slane %v3009_v44, 7  ;;  %v7123_v6 = vld [vmem:[#allocation4_spill] sm:$0xff] }
 0x520   : > { %3164 = vrot.lane.b32.xlu0 %v2999_v25, %s4776_s23 }
 0x522   : > { %3044 = vrot.lane.b32.xlu1 %v3037_v49, %s4770_s27 }
 0x524   : > { %3021 = vrot.lane.b32.xlu0 %v3015_v33, %s4769_s26 }
 0x526   : > { %3065 = vrot.lane.b32.xlu1 %v3058_v11, %s4771_s28 }
 0x528   : > { %3042 = vrot.lane.b32.xlu0 %v3036_v36, %s4770_s27  ;;  %s302_s27 = scalar_lea.vmem %s6928_s8, %s4015_s19 }
 0x52a   : > { %3086 = vrot.lane.b32.xlu1 %v3079_v39, %s4772_s7  ;;  %v3183_v51 = vpop.permute.xlu1 %3182 }
 0x52c   : > { %3063 = vrot.lane.b32.xlu0 %v3057_v61, %s4771_s28 }
 0x52e   : > { %3126 = vrot.lane.b32.xlu1 %v3120_v60, %s4774_s12 }
 0x530   : > { %3084 = vrot.lane.b32.xlu0 %v3078_v53, %s4772_s7 }
 0x532   : > { %3147 = vrot.lane.b32.xlu1 %v3141_v58, %s4775_s13 }
 0x534   : > { %3105 = vrot.lane.b32.xlu0 %v3099_v56, %s4773_s11 }
 0x536   : > { %3166 = vrot.lane.b32.xlu1 %v3000_v38, %s4776_s23  ;;  %v3188_v38 = vrot.slane %v3183_v51, %v7123_v6 }
 0x538   : > { %3107 = vrot.lane.b32.xlu0 %v3100_v18, %s4773_s11 }
 0x53c   : > { %3128 = vrot.lane.b32.xlu0 %v3121_v14, %s4774_s12 }
 0x540   : > { %3149 = vrot.lane.b32.xlu0 %v3142_v0, %s4775_s13 }
 0x544   : > { %3168 = vrot.lane.b32.xlu0 %v3010_v20, %s4776_s23 }
 0x56f   : > { %v3123_v42 = vpop.permute.xlu1 %3122  ;;  %v3018_v41 = vpop.permute.xlu0 %3017 }
 0x573   : > { %v3144_v3 = vpop.permute.xlu1 %3143  ;;  %v3039_v24 = vpop.permute.xlu0 %3038 }
 0x577   : > { %v3020_v40 = vpop.permute.xlu1 %3019  ;;  %v3060_v5 = vpop.permute.xlu0 %3059 }
 0x578   : > { %v3025_v32 = vsel %vm746_vm3, %v3018_v41, %v3020_v40 }
 0x579   : > { %v3031_v29 = vadd.f32 %v3025_v32, %v6813_v1 }
 0x57b   : > { %v3041_v2 = vpop.permute.xlu1 %3040  ;;  %v3081_v31 = vpop.permute.xlu0 %3080 }
 0x57c   : > { %v3046_v23 = vsel %vm859_vm4, %v3039_v24, %v3041_v2 }
 0x57d   : > { %v3052_v37 = vadd.f32 %v3046_v23, %v3031_v29 }
 0x57f   : > { %v3062_v43 = vpop.permute.xlu1 %3061  ;;  %v3102_v4 = vpop.permute.xlu0 %3101 }
 0x580   : > { %v3067_v62 = vsel %vm972_vm5, %v3060_v5, %v3062_v43 }
 0x581   : > { %v3073_v52 = vadd.f32 %v3067_v62, %v3052_v37 }
 0x583   : > { %v3083_v15 = vpop.permute.xlu1 %3082  ;;  %v3125_v21 = vpop.permute.xlu0 %3124 }
 0x584   : > { %v3088_v55 = vsel %vm1085_vm6, %v3081_v31, %v3083_v15  ;;  %v3130_v1 = vsel %vm1311_vm8, %v3123_v42, %v3125_v21 }
 0x585   : > { %v3094_v30 = vadd.f32 %v3088_v55, %v3073_v52 }
 0x587   : > { %v3104_v8 = vpop.permute.xlu1 %3103  ;;  %v3146_v27 = vpop.permute.xlu0 %3145 }
 0x588   : > { %v3109_v19 = vsel %vm1198_vm7, %v3102_v4, %v3104_v8  ;;  %v3151_v49 = vsel %vm1424_vm9, %v3144_v3, %v3146_v27 }
 0x589   : > { %v3115_v10 = vadd.f32 %v3109_v19, %v3094_v30 }
 0x58b   : > { %v3163_v45 = vpop.permute.xlu1 %3162  ;;  %v3136_v7 = vadd.f32 %v3130_v1, %v3115_v10 }
 0x58d   : > { %v3157_v36 = vadd.f32 %v3151_v49, %v3136_v7  ;;  %v7124_v49 = vld [vmem:[#allocation3_spill] sm:$0xff] }
 0x590   : > { %v3024_v57 = vpop.permute.xlu1 %3023 }
 0x592   : > { %v3165_v35 = vpop.permute.xlu0 %3164 }
 0x593   : > { %v3170_v33 = vsel %vm1537_vm10, %v3163_v45, %v3165_v35 }
 0x594   : > { %v3045_v46 = vpop.permute.xlu1 %3044  ;;  %v3176_v60 = vadd.f32 %v3170_v33, %v3157_v36 }
 0x596   : > { %v3022_v47 = vpop.permute.xlu0 %3021  ;;  %v3189_v20 = vadd.f32 %v3188_v38, %v3176_v60  ;;  %v7125_v60 = vlaneseq }
 0x597   : > { %v3026_v54 = vsel %vm746_vm3, %v3020_v40, %v3022_v47  ;;  %v3027_v56 = vsel %vm746_vm3, %v3022_v47, %v3024_v57 }
 0x598   : > { %v3066_v34 = vpop.permute.xlu1 %3065  ;;  %v3032_v28 = vadd.f32 %v3026_v54, %v6822_v26  ;;  %v3033_v42 = vadd.f32 %v3027_v56, %v6851_v50  ;;  %v3192_v4 = vmul.f32 %v3189_v20, %v7120_v16  ;;  %vm3239_vm12 = vcmp.lt.s32.totalorder %v7125_v60, 384 }
 0x59a   : > { %v3043_v59 = vpop.permute.xlu0 %3042  ;;  %v3195_v23 = vsub.f32 0.0, %v3192_v4 }
 0x59b   : > { %v3047_v63 = vsel %vm859_vm4, %v3041_v2, %v3043_v59  ;;  %v3048_v14 = vsel %vm859_vm4, %v3043_v59, %v3045_v46 }
 0x59c   : > { %v3087_v22 = vpop.permute.xlu1 %3086  ;;  %v3053_v12 = vadd.f32 %v3047_v63, %v3032_v28  ;;  %v3054_v2 = vadd.f32 %v3048_v14, %v3033_v42  ;;  %v3198_v47 = vmul.f32 1.442695, %v3195_v23  ;;  %v4778_v28 = vmov 1966171168  }
 0x59e   : > { %v3064_v17 = vpop.permute.xlu0 %3063 }
 0x59f   : > { %v3068_v48 = vsel %vm972_vm5, %v3062_v43, %v3064_v17  ;;  %v3069_v40 = vsel %vm972_vm5, %v3064_v17, %v3066_v34 }
 0x5a0   : > { %v3127_v44 = vpop.permute.xlu1 %3126  ;;  %v3074_v39 = vadd.f32 %v3068_v48, %v3053_v12 }
 0x5a1   : > { %v3131_v0 = vsel %vm1311_vm8, %v3125_v21, %v3127_v44 }
 0x5a2   : > { %v3085_v25 = vpop.permute.xlu0 %3084 }
 0x5a3   : > { %v3089_v11 = vsel %vm1085_vm6, %v3083_v15, %v3085_v25  ;;  %v3090_v43 = vsel %vm1085_vm6, %v3085_v25, %v3087_v22  ;;  %v3075_v15 = vadd.f32 %v3069_v40, %v3054_v2 }
 0x5a4   : > { %v3148_v61 = vpop.permute.xlu1 %3147  ;;  %v3095_v53 = vadd.f32 %v3089_v11, %v3074_v39 }
 0x5a5   : > { %v3152_v5 = vsel %vm1424_vm9, %v3146_v27, %v3148_v61  ;;  %v3096_v45 = vadd.f32 %v3090_v43, %v3075_v15 }
 0x5a6   : > { %v3106_v58 = vpop.permute.xlu0 %3105 }
 0x5a7   : > { %v3110_v26 = vsel %vm1198_vm7, %v3104_v8, %v3106_v58 }
 0x5a8   : > { %v3116_v18 = vadd.f32 %v3110_v26, %v3095_v53  ;;  %v3167_v3 = vpop.permute.xlu1 %3166 }
 0x5a9   : > { %v3171_v51 = vsel %vm1537_vm10, %v3165_v35, %v3167_v3 }
 0x5aa   : > { %v3137_v41 = vadd.f32 %v3131_v0, %v3116_v18  ;;  %v3108_v24 = vpop.permute.xlu0 %3107 }
 0x5ab   : > { %v3111_v50 = vsel %vm1198_vm7, %v3106_v58, %v3108_v24 }
 0x5ac   : > { %v3158_v31 = vadd.f32 %v3152_v5, %v3137_v41  ;;  %v3117_v29 = vadd.f32 %v3111_v50, %v3096_v45 }
 0x5ae   : > { %v3177_v8 = vadd.f32 %v3171_v51, %v3158_v31  ;;  %v3129_v21 = vpop.permute.xlu0 %3128 }
 0x5af   : > { %v3132_v32 = vsel %vm1311_vm8, %v3127_v44, %v3129_v21  ;;  %v3215_v44 = vunpack.c.l.s4 %v4778_v28 }
 0x5b0   : > { %v3190_v57 = vadd.f32 %v3188_v38, %v3177_v8  ;;  %v3138_v35 = vadd.f32 %v3132_v32, %v3117_v29 }
 0x5b1   : > { %v3216_v48 = vunpack.c.0.s8 %v3215_v44 }
 0x5b2   : > { %v3193_v27 = vmul.f32 %v3190_v57, %v7121_v13  ;;  %v3150_v46 = vpop.permute.xlu0 %3149 }
 0x5b3   : > { %v3153_v62 = vsel %vm1424_vm9, %v3148_v61, %v3150_v46 }
 0x5b4   : > { %v3196_v37 = vsub.f32 0.0, %v3193_v27  ;;  %v3159_v55 = vadd.f32 %v3153_v62, %v3138_v35 }
 0x5b6   : > { %v3200_v16 = vmul.f32 1.442695, %v3196_v37  ;;  %v3169_v52 = vpop.permute.xlu0 %3168 }
 0x5b7   : > { %v3172_v34 = vsel %vm1537_vm10, %v3167_v3, %v3169_v52 }
 0x5b8   : > { %4738 = vpow2.f32 %v3200_v16  ;;  %v3178_v19 = vadd.f32 %v3172_v34, %v3159_v55 }
 0x5b9   : > { %4740 = vpow2.f32 %v3198_v47 }
 0x5ba   : > { %v3191_v30 = vadd.f32 %v3188_v38, %v3178_v19 }
 0x5bc   : > { %v3194_v59 = vmul.f32 %v3191_v30, %v7122_v9  ;;  %v3219_v9 = vsub.s32 %v3216_v48, %v7124_v49 }
 0x5be   : > { %v3197_v10 = vsub.f32 0.0, %v3194_v59 }
 0x5c0   : > { %v3202_v13 = vmul.f32 1.442695, %v3197_v10 }
 0x5c2   : > { %v4739_v22 = vpop.eup %4738  ;;  %4742 = vpow2.f32 %v3202_v13 }
 0x5c3   : > { %v4741_v54 = vpop.eup %4740  ;;  %v3205_v17 = vadd.f32 1.0, %v4739_v22 }
 0x5c4   : > { %v3204_v1 = vadd.f32 1.0, %v4741_v54 }
 0x5c5   : > { %4744 = vrcp.f32 %v3205_v17 }
 0x5c6   : > { %4746 = vrcp.f32 %v3204_v1 }
 0x5cc   : > { %v4743_v63 = vpop.eup %4742 }
 0x5cd   : > { %v3206_v7 = vadd.f32 1.0, %v4743_v63 }
 0x5cf   : > { %4748 = vrcp.f32 %v3206_v7  ;;  %v4745_v12 = vpop.eup %4744 }
 0x5d0   : > { %v4747_v25 = vpop.eup %4746 }
 0x5d1   : > { %v3213_v33 = vcombine.low %v4747_v25, %v4745_v12 }
 0x5d3   : > { %v3220_v36 = vrot.slane %v3213_v33, %v3219_v9 }
 0x5d9   : > { %v4749_v11 = vpop.eup %4748 }
 0x5da   : > { %v3227_v39 = vrot.slane %v4749_v11, %v3219_v9 }
 0x5dc   : > { %v3228_v61 = vcombine.low %v3220_v36, %v3227_v39 }
 0x5de   : > { %v3235_v53 = vrot.slane %v3228_v61, %v3219_v9 }
 0x5e0   : > { %3241 = vst.msk [vmem:[%s302_s27] sm:$0x7] %vm3239_vm12, %v3235_v53 }
 0x5e1 PF: > { %s20_s29 = sadd.s32 1, %s4765_s29  }
 0x5e2   : > { %p17_p4 = scmp.ge.s32.totalorder %s20_s29, 4  }
 0x5e4   :  { %19 = sbr.rel (!%p17_p4) target bundleno = 3 (0x3), region = 82 }

</bundles_post_ra>
